<compile_context>
chip_gen: v7x
topology: tpu7x:2x2x1
jax: 0.10.0
libtpu: 0.0.40
codegen_flags: <defaults>
</compile_context>

<pallas_src>
import functools

import jax
import jax.numpy as jnp
from jax.experimental import pallas as pl
from jax.experimental.pallas import tpu as pltpu


def pool_matmul_kernel(x_ref, w_ref, s_ref, b_ref, o_ref, *, inv_hw):
    """One (batch tile, class block) step: spatial mean -> MXU matmul -> scale + bias.

    x_ref: (bB, C, HW) f32        activations (lane axis = HW, reduced here)
    w_ref: (C, blk_n)  int8|bf16  transposed weight block (streamed per class block)
    s_ref: (1, blk_n)  f32        per-output-channel dequant scale (1.0 if unquantized)
    b_ref: (1, blk_n)  f32        bias; padded classes hold -1e30 so softmax zeroes them
    o_ref: (bB, blk_n) f32        logits block
    """
    # AdaptiveAvgPool2d((1,1)) == mean over HW.  Reduce directly in f32 (input is already f32, no
    # materialized upcast); the pooled result is lane-dense on C, ready as the MXU LHS.
    pooled = jnp.sum(x_ref[...], axis=-1) * inv_hw                     # (bB, C) f32
    # Dequantize the weight block in VMEM.  Explicit i8 -> f32 -> bf16 keeps the lowering on
    # universally supported converts; it is a no-op chain when the weight is already bf16.
    w = w_ref[...].astype(jnp.float32).astype(jnp.bfloat16)            # (C, blk_n) bf16
    acc = jnp.dot(pooled.astype(jnp.bfloat16), w,
                  preferred_element_type=jnp.float32)                  # MXU, f32 accumulate
    # Per-output-channel scale factors out of the contraction, so it is applied post-matmul.
    o_ref[...] = acc * s_ref[...] + b_ref[...]


def softmax_kernel(l_ref, o_ref):
    """Row softmax over the padded class axis (exact division so rows sum to exactly 1)."""
    x = l_ref[...]                                                     # (bB, n_pad) f32
    m = jnp.max(x, axis=-1, keepdims=True)
    e = jnp.exp(x - m)                                                 # padded cols: exp(~-1e30)=0
    o_ref[...] = e / jnp.sum(e, axis=-1, keepdims=True)


def prepare_params(weight, bias, *, quantize=True):
    """One-time prep (model-load time, NOT in the per-call path).

    - weight (N, C) -> transposed (C, Npad) with classes padded to a multiple of 128 so logits /
      softmax are lane-dense; output is sliced back to N in the wrapper.
    - quantize=True stores the weight as int8 with a per-output-channel scale (halves the dominant
      HBM weight stream on every TPU generation); otherwise bf16.
    - bias is padded with -1e30 so padded logits vanish under softmax (logits stay f32, so this is
      finite and never produces NaN).
    """
    n_classes, c = weight.shape
    n_pad = ((n_classes + 127) // 128) * 128
    w_t = weight.T.astype(jnp.float32)                                 # (C, N)
    if quantize:
        maxabs = jnp.max(jnp.abs(w_t), axis=0, keepdims=True)          # (1, N) per output channel
        scale = jnp.maximum(maxabs, 1e-30) / 127.0
        w_q = jnp.clip(jnp.round(w_t / scale), -127, 127).astype(jnp.int8)
        w_store = jnp.zeros((c, n_pad), jnp.int8).at[:, :n_classes].set(w_q)
    else:
        scale = jnp.ones((1, n_classes), jnp.float32)
        w_store = jnp.zeros((c, n_pad), jnp.bfloat16).at[:, :n_classes].set(
            w_t.astype(jnp.bfloat16))
    scale_pad = jnp.ones((1, n_pad), jnp.float32).at[:, :n_classes].set(scale)
    bias_pad = jnp.full((1, n_pad), -1e30, jnp.float32).at[0, :n_classes].set(
        bias.astype(jnp.float32))
    return w_store, scale_pad, bias_pad


@functools.partial(jax.jit, static_argnames=("num_classes",))
def classifier_forward(x_nchw, w_q, scale_pad, bias_pad, *, num_classes):
    """x_nchw: (B, C, H, W) f32; w_q: (C, Npad) int8|bf16; scale_pad/bias_pad: (1, Npad) f32."""
    B, C, H, W = x_nchw.shape
    HW = H * W
    n_pad = w_q.shape[1]

    # Free reshape (no copy, no dtype change): the kernel pools over the last axis itself.
    x = x_nchw.reshape(B, C, HW)

    # Batch tile: <= 8 MiB of x per pipeline buffer.  2 x-buffers + double-buffered weight block +
    # outputs stay well under the 32 MiB scoped-VMEM limit, which itself is safe on every
    # generation (v5e/v6e: 128 MiB physical; v7x: 64 MiB physical).
    bytes_per_sample = C * HW * 4
    block_b = max(1, min(B, 128, (8 * 1024 * 1024) // bytes_per_sample))
    if block_b < B:
        block_b = max(8, (block_b // 8) * 8)          # keep the second-minor output dim 8-aligned
    num_b_tiles = pl.cdiv(B, block_b)

    # Split the class axis so v7x's two TensorCores each stream a disjoint half of the weight.
    n_cls_blocks = 2 if n_pad % 256 == 0 else 1
    blk_n = n_pad // n_cls_blocks

    kernel = functools.partial(pool_matmul_kernel, inv_hw=1.0 / HW)
    w_bytes = C * n_pad * w_q.dtype.itemsize
    cost = pl.CostEstimate(
        flops=2 * B * C * n_pad + B * C * HW,
        transcendentals=0,
        bytes_accessed=B * C * HW * 4 + w_bytes + 2 * n_pad * 4 + B * n_pad * 4,
    )

    logits = pl.pallas_call(
        kernel,
        out_shape=jax.ShapeDtypeStruct((B, n_pad), jnp.float32),
        grid_spec=pltpu.PrefetchScalarGridSpec(
            num_scalar_prefetch=0,
            grid=(num_b_tiles, n_cls_blocks),   # class axis innermost: x block is not re-fetched
            in_specs=[
                pl.BlockSpec((block_b, C, HW), lambda i, j: (i, 0, 0)),   # x: batch-tiled
                pl.BlockSpec((C, blk_n), lambda i, j: (0, j)),            # weight: class-split
                pl.BlockSpec((1, blk_n), lambda i, j: (0, j)),            # dequant scale
                pl.BlockSpec((1, blk_n), lambda i, j: (0, j)),            # bias
            ],
            out_specs=pl.BlockSpec((block_b, blk_n), lambda i, j: (i, j)),
        ),
        compiler_params=pltpu.CompilerParams(
            dimension_semantics=("parallel", "parallel"),   # both axes splittable across v7x TCs
            vmem_limit_bytes=32 * 1024 * 1024,
        ),
        cost_estimate=cost,
    )(x, w_q, scale_pad, bias_pad)

    # Finish with a tiny softmax kernel over the (B, Npad) f32 logits (a few KiB of traffic).
    block_b2 = B if B <= 256 else 256
    probs = pl.pallas_call(
        softmax_kernel,
        out_shape=jax.ShapeDtypeStruct((B, n_pad), jnp.float32),
        grid_spec=pltpu.PrefetchScalarGridSpec(
            num_scalar_prefetch=0,
            grid=(pl.cdiv(B, block_b2),),
            in_specs=[pl.BlockSpec((block_b2, n_pad), lambda i: (i, 0))],
            out_specs=pl.BlockSpec((block_b2, n_pad), lambda i: (i, 0)),
        ),
        compiler_params=pltpu.CompilerParams(dimension_semantics=("parallel",)),
    )(logits)

    return probs[:, :num_classes]


if __name__ == "__main__":
    key = jax.random.PRNGKey(0)
    kx, kw, kb = jax.random.split(key, 3)

    B, C, H, W = 2, 1024, 8, 8            # fc input is fixed at 1024 features by the module
    num_classes = 1000

    x = jax.random.normal(kx, (B, C, H, W), dtype=jnp.float32)
    # Deterministic synthetic params matching nn.Linear(1024, num_classes) shapes.
    weight = jax.random.normal(kw, (num_classes, C), dtype=jnp.float32) * 0.02
    bias = jax.random.normal(kb, (num_classes,), dtype=jnp.float32) * 0.02

    w_q, scale_pad, bias_pad = prepare_params(weight, bias, quantize=True)   # one-time prep
    out = classifier_forward(x, w_q, scale_pad, bias_pad, num_classes=num_classes)
    out = jax.block_until_ready(out)

    # Reference with the same numerics choices as the kernel: dequantized (int8 * scale) weight
    # and bf16-rounded pooled activations; everything else in f32.
    pooled = jnp.mean(x, axis=(2, 3))
    pooled_bf = pooled.astype(jnp.bfloat16).astype(jnp.float32)
    w_deq = w_q[:, :num_classes].astype(jnp.float32) * scale_pad[:, :num_classes]   # (C, N)
    ref = jax.nn.softmax(pooled_bf @ w_deq + bias, axis=-1)

    assert out.shape == (B, num_classes)
    assert jnp.allclose(jnp.sum(out, axis=1), 1.0, atol=1e-3)
    assert jnp.allclose(out, ref, atol=2e-4, rtol=2e-2)
    print("KERNEL_OK")
</pallas_src>

<mosaic_0001>
module attributes {stable_mosaic.version = 11 : i64} {
  func.func @pool_matmul_kernel(%arg0: i32, %arg1: i32, %arg2: memref<2x1024x64xf32, #tpu.memory_space<vmem>>, %arg3: memref<1024x512xi8, #tpu.memory_space<vmem>>, %arg4: memref<1x512xf32, #tpu.memory_space<vmem>>, %arg5: memref<1x512xf32, #tpu.memory_space<vmem>>, %arg6: memref<2x512xf32, #tpu.memory_space<vmem>>) attributes {dimension_semantics = [#tpu.dimension_semantics<parallel>, #tpu.dimension_semantics<parallel>], iteration_bounds = array<i64: 1, 2>, scalar_prefetch = 0 : i64, scratch_operands = 0 : i64, tpu.core_type = #tpu.core_type<tc>, window_params = [{transform_indices = @transform_0, window_bounds = array<i64: 2, 1024, 64>}, {transform_indices = @transform_1, window_bounds = array<i64: 1024, 512>}, {transform_indices = @transform_2, window_bounds = array<i64: 1, 512>}, {transform_indices = @transform_3, window_bounds = array<i64: 1, 512>}, {transform_indices = @transform_4, window_bounds = array<i64: 2, 512>}]} {
    %c0 = arith.constant 0 : index
    %c0_0 = arith.constant 0 : index
    %c0_1 = arith.constant 0 : index
    %0 = vector.load %arg2[%c0, %c0_0, %c0_1] : memref<2x1024x64xf32, #tpu.memory_space<vmem>>, vector<2x1024x64xf32>
    %cst = arith.constant dense<0.000000e+00> : vector<2x1024xf32>
    %1 = vector.multi_reduction <add>, %0, %cst [2] : vector<2x1024x64xf32> to vector<2x1024xf32>
    %cst_2 = arith.constant 1.562500e-02 : f32
    %2 = vector.broadcast %cst_2 : f32 to vector<2x1024xf32>
    %3 = arith.mulf %1, %2 : vector<2x1024xf32>
    %c0_3 = arith.constant 0 : index
    %c0_4 = arith.constant 0 : index
    %4 = vector.load %arg3[%c0_3, %c0_4] : memref<1024x512xi8, #tpu.memory_space<vmem>>, vector<1024x512xi8>
    %5 = arith.sitofp %4 : vector<1024x512xi8> to vector<1024x512xf32>
    %6 = arith.truncf %5 : vector<1024x512xf32> to vector<1024x512xbf16>
    %7 = arith.truncf %3 : vector<2x1024xf32> to vector<2x1024xbf16>
    %cst_5 = arith.constant dense<0.000000e+00> : vector<2x512xf32>
    %8 = tpu.matmul %7, %6, %cst_5 {dimension_numbers = #tpu.dot_dimension_numbers<[1], [0], [0], [1], [0, 0, 1, 1], [], []>} : vector<2x1024xbf16>, vector<1024x512xbf16>, vector<2x512xf32> -> vector<2x512xf32>
    %c0_6 = arith.constant 0 : index
    %c0_7 = arith.constant 0 : index
    %9 = vector.load %arg4[%c0_6, %c0_7] : memref<1x512xf32, #tpu.memory_space<vmem>>, vector<1x512xf32>
    %10 = vector.broadcast %9 : vector<1x512xf32> to vector<2x512xf32>
    %11 = arith.mulf %8, %10 : vector<2x512xf32>
    %c0_8 = arith.constant 0 : index
    %c0_9 = arith.constant 0 : index
    %12 = vector.load %arg5[%c0_8, %c0_9] : memref<1x512xf32, #tpu.memory_space<vmem>>, vector<1x512xf32>
    %13 = vector.broadcast %12 : vector<1x512xf32> to vector<2x512xf32>
    %14 = arith.addf %11, %13 : vector<2x512xf32>
    %c0_10 = arith.constant 0 : index
    %c0_11 = arith.constant 0 : index
    %15 = vector.load %arg6[%c0_10, %c0_11] : memref<2x512xf32, #tpu.memory_space<vmem>>, vector<2x512xf32>
    tpu.vector_store %arg6[%c0_10, %c0_11], %14 {strides = array<i32>} : memref<2x512xf32, #tpu.memory_space<vmem>>, vector<2x512xf32>,
    return
  }
  func.func @transform_0(%arg0: i32, %arg1: i32) -> (i32, i32, i32) {
    %c0_i32 = arith.constant 0 : i32
    %c0_i32_0 = arith.constant 0 : i32
    %c0_i32_1 = arith.constant 0 : i32
    return %arg0, %c0_i32, %c0_i32_0 : i32, i32, i32
  }
  func.func @transform_1(%arg0: i32, %arg1: i32) -> (i32, i32) {
    %c0_i32 = arith.constant 0 : i32
    %c0_i32_0 = arith.constant 0 : i32
    return %c0_i32, %arg1 : i32, i32
  }
  func.func @transform_2(%arg0: i32, %arg1: i32) -> (i32, i32) {
    %c0_i32 = arith.constant 0 : i32
    %c0_i32_0 = arith.constant 0 : i32
    return %c0_i32, %arg1 : i32, i32
  }
  func.func @transform_3(%arg0: i32, %arg1: i32) -> (i32, i32) {
    %c0_i32 = arith.constant 0 : i32
    %c0_i32_0 = arith.constant 0 : i32
    return %c0_i32, %arg1 : i32, i32
  }
  func.func @transform_4(%arg0: i32, %arg1: i32) -> (i32, i32) {
    %c0_i32 = arith.constant 0 : i32
    return %arg0, %arg1 : i32, i32
  }
}

module attributes {stable_mosaic.version = 11 : i64} {
  func.func @softmax_kernel(%arg0: i32, %arg1: memref<2x1024xf32, #tpu.memory_space<vmem>>, %arg2: memref<2x1024xf32, #tpu.memory_space<vmem>>) attributes {dimension_semantics = [#tpu.dimension_semantics<parallel>], iteration_bounds = array<i64: 1>, scalar_prefetch = 0 : i64, scratch_operands = 0 : i64, tpu.core_type = #tpu.core_type<tc>, window_params = [{transform_indices = @transform_0, window_bounds = array<i64: 2, 1024>}, {transform_indices = @transform_1, window_bounds = array<i64: 2, 1024>}]} {
    %c0 = arith.constant 0 : index
    %c0_0 = arith.constant 0 : index
    %0 = vector.load %arg1[%c0, %c0_0] : memref<2x1024xf32, #tpu.memory_space<vmem>>, vector<2x1024xf32>
    %cst = arith.constant dense<0xFF800000> : vector<2xf32>
    %1 = vector.multi_reduction <maximumf>, %0, %cst [1] : vector<2x1024xf32> to vector<2xf32>
    %2 = vector.shape_cast %1 : vector<2xf32> to vector<2x1xf32>
    %3 = vector.broadcast %2 : vector<2x1xf32> to vector<2x1024xf32>
    %4 = arith.subf %0, %3 : vector<2x1024xf32>
    %5 = math.exp %4 : vector<2x1024xf32>
    %cst_1 = arith.constant dense<0.000000e+00> : vector<2xf32>
    %6 = vector.multi_reduction <add>, %5, %cst_1 [1] : vector<2x1024xf32> to vector<2xf32>
    %7 = vector.shape_cast %6 : vector<2xf32> to vector<2x1xf32>
    %8 = vector.broadcast %7 : vector<2x1xf32> to vector<2x1024xf32>
    %9 = arith.divf %5, %8 : vector<2x1024xf32>
    %c0_2 = arith.constant 0 : index
    %c0_3 = arith.constant 0 : index
    %10 = vector.load %arg2[%c0_2, %c0_3] : memref<2x1024xf32, #tpu.memory_space<vmem>>, vector<2x1024xf32>
    tpu.vector_store %arg2[%c0_2, %c0_3], %9 {strides = array<i32>} : memref<2x1024xf32, #tpu.memory_space<vmem>>, vector<2x1024xf32>,
    return
  }
  func.func @transform_0(%arg0: i32) -> (i32, i32) {
    %c0_i32 = arith.constant 0 : i32
    %c0_i32_0 = arith.constant 0 : i32
    return %arg0, %c0_i32 : i32, i32
  }
  func.func @transform_1(%arg0: i32) -> (i32, i32) {
    %c0_i32 = arith.constant 0 : i32
    %c0_i32_0 = arith.constant 0 : i32
    return %arg0, %c0_i32 : i32, i32
  }
}

</mosaic_0001>

<bundles_post_ra>
// kernel: classifier_forward.3
= control target key start
LH: loop header
LB: loop body
LE: loop exit
PB: predicated region body
PF: predicated region fallthrough
CT: control target
= control target key end

     0   :  { %v17_v2 = vlaneseq  ;;  %v212_v3 = vmov 1983009808   ;;  %s259_s0 = inlined_call_operand.vmem [shape: f32[2,1024], index: 0, kind: input, shape index: {}]   ;;  %s260_s1 = inlined_call_operand.hbm [shape: f32[2,1024], index: 1, kind: output, shape index: {}]  }
   0x1   :  { %v9_v0 = vld [vmem:[%s259_s0] sm:$0xff]  ;;  %v10_v1 = vld [vmem:[%s259_s0 + $0x8] sm:$0xff]  ;;  %v15_v4 = vunpack.c.l.s4 %v212_v3 }
   0x2   :  { %6 = vsyncpa [#allocation3], 0  ;;  %v18_v5 = vshrl.u32 %v17_v2, 7  ;;  %v13_v6 = vcombine.high %v9_v0, %v9_v0  ;;  %v30_v8 = vcombine.high %v10_v1, %v10_v1  ;;  %vm55_vm0 = vcmask 1041408   ;;  %s214_s0 = smov [#allocation2]  }
   0x3   :  { %v16_v7 = vunpack.c.0.s8 %v15_v4  ;;  %v213_v33 = vmov 269488144   ;;  %s169_s10 = sshll.u32 %s214_s0, 4  ;;  %s170_s10 = int_to_ptr.vmem [resolvable:$true] %s169_s10 }
   0x4   :  { %v75_v34 = vunpack.c.l.s4 %v213_v33  ;;  %s188_s11 = scalar_lea.vmem %s170_s10, 256  ;;  %p193_p1 = scmp.lt.s32.totalorder %s170_s10, %s170_s10 }
   0x5   :  { %v19_v9 = vsub.s32 %v16_v7, %v18_v5  ;;  %p189_p0 = scmp.ne.s32.totalorder %s170_s10, %s188_s11  ;;  %p194_p2 = scmp.lt.s32.totalorder %s188_s11, %s188_s11 }
   0x6   :  { %v76_v35 = vunpack.c.0.s8 %v75_v34 }
   0x7   :  { %v20_v10 = vrot.slane %v9_v0, %v19_v9  ;;  %v27_v11 = vrot.slane %v13_v6, %v19_v9  ;;  %v37_v12 = vrot.slane %v10_v1, %v19_v9  ;;  %v44_v13 = vrot.slane %v30_v8, %v19_v9  ;;  %p195_p3 = por %p194_p2, %p193_p1 }
   0x8   :  { %v79_v36 = vsub.s32 %v76_v35, %v18_v5 }
   0x9   :  { %v28_v14 = vcombine.high %v20_v10, %v20_v10  ;;  %v29_v15 = vcombine.high %v27_v11, %v27_v11  ;;  %v45_v16 = vcombine.high %v37_v12, %v37_v12  ;;  %v46_v17 = vcombine.high %v44_v13, %v44_v13  ;;  %p196_p4 = pnand %p195_p3, %p189_p0 }
   0xa   :  { %v56_v18 = vsel %vm55_vm0, %v20_v10, -inf  ;;  %v58_v19 = vsel %vm55_vm0, %v27_v11, -inf  ;;  %v60_v20 = vsel %vm55_vm0, %v37_v12, -inf  ;;  %v64_v21 = vsel %vm55_vm0, %v44_v13, -inf }
   0xb   :  { %v57_v22 = vsel %vm55_vm0, %v28_v14, -inf  ;;  %v59_v23 = vsel %vm55_vm0, %v29_v15, -inf  ;;  %v61_v24 = vmax.f32 %v56_v18, %v60_v20  ;;  %v62_v25 = vsel %vm55_vm0, %v45_v16, -inf }
   0xc   :  { %v63_v26 = vmax.f32 %v57_v22, %v62_v25  ;;  %v65_v27 = vmax.f32 %v58_v19, %v64_v21  ;;  %v66_v28 = vsel %vm55_vm0, %v46_v17, -inf }
   0xd   :  { %v67_v29 = vmax.f32 %v59_v23, %v66_v28 }
   0xe   :  { %v68_v30 = vmax.f32 %v61_v24, %v63_v26 }
   0xf   :  { %v69_v31 = vmax.f32 %v65_v27, %v67_v29 }
  0x11   :  { %v70_v32 = vmax.f32 %v68_v30, %v69_v31 }
  0x13   :  { %71 = vmax.xlane.f32.xlu0 %v70_v32 }
  0xa0   :  { %v72_v37 = vpop.xlane.xlu0 %71 }
  0xa1   :  { %v80_v38 = vrot.slane %v72_v37, %v79_v36 }
  0xa3   :  { %v82_v39 = vsub.f32 %v9_v0, %v80_v38  ;;  %v83_v40 = vsub.f32 %v10_v1, %v80_v38 }
  0xa5   :  { %v84_v41 = vmul.f32 1.442695, %v82_v39  ;;  %v86_v42 = vmul.f32 1.442695, %v83_v40 }
  0xa7   :  { %182 = vpow2.f32 %v84_v41 }
  0xa8   :  { %184 = vpow2.f32 %v86_v42 }
  0xb1   :  { %v183_v43 = vpop.eup %182 }
  0xb2   :  { %v185_v44 = vpop.eup %184  ;;  %v90_v45 = vcombine.high %v183_v43, %v183_v43  ;;  %v97_v46 = vrot.slane %v183_v43, %v19_v9 }
  0xb3   :  { %v107_v49 = vcombine.high %v185_v44, %v185_v44  ;;  %v114_v51 = vrot.slane %v185_v44, %v19_v9 }
  0xb4   :  { %v104_v47 = vrot.slane %v90_v45, %v19_v9  ;;  %v105_v48 = vcombine.high %v97_v46, %v97_v46  ;;  %v132_v52 = vsel %vm55_vm0, %v97_v46, 0.0 }
  0xb5   :  { %v121_v57 = vrot.slane %v107_v49, %v19_v9  ;;  %v122_v58 = vcombine.high %v114_v51, %v114_v51  ;;  %v139_v61 = vsel %vm55_vm0, %v114_v51, 0.0 }
  0xb6   :  { %v106_v50 = vcombine.high %v104_v47, %v104_v47  ;;  %v133_v53 = vsel %vm55_vm0, %v105_v48, 0.0  ;;  %v135_v55 = vsel %vm55_vm0, %v104_v47, 0.0 }
  0xb7   :  { %v134_v54 = vadd.f32 %v133_v53, %v132_v52  ;;  %v123_v63 = vcombine.high %v121_v57, %v121_v57  ;;  %v141_v0 = vsel %vm55_vm0, %v122_v58, 0.0  ;;  %v143_v2 = vsel %vm55_vm0, %v121_v57, 0.0 }
  0xb8   :  { %v137_v59 = vsel %vm55_vm0, %v106_v50, 0.0 }
  0xb9   :  { %v136_v56 = vadd.f32 %v135_v55, %v134_v54  ;;  %v145_v4 = vsel %vm55_vm0, %v123_v63, 0.0 }
  0xbb   :  { %v138_v60 = vadd.f32 %v137_v59, %v136_v56 }
  0xbd   :  { %v140_v62 = vadd.f32 %v139_v61, %v138_v60 }
  0xbf   :  { %v142_v1 = vadd.f32 %v141_v0, %v140_v62 }
  0xc1   :  { %v144_v3 = vadd.f32 %v143_v2, %v142_v1 }
  0xc3   :  { %v146_v5 = vadd.f32 %v145_v4, %v144_v3 }
  0xc5   :  { %147 = vadd.xlane.f32.xlu0 %v146_v5 }
 0x152   :  { %v148_v6 = vpop.xlane.xlu0 %147 }
 0x153   :  { %v156_v7 = vrot.slane %v148_v6, %v79_v36 }
 0x155   :  { %186 = vrcp.f32 %v156_v7 }
 0x15f   :  { %v187_v8 = vpop.eup %186 }
 0x160   :  { %v159_v9 = vmul.f32 %v187_v8, %v183_v43  ;;  %v160_v10 = vmul.f32 %v187_v8, %v185_v44 }
 0x162   :  { %161 = vst [vmem:[#allocation2] sm:$0xff] %v159_v9  ;;  %162 = vst [vmem:[#allocation2 + $0x8] sm:$0xff] %v160_v10 }
 0x163   :  { %199 = shalt.err (!%p196_p4)
}
 0x164   :  { %s200_s14 = scalar_lea.hbm %s260_s1, 256 }
 0x165   :  { %p201_p5 = scmp.ne.s32.totalorder %s260_s1, %s200_s14  ;;  %p204_p6 = scmp.lt.u32.totalorder %s200_s14, %s260_s1 }
 0x167   :  { %p206_p7 = pnand %p204_p6, %p201_p5 }
 0x169   :  { %209 = shalt.err (!%p206_p7)
}
 0x16a   :  { %172 = dma.vmem_to_hbm [thread:$0]  %s170_s10, 256, %s260_s1, [#allocation3]  }
 0x16b   :  { %210 = dma.done.wait [#allocation3], 256  }
 0x16c   :  { %211 = vsyncadd [#allocation3], 4294967040 }
 0x16d   :  { %176 = vsyncpa [#allocation3], 1 }

// kernel: classifier_forward.2
= control target key start
LH: loop header
LB: loop body
LE: loop exit
PB: predicated region body
PF: predicated region fallthrough
CT: control target
= control target key end

     0   :  { %s4728_s15 = smov 0   ;;  %s4730_s16 = smov 0   ;;  %s7570_s0 = inlined_call_operand.vmem [shape: f32[2,1024,64], index: 0, kind: input, shape index: {}]   ;;  %s7571_s1 = inlined_call_operand.vmem [shape: s8[1024,1024], index: 1, kind: input, shape index: {}]   ;;  %s7572_s2 = inlined_call_operand.vmem [shape: f32[1,1024], index: 2, kind: input, shape index: {}]   ;;  %s7573_s3 = inlined_call_operand.vmem [shape: f32[1,1024], index: 3, kind: input, shape index: {}]   ;;  %s7574_s4 = inlined_call_operand.vmem [shape: f32[2,1024], index: 4, kind: output, shape index: {}]  }
   0x1   :  { %s4732_s17 = smov 0   ;;  %s4734_s18 = smov 0  }
   0x2   :  { %s4736_s19 = smov 0  }
   0x3 LB: > { %s23_s20 = sadd.s32 1, %s4696_s18  ;;  %p66_p1 = scmp.ne.s32.totalorder %s4688_s16, %s4684_s15  ;;  %s4700_s19 = sphi %s4736_s19, %s14_s19   ;;  %s4696_s18 = sphi %s4734_s18, %s7678_s18   ;;  %s4692_s17 = sphi %s4732_s17, %s7677_s17   ;;  %s4688_s16 = sphi %s4730_s16, %s7676_s16   ;;  %s4684_s15 = sphi %s4728_s15, %s7675_s15  }
   0x4   : > { %p24_p0 = scmp.ge.s32.totalorder %s23_s20, 2  ;;  %p67_p2 = scmp.eq.s32.totalorder %s4700_s19, 0 }
   0x5   : > { %s59_s22 = sadd.s32 1, %s4688_s16  ;;  %p4584_p5 = scmp.ge.s32.totalorder %s4700_s19, 2 }
   0x6   : > { %s7680_s20 = smov (%p24_p0, %s23_s20), 0  ;;  %p68_p3 = por %p67_p2, %p66_p1 }
   0x7   : > { %s56_s21 = ssub.s32 %s4696_s18, %s7680_s20  ;;  %182 = sbr.rel (%p4584_p5) target bundleno = 82 (0x52), region = 20 }
   0x8   : > { %p57_p4 = scmp.eq.s32.totalorder %s56_s21, 0 }
   0xa   : > { %s4763_s23 = scalar_select %p57_p4, %s4688_s16, %s59_s22  }
   0xe   : > { %185 = sbr.rel (!%p68_p3) target bundleno = 82 (0x52), region = 24  ;;  %s187_s24 = sand.u32 (%p68_p3), 1, %s4688_s16  }
   0xf   : > { %s4596_s25 = sshll.u32 (%p68_p3), %s4696_s18, 5  ;;  %s4585_s26 = sshll.u32 (%p68_p3), %s187_s24, 10 }
  0x10   : > { %s4771_s29 = scalar_lea.vmem (%p68_p3), %s7571_s1, %s4596_s25  ;;  %s4776_s30 = scalar_lea.vmem (%p68_p3), [#allocation2], %s4585_s26 }
  0x11   : > { %v205_v0 = vld [vmem:[%s4771_s29] sm:$0xff] (%p68_p3)  ;;  %v207_v1 = vld [vmem:[%s4771_s29 + $0x8] sm:$0xff] (%p68_p3)  ;;  %v209_v2 = vld [vmem:[%s4771_s29 + $0x10] sm:$0xff] (%p68_p3) }
  0x12   : > { %206 = vst [vmem:[%s4776_s30] sm:$0xff] (%p68_p3), %v205_v0  ;;  %208 = vst [vmem:[%s4776_s30 + $0x8] sm:$0xff] (%p68_p3), %v207_v1  ;;  %v211_v3 = vld [vmem:[%s4771_s29 + $0x18] sm:$0xff] (%p68_p3)  ;;  %v213_v4 = vld [vmem:[%s4771_s29 + $0x40] sm:$0xff] (%p68_p3) }
  0x13   : > { %210 = vst [vmem:[%s4776_s30 + $0x10] sm:$0xff] (%p68_p3), %v209_v2  ;;  %v215_v5 = vld [vmem:[%s4771_s29 + $0x48] sm:$0xff] (%p68_p3)  ;;  %212 = vst [vmem:[%s4776_s30 + $0x18] sm:$0xff] (%p68_p3), %v211_v3  ;;  %v217_v6 = vld [vmem:[%s4771_s29 + $0x50] sm:$0xff] (%p68_p3) }
  0x14   : > { %214 = vst [vmem:[%s4776_s30 + $0x20] sm:$0xff] (%p68_p3), %v213_v4  ;;  %216 = vst [vmem:[%s4776_s30 + $0x28] sm:$0xff] (%p68_p3), %v215_v5  ;;  %v219_v7 = vld [vmem:[%s4771_s29 + $0x58] sm:$0xff] (%p68_p3)  ;;  %v221_v8 = vld [vmem:[%s4771_s29 + $0x80] sm:$0xff] (%p68_p3) }
  0x15   : > { %218 = vst [vmem:[%s4776_s30 + $0x30] sm:$0xff] %v217_v6  ;;  %220 = vst [vmem:[%s4776_s30 + $0x38] sm:$0xff] %v219_v7  ;;  %v223_v9 = vld [vmem:[%s4771_s29 + $0x88] sm:$0xff]  ;;  %v225_v10 = vld [vmem:[%s4771_s29 + $0x90] sm:$0xff] }
  0x16   : > { %222 = vst [vmem:[%s4776_s30 + $0x40] sm:$0xff] %v221_v8  ;;  %v227_v11 = vld [vmem:[%s4771_s29 + $0x98] sm:$0xff]  ;;  %224 = vst [vmem:[%s4776_s30 + $0x48] sm:$0xff] %v223_v9  ;;  %v229_v12 = vld [vmem:[%s4771_s29 + $0xc0] sm:$0xff] }
  0x17   : > { %226 = vst [vmem:[%s4776_s30 + $0x50] sm:$0xff] %v225_v10  ;;  %228 = vst [vmem:[%s4776_s30 + $0x58] sm:$0xff] %v227_v11  ;;  %v231_v13 = vld [vmem:[%s4771_s29 + $0xc8] sm:$0xff]  ;;  %v233_v14 = vld [vmem:[%s4771_s29 + $0xd0] sm:$0xff] }
  0x18   : > { %230 = vst [vmem:[%s4776_s30 + $0x60] sm:$0xff] %v229_v12  ;;  %232 = vst [vmem:[%s4776_s30 + $0x68] sm:$0xff] %v231_v13  ;;  %v235_v15 = vld [vmem:[%s4771_s29 + $0xd8] sm:$0xff]  ;;  %v237_v16 = vld [vmem:[%s4771_s29 + $0x100] sm:$0xff] }
  0x19   : > { %234 = vst [vmem:[%s4776_s30 + $0x70] sm:$0xff] %v233_v14  ;;  %v239_v17 = vld [vmem:[%s4771_s29 + $0x108] sm:$0xff]  ;;  %236 = vst [vmem:[%s4776_s30 + $0x78] sm:$0xff] %v235_v15  ;;  %v241_v18 = vld [vmem:[%s4771_s29 + $0x110] sm:$0xff] }
  0x1a   : > { %238 = vst [vmem:[%s4776_s30 + $0x80] sm:$0xff] %v237_v16  ;;  %240 = vst [vmem:[%s4776_s30 + $0x88] sm:$0xff] %v239_v17  ;;  %v243_v19 = vld [vmem:[%s4771_s29 + $0x118] sm:$0xff]  ;;  %v245_v20 = vld [vmem:[%s4771_s29 + $0x140] sm:$0xff] }
  0x1b   : > { %242 = vst [vmem:[%s4776_s30 + $0x90] sm:$0xff] %v241_v18  ;;  %244 = vst [vmem:[%s4776_s30 + $0x98] sm:$0xff] %v243_v19  ;;  %v247_v21 = vld [vmem:[%s4771_s29 + $0x148] sm:$0xff]  ;;  %v249_v22 = vld [vmem:[%s4771_s29 + $0x150] sm:$0xff] }
  0x1c   : > { %246 = vst [vmem:[%s4776_s30 + $0xa0] sm:$0xff] %v245_v20  ;;  %v251_v23 = vld [vmem:[%s4771_s29 + $0x158] sm:$0xff]  ;;  %248 = vst [vmem:[%s4776_s30 + $0xa8] sm:$0xff] %v247_v21  ;;  %v253_v24 = vld [vmem:[%s4771_s29 + $0x180] sm:$0xff] }
  0x1d   : > { %250 = vst [vmem:[%s4776_s30 + $0xb0] sm:$0xff] %v249_v22  ;;  %252 = vst [vmem:[%s4776_s30 + $0xb8] sm:$0xff] %v251_v23  ;;  %v255_v25 = vld [vmem:[%s4771_s29 + $0x188] sm:$0xff]  ;;  %v257_v26 = vld [vmem:[%s4771_s29 + $0x190] sm:$0xff] }
  0x1e   : > { %254 = vst [vmem:[%s4776_s30 + $0xc0] sm:$0xff] %v253_v24  ;;  %256 = vst [vmem:[%s4776_s30 + $0xc8] sm:$0xff] %v255_v25  ;;  %v259_v27 = vld [vmem:[%s4771_s29 + $0x198] sm:$0xff]  ;;  %v261_v28 = vld [vmem:[%s4771_s29 + $0x1c0] sm:$0xff] }
  0x1f   : > { %258 = vst [vmem:[%s4776_s30 + $0xd0] sm:$0xff] %v257_v26  ;;  %v263_v29 = vld [vmem:[%s4771_s29 + $0x1c8] sm:$0xff]  ;;  %260 = vst [vmem:[%s4776_s30 + $0xd8] sm:$0xff] %v259_v27  ;;  %v265_v30 = vld [vmem:[%s4771_s29 + $0x1d0] sm:$0xff] }
  0x20   : > { %262 = vst [vmem:[%s4776_s30 + $0xe0] sm:$0xff] %v261_v28  ;;  %264 = vst [vmem:[%s4776_s30 + $0xe8] sm:$0xff] %v263_v29  ;;  %v267_v31 = vld [vmem:[%s4771_s29 + $0x1d8] sm:$0xff]  ;;  %v269_v32 = vld [vmem:[%s4771_s29 + $0x200] sm:$0xff] }
  0x21   : > { %266 = vst [vmem:[%s4776_s30 + $0xf0] sm:$0xff] %v265_v30  ;;  %268 = vst [vmem:[%s4776_s30 + $0xf8] sm:$0xff] %v267_v31  ;;  %v271_v33 = vld [vmem:[%s4771_s29 + $0x208] sm:$0xff]  ;;  %v273_v34 = vld [vmem:[%s4771_s29 + $0x210] sm:$0xff] }
  0x22   : > { %270 = vst [vmem:[%s4776_s30 + $0x100] sm:$0xff] %v269_v32  ;;  %v275_v35 = vld [vmem:[%s4771_s29 + $0x218] sm:$0xff]  ;;  %272 = vst [vmem:[%s4776_s30 + $0x108] sm:$0xff] %v271_v33  ;;  %v277_v36 = vld [vmem:[%s4771_s29 + $0x240] sm:$0xff] }
  0x23   : > { %274 = vst [vmem:[%s4776_s30 + $0x110] sm:$0xff] %v273_v34  ;;  %276 = vst [vmem:[%s4776_s30 + $0x118] sm:$0xff] %v275_v35  ;;  %v279_v37 = vld [vmem:[%s4771_s29 + $0x248] sm:$0xff]  ;;  %v281_v38 = vld [vmem:[%s4771_s29 + $0x250] sm:$0xff] }
  0x24   : > { %278 = vst [vmem:[%s4776_s30 + $0x120] sm:$0xff] %v277_v36  ;;  %280 = vst [vmem:[%s4776_s30 + $0x128] sm:$0xff] %v279_v37  ;;  %v283_v39 = vld [vmem:[%s4771_s29 + $0x258] sm:$0xff]  ;;  %v285_v40 = vld [vmem:[%s4771_s29 + $0x280] sm:$0xff] }
  0x25   : > { %282 = vst [vmem:[%s4776_s30 + $0x130] sm:$0xff] %v281_v38  ;;  %v287_v41 = vld [vmem:[%s4771_s29 + $0x288] sm:$0xff]  ;;  %284 = vst [vmem:[%s4776_s30 + $0x138] sm:$0xff] %v283_v39  ;;  %v289_v42 = vld [vmem:[%s4771_s29 + $0x290] sm:$0xff] }
  0x26   : > { %286 = vst [vmem:[%s4776_s30 + $0x140] sm:$0xff] %v285_v40  ;;  %288 = vst [vmem:[%s4776_s30 + $0x148] sm:$0xff] %v287_v41  ;;  %v291_v43 = vld [vmem:[%s4771_s29 + $0x298] sm:$0xff]  ;;  %v293_v44 = vld [vmem:[%s4771_s29 + $0x2c0] sm:$0xff] }
  0x27   : > { %290 = vst [vmem:[%s4776_s30 + $0x150] sm:$0xff] %v289_v42  ;;  %292 = vst [vmem:[%s4776_s30 + $0x158] sm:$0xff] %v291_v43  ;;  %v295_v45 = vld [vmem:[%s4771_s29 + $0x2c8] sm:$0xff]  ;;  %v297_v46 = vld [vmem:[%s4771_s29 + $0x2d0] sm:$0xff] }
  0x28   : > { %294 = vst [vmem:[%s4776_s30 + $0x160] sm:$0xff] %v293_v44  ;;  %v299_v47 = vld [vmem:[%s4771_s29 + $0x2d8] sm:$0xff]  ;;  %296 = vst [vmem:[%s4776_s30 + $0x168] sm:$0xff] %v295_v45  ;;  %v301_v48 = vld [vmem:[%s4771_s29 + $0x300] sm:$0xff] }
  0x29   : > { %298 = vst [vmem:[%s4776_s30 + $0x170] sm:$0xff] %v297_v46  ;;  %300 = vst [vmem:[%s4776_s30 + $0x178] sm:$0xff] %v299_v47  ;;  %v303_v49 = vld [vmem:[%s4771_s29 + $0x308] sm:$0xff]  ;;  %v305_v50 = vld [vmem:[%s4771_s29 + $0x310] sm:$0xff] }
  0x2a   : > { %302 = vst [vmem:[%s4776_s30 + $0x180] sm:$0xff] %v301_v48  ;;  %304 = vst [vmem:[%s4776_s30 + $0x188] sm:$0xff] %v303_v49  ;;  %v307_v51 = vld [vmem:[%s4771_s29 + $0x318] sm:$0xff]  ;;  %v309_v52 = vld [vmem:[%s4771_s29 + $0x340] sm:$0xff] }
  0x2b   : > { %306 = vst [vmem:[%s4776_s30 + $0x190] sm:$0xff] %v305_v50  ;;  %v311_v53 = vld [vmem:[%s4771_s29 + $0x348] sm:$0xff]  ;;  %308 = vst [vmem:[%s4776_s30 + $0x198] sm:$0xff] %v307_v51  ;;  %v313_v54 = vld [vmem:[%s4771_s29 + $0x350] sm:$0xff] }
  0x2c   : > { %310 = vst [vmem:[%s4776_s30 + $0x1a0] sm:$0xff] %v309_v52  ;;  %312 = vst [vmem:[%s4776_s30 + $0x1a8] sm:$0xff] %v311_v53  ;;  %v315_v55 = vld [vmem:[%s4771_s29 + $0x358] sm:$0xff]  ;;  %v317_v56 = vld [vmem:[%s4771_s29 + $0x380] sm:$0xff] }
  0x2d   : > { %314 = vst [vmem:[%s4776_s30 + $0x1b0] sm:$0xff] %v313_v54  ;;  %316 = vst [vmem:[%s4776_s30 + $0x1b8] sm:$0xff] %v315_v55  ;;  %v319_v57 = vld [vmem:[%s4771_s29 + $0x388] sm:$0xff]  ;;  %v321_v58 = vld [vmem:[%s4771_s29 + $0x390] sm:$0xff] }
  0x2e   : > { %318 = vst [vmem:[%s4776_s30 + $0x1c0] sm:$0xff] %v317_v56  ;;  %v323_v59 = vld [vmem:[%s4771_s29 + $0x398] sm:$0xff]  ;;  %320 = vst [vmem:[%s4776_s30 + $0x1c8] sm:$0xff] %v319_v57  ;;  %v325_v60 = vld [vmem:[%s4771_s29 + $0x3c0] sm:$0xff] }
  0x2f   : > { %322 = vst [vmem:[%s4776_s30 + $0x1d0] sm:$0xff] %v321_v58  ;;  %324 = vst [vmem:[%s4776_s30 + $0x1d8] sm:$0xff] %v323_v59  ;;  %v327_v61 = vld [vmem:[%s4771_s29 + $0x3c8] sm:$0xff]  ;;  %v329_v62 = vld [vmem:[%s4771_s29 + $0x3d0] sm:$0xff] }
  0x30   : > { %326 = vst [vmem:[%s4776_s30 + $0x1e0] sm:$0xff] %v325_v60  ;;  %328 = vst [vmem:[%s4776_s30 + $0x1e8] sm:$0xff] %v327_v61  ;;  %v331_v63 = vld [vmem:[%s4771_s29 + $0x3d8] sm:$0xff]  ;;  %v333_v0 = vld [vmem:[%s4771_s29 + $0x400] sm:$0xff] }
  0x31   : > { %330 = vst [vmem:[%s4776_s30 + $0x1f0] sm:$0xff] %v329_v62  ;;  %v335_v1 = vld [vmem:[%s4771_s29 + $0x408] sm:$0xff]  ;;  %332 = vst [vmem:[%s4776_s30 + $0x1f8] sm:$0xff] %v331_v63  ;;  %v337_v2 = vld [vmem:[%s4771_s29 + $0x410] sm:$0xff] }
  0x32   : > { %334 = vst [vmem:[%s4776_s30 + $0x200] sm:$0xff] %v333_v0  ;;  %336 = vst [vmem:[%s4776_s30 + $0x208] sm:$0xff] %v335_v1  ;;  %v339_v3 = vld [vmem:[%s4771_s29 + $0x418] sm:$0xff]  ;;  %v341_v4 = vld [vmem:[%s4771_s29 + $0x440] sm:$0xff] }
  0x33   : > { %338 = vst [vmem:[%s4776_s30 + $0x210] sm:$0xff] %v337_v2  ;;  %340 = vst [vmem:[%s4776_s30 + $0x218] sm:$0xff] %v339_v3  ;;  %v343_v5 = vld [vmem:[%s4771_s29 + $0x448] sm:$0xff]  ;;  %v345_v6 = vld [vmem:[%s4771_s29 + $0x450] sm:$0xff] }
  0x34   : > { %342 = vst [vmem:[%s4776_s30 + $0x220] sm:$0xff] %v341_v4  ;;  %v347_v7 = vld [vmem:[%s4771_s29 + $0x458] sm:$0xff]  ;;  %344 = vst [vmem:[%s4776_s30 + $0x228] sm:$0xff] %v343_v5  ;;  %v349_v8 = vld [vmem:[%s4771_s29 + $0x480] sm:$0xff] }
  0x35   : > { %346 = vst [vmem:[%s4776_s30 + $0x230] sm:$0xff] %v345_v6  ;;  %348 = vst [vmem:[%s4776_s30 + $0x238] sm:$0xff] %v347_v7  ;;  %v351_v9 = vld [vmem:[%s4771_s29 + $0x488] sm:$0xff]  ;;  %v353_v10 = vld [vmem:[%s4771_s29 + $0x490] sm:$0xff] }
  0x36   : > { %350 = vst [vmem:[%s4776_s30 + $0x240] sm:$0xff] %v349_v8  ;;  %352 = vst [vmem:[%s4776_s30 + $0x248] sm:$0xff] %v351_v9  ;;  %v355_v11 = vld [vmem:[%s4771_s29 + $0x498] sm:$0xff]  ;;  %v357_v12 = vld [vmem:[%s4771_s29 + $0x4c0] sm:$0xff] }
  0x37   : > { %354 = vst [vmem:[%s4776_s30 + $0x250] sm:$0xff] %v353_v10  ;;  %v359_v13 = vld [vmem:[%s4771_s29 + $0x4c8] sm:$0xff]  ;;  %356 = vst [vmem:[%s4776_s30 + $0x258] sm:$0xff] %v355_v11  ;;  %v361_v14 = vld [vmem:[%s4771_s29 + $0x4d0] sm:$0xff] }
  0x38   : > { %358 = vst [vmem:[%s4776_s30 + $0x260] sm:$0xff] %v357_v12  ;;  %360 = vst [vmem:[%s4776_s30 + $0x268] sm:$0xff] %v359_v13  ;;  %v363_v15 = vld [vmem:[%s4771_s29 + $0x4d8] sm:$0xff]  ;;  %v365_v16 = vld [vmem:[%s4771_s29 + $0x500] sm:$0xff] }
  0x39   : > { %362 = vst [vmem:[%s4776_s30 + $0x270] sm:$0xff] %v361_v14  ;;  %364 = vst [vmem:[%s4776_s30 + $0x278] sm:$0xff] %v363_v15  ;;  %v367_v17 = vld [vmem:[%s4771_s29 + $0x508] sm:$0xff]  ;;  %v369_v18 = vld [vmem:[%s4771_s29 + $0x510] sm:$0xff] }
  0x3a   : > { %366 = vst [vmem:[%s4776_s30 + $0x280] sm:$0xff] %v365_v16  ;;  %v371_v19 = vld [vmem:[%s4771_s29 + $0x518] sm:$0xff]  ;;  %368 = vst [vmem:[%s4776_s30 + $0x288] sm:$0xff] %v367_v17  ;;  %v373_v20 = vld [vmem:[%s4771_s29 + $0x540] sm:$0xff] }
  0x3b   : > { %370 = vst [vmem:[%s4776_s30 + $0x290] sm:$0xff] %v369_v18  ;;  %372 = vst [vmem:[%s4776_s30 + $0x298] sm:$0xff] %v371_v19  ;;  %v375_v21 = vld [vmem:[%s4771_s29 + $0x548] sm:$0xff]  ;;  %v377_v22 = vld [vmem:[%s4771_s29 + $0x550] sm:$0xff] }
  0x3c   : > { %374 = vst [vmem:[%s4776_s30 + $0x2a0] sm:$0xff] %v373_v20  ;;  %376 = vst [vmem:[%s4776_s30 + $0x2a8] sm:$0xff] %v375_v21  ;;  %v379_v23 = vld [vmem:[%s4771_s29 + $0x558] sm:$0xff]  ;;  %v381_v24 = vld [vmem:[%s4771_s29 + $0x580] sm:$0xff] }
  0x3d   : > { %378 = vst [vmem:[%s4776_s30 + $0x2b0] sm:$0xff] %v377_v22  ;;  %v383_v25 = vld [vmem:[%s4771_s29 + $0x588] sm:$0xff]  ;;  %380 = vst [vmem:[%s4776_s30 + $0x2b8] sm:$0xff] %v379_v23  ;;  %v385_v26 = vld [vmem:[%s4771_s29 + $0x590] sm:$0xff] }
  0x3e   : > { %382 = vst [vmem:[%s4776_s30 + $0x2c0] sm:$0xff] %v381_v24  ;;  %384 = vst [vmem:[%s4776_s30 + $0x2c8] sm:$0xff] %v383_v25  ;;  %v387_v27 = vld [vmem:[%s4771_s29 + $0x598] sm:$0xff]  ;;  %v389_v28 = vld [vmem:[%s4771_s29 + $0x5c0] sm:$0xff] }
  0x3f   : > { %386 = vst [vmem:[%s4776_s30 + $0x2d0] sm:$0xff] %v385_v26  ;;  %388 = vst [vmem:[%s4776_s30 + $0x2d8] sm:$0xff] %v387_v27  ;;  %v391_v29 = vld [vmem:[%s4771_s29 + $0x5c8] sm:$0xff]  ;;  %v393_v30 = vld [vmem:[%s4771_s29 + $0x5d0] sm:$0xff] }
  0x40   : > { %390 = vst [vmem:[%s4776_s30 + $0x2e0] sm:$0xff] %v389_v28  ;;  %v395_v31 = vld [vmem:[%s4771_s29 + $0x5d8] sm:$0xff]  ;;  %392 = vst [vmem:[%s4776_s30 + $0x2e8] sm:$0xff] %v391_v29  ;;  %v397_v32 = vld [vmem:[%s4771_s29 + $0x600] sm:$0xff] }
  0x41   : > { %394 = vst [vmem:[%s4776_s30 + $0x2f0] sm:$0xff] %v393_v30  ;;  %396 = vst [vmem:[%s4776_s30 + $0x2f8] sm:$0xff] %v395_v31  ;;  %v399_v33 = vld [vmem:[%s4771_s29 + $0x608] sm:$0xff]  ;;  %v401_v34 = vld [vmem:[%s4771_s29 + $0x610] sm:$0xff] }
  0x42   : > { %398 = vst [vmem:[%s4776_s30 + $0x300] sm:$0xff] %v397_v32  ;;  %400 = vst [vmem:[%s4776_s30 + $0x308] sm:$0xff] %v399_v33  ;;  %v403_v35 = vld [vmem:[%s4771_s29 + $0x618] sm:$0xff]  ;;  %v405_v36 = vld [vmem:[%s4771_s29 + $0x640] sm:$0xff] }
  0x43   : > { %402 = vst [vmem:[%s4776_s30 + $0x310] sm:$0xff] %v401_v34  ;;  %v407_v37 = vld [vmem:[%s4771_s29 + $0x648] sm:$0xff]  ;;  %404 = vst [vmem:[%s4776_s30 + $0x318] sm:$0xff] %v403_v35  ;;  %v409_v38 = vld [vmem:[%s4771_s29 + $0x650] sm:$0xff] }
  0x44   : > { %406 = vst [vmem:[%s4776_s30 + $0x320] sm:$0xff] %v405_v36  ;;  %408 = vst [vmem:[%s4776_s30 + $0x328] sm:$0xff] %v407_v37  ;;  %v411_v39 = vld [vmem:[%s4771_s29 + $0x658] sm:$0xff]  ;;  %v413_v40 = vld [vmem:[%s4771_s29 + $0x680] sm:$0xff] }
  0x45   : > { %410 = vst [vmem:[%s4776_s30 + $0x330] sm:$0xff] %v409_v38  ;;  %412 = vst [vmem:[%s4776_s30 + $0x338] sm:$0xff] %v411_v39  ;;  %v415_v41 = vld [vmem:[%s4771_s29 + $0x688] sm:$0xff]  ;;  %v417_v42 = vld [vmem:[%s4771_s29 + $0x690] sm:$0xff] }
  0x46   : > { %414 = vst [vmem:[%s4776_s30 + $0x340] sm:$0xff] %v413_v40  ;;  %v419_v43 = vld [vmem:[%s4771_s29 + $0x698] sm:$0xff]  ;;  %416 = vst [vmem:[%s4776_s30 + $0x348] sm:$0xff] %v415_v41  ;;  %v421_v44 = vld [vmem:[%s4771_s29 + $0x6c0] sm:$0xff] }
  0x47   : > { %418 = vst [vmem:[%s4776_s30 + $0x350] sm:$0xff] %v417_v42  ;;  %420 = vst [vmem:[%s4776_s30 + $0x358] sm:$0xff] %v419_v43  ;;  %v423_v45 = vld [vmem:[%s4771_s29 + $0x6c8] sm:$0xff]  ;;  %v425_v46 = vld [vmem:[%s4771_s29 + $0x6d0] sm:$0xff] }
  0x48   : > { %422 = vst [vmem:[%s4776_s30 + $0x360] sm:$0xff] %v421_v44  ;;  %424 = vst [vmem:[%s4776_s30 + $0x368] sm:$0xff] %v423_v45  ;;  %v427_v47 = vld [vmem:[%s4771_s29 + $0x6d8] sm:$0xff]  ;;  %v429_v48 = vld [vmem:[%s4771_s29 + $0x700] sm:$0xff] }
  0x49   : > { %426 = vst [vmem:[%s4776_s30 + $0x370] sm:$0xff] %v425_v46  ;;  %v431_v49 = vld [vmem:[%s4771_s29 + $0x708] sm:$0xff]  ;;  %428 = vst [vmem:[%s4776_s30 + $0x378] sm:$0xff] %v427_v47  ;;  %v433_v50 = vld [vmem:[%s4771_s29 + $0x710] sm:$0xff] }
  0x4a   : > { %430 = vst [vmem:[%s4776_s30 + $0x380] sm:$0xff] %v429_v48  ;;  %432 = vst [vmem:[%s4776_s30 + $0x388] sm:$0xff] %v431_v49  ;;  %v435_v51 = vld [vmem:[%s4771_s29 + $0x718] sm:$0xff]  ;;  %v437_v52 = vld [vmem:[%s4771_s29 + $0x740] sm:$0xff] }
  0x4b   : > { %434 = vst [vmem:[%s4776_s30 + $0x390] sm:$0xff] %v433_v50  ;;  %436 = vst [vmem:[%s4776_s30 + $0x398] sm:$0xff] %v435_v51  ;;  %v439_v53 = vld [vmem:[%s4771_s29 + $0x748] sm:$0xff]  ;;  %v441_v54 = vld [vmem:[%s4771_s29 + $0x750] sm:$0xff] }
  0x4c   : > { %438 = vst [vmem:[%s4776_s30 + $0x3a0] sm:$0xff] %v437_v52  ;;  %v443_v55 = vld [vmem:[%s4771_s29 + $0x758] sm:$0xff]  ;;  %440 = vst [vmem:[%s4776_s30 + $0x3a8] sm:$0xff] %v439_v53  ;;  %v445_v56 = vld [vmem:[%s4771_s29 + $0x780] sm:$0xff] }
  0x4d   : > { %442 = vst [vmem:[%s4776_s30 + $0x3b0] sm:$0xff] %v441_v54  ;;  %444 = vst [vmem:[%s4776_s30 + $0x3b8] sm:$0xff] %v443_v55  ;;  %v447_v57 = vld [vmem:[%s4771_s29 + $0x788] sm:$0xff]  ;;  %v449_v58 = vld [vmem:[%s4771_s29 + $0x790] sm:$0xff] }
  0x4e   : > { %446 = vst [vmem:[%s4776_s30 + $0x3c0] sm:$0xff] %v445_v56  ;;  %448 = vst [vmem:[%s4776_s30 + $0x3c8] sm:$0xff] %v447_v57  ;;  %v451_v59 = vld [vmem:[%s4771_s29 + $0x798] sm:$0xff]  ;;  %v453_v60 = vld [vmem:[%s4771_s29 + $0x7c0] sm:$0xff] }
  0x4f   : > { %450 = vst [vmem:[%s4776_s30 + $0x3d0] sm:$0xff] %v449_v58  ;;  %v455_v61 = vld [vmem:[%s4771_s29 + $0x7c8] sm:$0xff]  ;;  %452 = vst [vmem:[%s4776_s30 + $0x3d8] sm:$0xff] %v451_v59  ;;  %v457_v62 = vld [vmem:[%s4771_s29 + $0x7d0] sm:$0xff] }
  0x50   : > { %454 = vst [vmem:[%s4776_s30 + $0x3e0] sm:$0xff] %v453_v60  ;;  %456 = vst [vmem:[%s4776_s30 + $0x3e8] sm:$0xff] %v455_v61  ;;  %v459_v63 = vld [vmem:[%s4771_s29 + $0x7d8] sm:$0xff] }
  0x51   : > { %458 = vst [vmem:[%s4776_s30 + $0x3f0] sm:$0xff] %v457_v62  ;;  %460 = vst [vmem:[%s4776_s30 + $0x3f8] sm:$0xff] %v459_v63 }
  0x52 PF: > { %p4588_p6 = scmp.ge.s32.totalorder %s4700_s19, 1  ;;  %p481_p7 = scmp.lt.s32.totalorder %s4700_s19, 3 }
  0x54   : > { %p482_p8 = pnand %p4588_p6, %p481_p7 }
  0x56   : > { %485 = sbr.rel (%p482_p8) target bundleno = 984 (0x3d8), region = 55 }
  0x5d   : > { %v703_v0 = vld [vmem:[%s7570_s0 + $0x480] sm:$0xff]  ;;  %vm815_vm0 = vcmask 523264   ;;  %v704_v2 = vld [vmem:[%s7570_s0 + $0x488] sm:$0xff]  ;;  %v578_v12 = vld [vmem:[%s7570_s0 + $0x98] sm:$0xff]  ;;  %s488_s28 = sand.u32 1, %s4684_s15   ;;  %vm2747_vm1 = vcmask 130112  }
  0x5e   : > { %v575_v1 = vld [vmem:[%s7570_s0 + $0x80] sm:$0xff]  ;;  %v1248_v3 = vsel %vm815_vm0, %v703_v0, 0.0  ;;  %v576_v5 = vld [vmem:[%s7570_s0 + $0x88] sm:$0xff]  ;;  %v1251_v6 = vsel %vm815_vm0, %v704_v2, 0.0  ;;  %v577_v13 = vld [vmem:[%s7570_s0 + $0x90] sm:$0xff]  ;;  %v873_v14 = vsel %vm815_vm0, %v578_v12, 0.0 }
  0x5f   : > { %v864_v4 = vsel %vm815_vm0, %v575_v1, 0.0  ;;  %1249 = vadd.xlane.f32.xlu1 %v1248_v3  ;;  %v867_v7 = vsel %vm815_vm0, %v576_v5, 0.0  ;;  %v560_v8 = vld [vmem:[%s7570_s0 + $0x8] sm:$0xff]  ;;  %v559_v9 = vld [vmem:[%s7570_s0] sm:$0xff]  ;;  %v870_v15 = vsel %vm815_vm0, %v577_v13, 0.0  ;;  %v706_v20 = vld [vmem:[%s7570_s0 + $0x498] sm:$0xff] }
  0x60   : > { %865 = vadd.xlane.f32.xlu0 %v864_v4  ;;  %v819_v10 = vsel %vm815_vm0, %v560_v8, 0.0  ;;  %v816_v11 = vsel %vm815_vm0, %v559_v9, 0.0  ;;  %v688_v16 = vld [vmem:[%s7570_s0 + $0x408] sm:$0xff]  ;;  %v687_v17 = vld [vmem:[%s7570_s0 + $0x400] sm:$0xff]  ;;  %v705_v21 = vld [vmem:[%s7570_s0 + $0x490] sm:$0xff]  ;;  %v1257_v22 = vsel %vm815_vm0, %v706_v20, 0.0 }
  0x61   : > { %v1203_v18 = vsel %vm815_vm0, %v688_v16, 0.0  ;;  %v1200_v19 = vsel %vm815_vm0, %v687_v17, 0.0  ;;  %v1254_v23 = vsel %vm815_vm0, %v705_v21, 0.0  ;;  %v562_v24 = vld [vmem:[%s7570_s0 + $0x18] sm:$0xff]  ;;  %v561_v25 = vld [vmem:[%s7570_s0 + $0x10] sm:$0xff]  ;;  %v580_v32 = vld [vmem:[%s7570_s0 + $0xa8] sm:$0xff] }
  0x62   : > { %v825_v26 = vsel %vm815_vm0, %v562_v24, 0.0  ;;  %v822_v27 = vsel %vm815_vm0, %v561_v25, 0.0  ;;  %v690_v28 = vld [vmem:[%s7570_s0 + $0x418] sm:$0xff]  ;;  %v689_v29 = vld [vmem:[%s7570_s0 + $0x410] sm:$0xff]  ;;  %v579_v33 = vld [vmem:[%s7570_s0 + $0xa0] sm:$0xff]  ;;  %v879_v34 = vsel %vm815_vm0, %v580_v32, 0.0 }
  0x63   : > { %1252 = vadd.xlane.f32.xlu1 %v1251_v6  ;;  %v1209_v30 = vsel %vm815_vm0, %v690_v28, 0.0  ;;  %v1206_v31 = vsel %vm815_vm0, %v689_v29, 0.0  ;;  %v876_v35 = vsel %vm815_vm0, %v579_v33, 0.0  ;;  %v708_v36 = vld [vmem:[%s7570_s0 + $0x4a8] sm:$0xff]  ;;  %v707_v37 = vld [vmem:[%s7570_s0 + $0x4a0] sm:$0xff]  ;;  %v582_v48 = vld [vmem:[%s7570_s0 + $0xb8] sm:$0xff] }
  0x64   : > { %868 = vadd.xlane.f32.xlu0 %v867_v7  ;;  %v1263_v38 = vsel %vm815_vm0, %v708_v36, 0.0  ;;  %v1260_v39 = vsel %vm815_vm0, %v707_v37, 0.0  ;;  %v564_v40 = vld [vmem:[%s7570_s0 + $0x28] sm:$0xff]  ;;  %v563_v41 = vld [vmem:[%s7570_s0 + $0x20] sm:$0xff]  ;;  %v581_v49 = vld [vmem:[%s7570_s0 + $0xb0] sm:$0xff]  ;;  %v885_v50 = vsel %vm815_vm0, %v582_v48, 0.0 }
  0x65   : > { %v831_v42 = vsel %vm815_vm0, %v564_v40, 0.0  ;;  %v828_v43 = vsel %vm815_vm0, %v563_v41, 0.0  ;;  %v692_v44 = vld [vmem:[%s7570_s0 + $0x428] sm:$0xff]  ;;  %v691_v45 = vld [vmem:[%s7570_s0 + $0x420] sm:$0xff]  ;;  %v882_v51 = vsel %vm815_vm0, %v581_v49, 0.0  ;;  %v710_v52 = vld [vmem:[%s7570_s0 + $0x4b8] sm:$0xff] }
  0x66   : > { %v1215_v46 = vsel %vm815_vm0, %v692_v44, 0.0  ;;  %v1212_v47 = vsel %vm815_vm0, %v691_v45, 0.0  ;;  %v709_v53 = vld [vmem:[%s7570_s0 + $0x4b0] sm:$0xff]  ;;  %v1269_v54 = vsel %vm815_vm0, %v710_v52, 0.0  ;;  %v566_v56 = vld [vmem:[%s7570_s0 + $0x38] sm:$0xff]  ;;  %v584_v0 = vld [vmem:[%s7570_s0 + $0xc8] sm:$0xff] }
  0x67   : > { %820 = vadd.xlane.f32.xlu1 %v819_v10  ;;  %v1266_v55 = vsel %vm815_vm0, %v709_v53, 0.0  ;;  %v565_v57 = vld [vmem:[%s7570_s0 + $0x30] sm:$0xff]  ;;  %v837_v58 = vsel %vm815_vm0, %v566_v56, 0.0  ;;  %v694_v60 = vld [vmem:[%s7570_s0 + $0x438] sm:$0xff]  ;;  %v583_v1 = vld [vmem:[%s7570_s0 + $0xc0] sm:$0xff]  ;;  %v891_v2 = vsel %vm815_vm0, %v584_v0, 0.0 }
  0x68   : > { %817 = vadd.xlane.f32.xlu0 %v816_v11  ;;  %v834_v59 = vsel %vm815_vm0, %v565_v57, 0.0  ;;  %v693_v61 = vld [vmem:[%s7570_s0 + $0x430] sm:$0xff]  ;;  %v1221_v62 = vsel %vm815_vm0, %v694_v60, 0.0  ;;  %v888_v3 = vsel %vm815_vm0, %v583_v1, 0.0  ;;  %v712_v4 = vld [vmem:[%s7570_s0 + $0x4c8] sm:$0xff]  ;;  %v711_v5 = vld [vmem:[%s7570_s0 + $0x4c0] sm:$0xff] }
  0x69   : > { %v1218_v63 = vsel %vm815_vm0, %v693_v61, 0.0  ;;  %v1275_v6 = vsel %vm815_vm0, %v712_v4, 0.0  ;;  %v1272_v7 = vsel %vm815_vm0, %v711_v5, 0.0  ;;  %v568_v8 = vld [vmem:[%s7570_s0 + $0x48] sm:$0xff]  ;;  %v567_v9 = vld [vmem:[%s7570_s0 + $0x40] sm:$0xff]  ;;  %v586_v16 = vld [vmem:[%s7570_s0 + $0xd8] sm:$0xff] }
  0x6a   : > { %v843_v10 = vsel %vm815_vm0, %v568_v8, 0.0  ;;  %v840_v11 = vsel %vm815_vm0, %v567_v9, 0.0  ;;  %v696_v12 = vld [vmem:[%s7570_s0 + $0x448] sm:$0xff]  ;;  %v695_v13 = vld [vmem:[%s7570_s0 + $0x440] sm:$0xff]  ;;  %v585_v17 = vld [vmem:[%s7570_s0 + $0xd0] sm:$0xff]  ;;  %s4589_s29 = sshll.u32 %s488_s28, 10 }
  0x6b   : > { %874 = vadd.xlane.f32.xlu1 %v873_v14  ;;  %v1227_v14 = vsel %vm815_vm0, %v696_v12, 0.0  ;;  %v714_v20 = vld [vmem:[%s7570_s0 + $0x4d8] sm:$0xff]  ;;  %v713_v21 = vld [vmem:[%s7570_s0 + $0x4d0] sm:$0xff]  ;;  %s5221_s6 = scalar_lea.vmem [#allocation2], %s4589_s29  ;;  %v588_v40 = vld [vmem:[%s7570_s0 + $0xe8] sm:$0xff]  ;;  %vm2754_vm2 = vcmask 195712  }
  0x6c   : > { %871 = vadd.xlane.f32.xlu0 %v870_v15  ;;  %v1224_v15 = vsel %vm815_vm0, %v695_v13, 0.0  ;;  %v570_v24 = vld [vmem:[%s7570_s0 + $0x58] sm:$0xff]  ;;  %v569_v25 = vld [vmem:[%s7570_s0 + $0x50] sm:$0xff]  ;;  %v1841_v29 = vld [vmem:[%s5221_s6 + $0x8] sm:$0xff]  ;;  %vm2761_vm3 = vcmask 261312   ;;  %vm7603_vm4 = vcmask 326912  }
  0x6d   : > { %v698_v28 = vld [vmem:[%s7570_s0 + $0x458] sm:$0xff]  ;;  %v1969_v32 = vunpack.c.l.s8.bf16 %v1841_v29  ;;  %v587_v41 = vld [vmem:[%s7570_s0 + $0xe0] sm:$0xff]  ;;  %v716_v48 = vld [vmem:[%s7570_s0 + $0x4e8] sm:$0xff]  ;;  %vm7602_vm5 = vcmask 392512   ;;  %vm7600_vm6 = vcmask 458112   ;;  %vm7601_vm7 = vcmask 523712  }
  0x6e   : > { %v1845_v49 = vld [vmem:[%s5221_s6 + $0x28] sm:$0xff]  ;;  %v571_v61 = vld [vmem:[%s7570_s0 + $0x60] sm:$0xff]  ;;  %vm2796_vm8 = vcmask 589312   ;;  %vm7591_vm9 = vcmask 654912   ;;  %vm2810_vm10 = vcmask 720512   ;;  %vm2817_vm11 = vcmask 786112  }
  0x6f   : > { %1204 = vadd.xlane.f32.xlu1 %v1203_v18  ;;  %v897_v18 = vsel %vm815_vm0, %v586_v16, 0.0  ;;  %4057 = vmatprep.subr.bf16.mxu0 %v1969_v32  ;;  %v1977_v52 = vunpack.c.l.s8.bf16 %v1845_v49  ;;  %v572_v60 = vld [vmem:[%s7570_s0 + $0x68] sm:$0xff]  ;;  %v590_v16 = vld [vmem:[%s7570_s0 + $0xf8] sm:$0xff]  ;;  %vm2824_vm12 = vcmask 851712   ;;  %vm2831_vm13 = vcmask 917312  }
  0x70   : > { %1201 = vadd.xlane.f32.xlu0 %v1200_v19  ;;  %v894_v19 = vsel %vm815_vm0, %v585_v17, 0.0  ;;  %v700_v4 = vld [vmem:[%s7570_s0 + $0x468] sm:$0xff]  ;;  %v589_v17 = vld [vmem:[%s7570_s0 + $0xf0] sm:$0xff]  ;;  %vm2838_vm14 = vcmask 982912   ;;  %vm2845_vm15 = vcmask 1048512  }
  0x71   : > { %v1849_v5 = vld [vmem:[%s5221_s6 + $0x48] sm:$0xff] }
  0x72   : > { %v1985_v8 = vunpack.c.l.s8.bf16 %v1849_v5 }
  0x73   : > { %1258 = vadd.xlane.f32.xlu1 %v1257_v22  ;;  %v1281_v22 = vsel %vm815_vm0, %v714_v20, 0.0 }
  0x74   : > { %1255 = vadd.xlane.f32.xlu0 %v1254_v23  ;;  %v1278_v23 = vsel %vm815_vm0, %v713_v21, 0.0 }
  0x77   : > { %826 = vadd.xlane.f32.xlu1 %v825_v26  ;;  %v849_v26 = vsel %vm815_vm0, %v570_v24, 0.0  ;;  %v718_v24 = vld [vmem:[%s7570_s0 + $0x4f8] sm:$0xff] }
  0x78   : > { %823 = vadd.xlane.f32.xlu0 %v822_v27  ;;  %v846_v27 = vsel %vm815_vm0, %v569_v25, 0.0  ;;  %v1853_v25 = vld [vmem:[%s5221_s6 + $0x68] sm:$0xff] }
  0x7b   : > { %1210 = vadd.xlane.f32.xlu1 %v1209_v30  ;;  %v1843_v30 = vld [vmem:[%s5221_s6 + $0x18] sm:$0xff] }
  0x7c   : > { %1207 = vadd.xlane.f32.xlu0 %v1206_v31  ;;  %v697_v31 = vld [vmem:[%s7570_s0 + $0x450] sm:$0xff]  ;;  %v1971_v33 = vunpack.c.l.s8.bf16 %v1843_v30 }
  0x7e   : > { %4221 = vmatprep.subr.bf16.mxu1 %v1971_v33 }
  0x7f   : > { %880 = vadd.xlane.f32.xlu1 %v879_v34  ;;  %v1840_v34 = vld [vmem:[%s5221_s6] sm:$0xff] }
  0x80   : > { %877 = vadd.xlane.f32.xlu0 %v876_v35  ;;  %v1842_v35 = vld [vmem:[%s5221_s6 + $0x10] sm:$0xff]  ;;  %v1968_v36 = vunpack.c.l.s8.bf16 %v1840_v34  ;;  %v1972_v44 = vunpack.c.h.s8.bf16 %v1840_v34  ;;  %v1293_v34 = vsel %vm815_vm0, %v718_v24, 0.0 }
  0x81   : > { %v1970_v37 = vunpack.c.l.s8.bf16 %v1842_v35  ;;  %v1974_v45 = vunpack.c.h.s8.bf16 %v1842_v35 }
  0x82   : > { %4058 = vmatpush1.bf16.msra.mxu0 %v1968_v36  ;;  %v574_v36 = vld [vmem:[%s7570_s0 + $0x78] sm:$0xff] }
  0x83   : > { %1264 = vadd.xlane.f32.xlu1 %v1263_v38  ;;  %v1233_v38 = vsel %vm815_vm0, %v698_v28, 0.0  ;;  %4222 = vmatpush1.bf16.msra.mxu1 %v1970_v37  ;;  %v1993_v28 = vunpack.c.l.s8.bf16 %v1853_v25  ;;  %v573_v37 = vld [vmem:[%s7570_s0 + $0x70] sm:$0xff] }
  0x84   : > { %1261 = vadd.xlane.f32.xlu0 %v1260_v39  ;;  %v1230_v39 = vsel %vm815_vm0, %v697_v31, 0.0  ;;  %v1854_v31 = vld [vmem:[%s5221_s6 + $0x70] sm:$0xff] }
  0x85   : > { %v1994_v33 = vunpack.c.l.s8.bf16 %v1854_v31 }
  0x87   : > { %832 = vadd.xlane.f32.xlu1 %v831_v42  ;;  %v1973_v42 = vunpack.c.h.s8.bf16 %v1841_v29 }
  0x88   : > { %829 = vadd.xlane.f32.xlu0 %v828_v43  ;;  %v1975_v43 = vunpack.c.h.s8.bf16 %v1843_v30  ;;  %v1852_v30 = vld [vmem:[%s5221_s6 + $0x60] sm:$0xff] }
  0x89   : > { %4059 = vmatprep.subr.bf16.mxu0 %v1973_v42  ;;  %v1992_v32 = vunpack.c.l.s8.bf16 %v1852_v30  ;;  %v861_v42 = vsel %vm815_vm0, %v574_v36, 0.0  ;;  %v2736_v36 = vlaneseq }
  0x8a   : > { %4223 = vmatprep.subr.bf16.mxu1 %v1975_v43  ;;  %4060 = vmatpush1.bf16.msra.mxu0 %v1972_v44  ;;  %v858_v43 = vsel %vm815_vm0, %v573_v37, 0.0  ;;  %v702_v44 = vld [vmem:[%s7570_s0 + $0x478] sm:$0xff] }
  0x8b   : > { %1216 = vadd.xlane.f32.xlu1 %v1215_v46  ;;  %v903_v46 = vsel %vm815_vm0, %v588_v40, 0.0  ;;  %4224 = vmatpush1.bf16.msra.mxu1 %v1974_v45  ;;  %v1996_v40 = vunpack.c.h.s8.bf16 %v1852_v30  ;;  %v1857_v45 = vld [vmem:[%s5221_s6 + $0x88] sm:$0xff] }
  0x8c   : > { %1213 = vadd.xlane.f32.xlu0 %v1212_v47  ;;  %v900_v47 = vsel %vm815_vm0, %v587_v41, 0.0  ;;  %4061 = vmatprep.subr.bf16.mxu0 %v1977_v52  ;;  %v1998_v41 = vunpack.c.h.s8.bf16 %v1854_v31 }
  0x8f   : > { %886 = vadd.xlane.f32.xlu1 %v885_v50  ;;  %v1847_v50 = vld [vmem:[%s5221_s6 + $0x38] sm:$0xff] }
  0x90   : > { %883 = vadd.xlane.f32.xlu0 %v882_v51  ;;  %v715_v51 = vld [vmem:[%s7570_s0 + $0x4e0] sm:$0xff]  ;;  %v1979_v53 = vunpack.c.l.s8.bf16 %v1847_v50 }
  0x92   : > { %4225 = vmatprep.subr.bf16.mxu1 %v1979_v53 }
  0x93   : > { %1270 = vadd.xlane.f32.xlu1 %v1269_v54  ;;  %v1844_v54 = vld [vmem:[%s5221_s6 + $0x20] sm:$0xff] }
  0x94   : > { %1267 = vadd.xlane.f32.xlu0 %v1266_v55  ;;  %v1846_v55 = vld [vmem:[%s5221_s6 + $0x30] sm:$0xff]  ;;  %v1976_v56 = vunpack.c.l.s8.bf16 %v1844_v54  ;;  %v1980_v0 = vunpack.c.h.s8.bf16 %v1844_v54  ;;  %v1245_v54 = vsel %vm815_vm0, %v702_v44, 0.0  ;;  %v738_v44 = vld [vmem:[%s7570_s0 + $0x598] sm:$0xff] }
  0x95   : > { %v1978_v57 = vunpack.c.l.s8.bf16 %v1846_v55  ;;  %v1982_v1 = vunpack.c.h.s8.bf16 %v1846_v55 }
  0x96   : > { %4062 = vmatpush1.bf16.msra.mxu0 %v1976_v56  ;;  %v608_v56 = vld [vmem:[%s7570_s0 + $0x188] sm:$0xff] }
  0x97   : > { %838 = vadd.xlane.f32.xlu1 %v837_v58  ;;  %v1287_v58 = vsel %vm815_vm0, %v716_v48, 0.0  ;;  %4226 = vmatpush1.bf16.msra.mxu1 %v1978_v57  ;;  %v2001_v48 = vunpack.c.l.s8.bf16 %v1857_v45  ;;  %v607_v57 = vld [vmem:[%s7570_s0 + $0x180] sm:$0xff] }
  0x98   : > { %835 = vadd.xlane.f32.xlu0 %v834_v59  ;;  %v1284_v59 = vsel %vm815_vm0, %v715_v51, 0.0  ;;  %v1858_v51 = vld [vmem:[%s5221_s6 + $0x90] sm:$0xff] }
  0x99   : > { %v2002_v53 = vunpack.c.l.s8.bf16 %v1858_v51 }
  0x9b   : > { %1222 = vadd.xlane.f32.xlu1 %v1221_v62  ;;  %v1981_v62 = vunpack.c.h.s8.bf16 %v1845_v49 }
  0x9c   : > { %1219 = vadd.xlane.f32.xlu0 %v1218_v63  ;;  %v1983_v63 = vunpack.c.h.s8.bf16 %v1847_v50  ;;  %v1856_v50 = vld [vmem:[%s5221_s6 + $0x80] sm:$0xff] }
  0x9d   : > { %4063 = vmatprep.subr.bf16.mxu0 %v1981_v62  ;;  %v2000_v52 = vunpack.c.l.s8.bf16 %v1856_v50  ;;  %v963_v62 = vsel %vm815_vm0, %v608_v56, 0.0  ;;  %v1353_v56 = vsel %vm815_vm0, %v738_v44, 0.0  ;;  %v740_v44 = vld [vmem:[%s7570_s0 + $0x5a8] sm:$0xff] }
  0x9e   : > { %4227 = vmatprep.subr.bf16.mxu1 %v1983_v63  ;;  %4064 = vmatpush1.bf16.msra.mxu0 %v1980_v0  ;;  %v960_v63 = vsel %vm815_vm0, %v607_v57, 0.0  ;;  %v736_v0 = vld [vmem:[%s7570_s0 + $0x588] sm:$0xff] }
  0x9f   : > { %892 = vadd.xlane.f32.xlu1 %v891_v2  ;;  %v855_v2 = vsel %vm815_vm0, %v572_v60, 0.0  ;;  %4228 = vmatpush1.bf16.msra.mxu1 %v1982_v1  ;;  %v2004_v60 = vunpack.c.h.s8.bf16 %v1856_v50  ;;  %v1861_v1 = vld [vmem:[%s5221_s6 + $0xa8] sm:$0xff]  ;;  %v1868_v50 = vld [vmem:[%s5221_s6 + $0xe0] sm:$0xff] }
  0xa0   : > { %889 = vadd.xlane.f32.xlu0 %v888_v3  ;;  %v852_v3 = vsel %vm815_vm0, %v571_v61, 0.0  ;;  %4065 = vmatprep.subr.bf16.mxu0 %v1985_v8  ;;  %v2006_v61 = vunpack.c.h.s8.bf16 %v1858_v51  ;;  %v1870_v51 = vld [vmem:[%s5221_s6 + $0xf0] sm:$0xff] }
  0xa3   : > { %1276 = vadd.xlane.f32.xlu1 %v1275_v6  ;;  %v1851_v6 = vld [vmem:[%s5221_s6 + $0x58] sm:$0xff] }
  0xa4   : > { %1273 = vadd.xlane.f32.xlu0 %v1272_v7  ;;  %v699_v7 = vld [vmem:[%s7570_s0 + $0x460] sm:$0xff]  ;;  %v1987_v9 = vunpack.c.l.s8.bf16 %v1851_v6 }
  0xa6   : > { %4229 = vmatprep.subr.bf16.mxu1 %v1987_v9 }
  0xa7   : > { %844 = vadd.xlane.f32.xlu1 %v843_v10  ;;  %v1848_v10 = vld [vmem:[%s5221_s6 + $0x40] sm:$0xff] }
  0xa8   : > { %841 = vadd.xlane.f32.xlu0 %v840_v11  ;;  %v1850_v11 = vld [vmem:[%s5221_s6 + $0x50] sm:$0xff]  ;;  %v1984_v12 = vunpack.c.l.s8.bf16 %v1848_v10  ;;  %v1988_v20 = vunpack.c.h.s8.bf16 %v1848_v10  ;;  %v1347_v10 = vsel %vm815_vm0, %v736_v0, 0.0 }
  0xa9   : > { %v1986_v13 = vunpack.c.l.s8.bf16 %v1850_v11  ;;  %v1990_v21 = vunpack.c.h.s8.bf16 %v1850_v11 }
  0xaa   : > { %4066 = vmatpush1.bf16.msra.mxu0 %v1984_v12  ;;  %v592_v12 = vld [vmem:[%s7570_s0 + $0x108] sm:$0xff] }
  0xab   : > { %1228 = vadd.xlane.f32.xlu1 %v1227_v14  ;;  %v1239_v14 = vsel %vm815_vm0, %v700_v4, 0.0  ;;  %4230 = vmatpush1.bf16.msra.mxu1 %v1986_v13  ;;  %v2009_v4 = vunpack.c.l.s8.bf16 %v1861_v1  ;;  %v591_v13 = vld [vmem:[%s7570_s0 + $0x100] sm:$0xff] }
  0xac   : > { %1225 = vadd.xlane.f32.xlu0 %v1224_v15  ;;  %v1236_v15 = vsel %vm815_vm0, %v699_v7, 0.0  ;;  %v1862_v7 = vld [vmem:[%s5221_s6 + $0xb0] sm:$0xff] }
  0xad   : > { %v2010_v9 = vunpack.c.l.s8.bf16 %v1862_v7 }
  0xaf   : > { %898 = vadd.xlane.f32.xlu1 %v897_v18  ;;  %v1989_v18 = vunpack.c.h.s8.bf16 %v1849_v5 }
  0xb0   : > { %895 = vadd.xlane.f32.xlu0 %v894_v19  ;;  %v1991_v19 = vunpack.c.h.s8.bf16 %v1851_v6  ;;  %v1860_v6 = vld [vmem:[%s5221_s6 + $0xa0] sm:$0xff] }
  0xb1   : > { %4067 = vmatprep.subr.bf16.mxu0 %v1989_v18  ;;  %v2008_v8 = vunpack.c.l.s8.bf16 %v1860_v6  ;;  %v915_v18 = vsel %vm815_vm0, %v592_v12, 0.0  ;;  %v722_v12 = vld [vmem:[%s7570_s0 + $0x518] sm:$0xff] }
  0xb2   : > { %4231 = vmatprep.subr.bf16.mxu1 %v1991_v19  ;;  %4068 = vmatpush1.bf16.msra.mxu0 %v1988_v20  ;;  %v912_v19 = vsel %vm815_vm0, %v591_v13, 0.0  ;;  %v610_v20 = vld [vmem:[%s7570_s0 + $0x198] sm:$0xff] }
  0xb3   : > { %1282 = vadd.xlane.f32.xlu1 %v1281_v22  ;;  %v909_v22 = vsel %vm815_vm0, %v590_v16, 0.0  ;;  %4232 = vmatpush1.bf16.msra.mxu1 %v1990_v21  ;;  %v2012_v16 = vunpack.c.h.s8.bf16 %v1860_v6  ;;  %v1865_v21 = vld [vmem:[%s5221_s6 + $0xc8] sm:$0xff]  ;;  %v969_v30 = vsel %vm815_vm0, %v610_v20, 0.0  ;;  %v2028_v6 = vunpack.c.h.s8.bf16 %v1868_v50 }
  0xb4   : > { %1279 = vadd.xlane.f32.xlu0 %v1278_v23  ;;  %v906_v23 = vsel %vm815_vm0, %v589_v17, 0.0  ;;  %4069 = vmatprep.subr.bf16.mxu0 %v1993_v28  ;;  %v2014_v17 = vunpack.c.h.s8.bf16 %v1862_v7  ;;  %v2017_v24 = vunpack.c.l.s8.bf16 %v1865_v21  ;;  %v2030_v7 = vunpack.c.h.s8.bf16 %v1870_v51 }
  0xb6   : > { %4070 = vmatpush1.bf16.msra.mxu0 %v1992_v32  ;;  %v720_v32 = vld [vmem:[%s7570_s0 + $0x508] sm:$0xff] }
  0xb7   : > { %850 = vadd.xlane.f32.xlu1 %v849_v26  ;;  %v1855_v26 = vld [vmem:[%s5221_s6 + $0x78] sm:$0xff] }
  0xb8   : > { %847 = vadd.xlane.f32.xlu0 %v846_v27  ;;  %v717_v27 = vld [vmem:[%s7570_s0 + $0x4f0] sm:$0xff]  ;;  %v1995_v29 = vunpack.c.l.s8.bf16 %v1855_v26 }
  0xb9   : > { %v1290_v35 = vsel %vm815_vm0, %v717_v27, 0.0  ;;  %v1866_v27 = vld [vmem:[%s5221_s6 + $0xd0] sm:$0xff] }
  0xba   : > { %4233 = vmatprep.subr.bf16.mxu1 %v1995_v29  ;;  %v2018_v29 = vunpack.c.l.s8.bf16 %v1866_v27 }
  0xbb   : > { %1234 = vadd.xlane.f32.xlu1 %v1233_v38  ;;  %4234 = vmatpush1.bf16.msra.mxu1 %v1994_v33  ;;  %v1997_v38 = vunpack.c.h.s8.bf16 %v1853_v25  ;;  %v719_v33 = vld [vmem:[%s7570_s0 + $0x500] sm:$0xff] }
  0xbc   : > { %1231 = vadd.xlane.f32.xlu0 %v1230_v39  ;;  %v1999_v39 = vunpack.c.h.s8.bf16 %v1855_v26  ;;  %v1864_v26 = vld [vmem:[%s5221_s6 + $0xc0] sm:$0xff] }
  0xbd   : > { %4071 = vmatprep.subr.bf16.mxu0 %v1997_v38  ;;  %v2016_v28 = vunpack.c.l.s8.bf16 %v1864_v26  ;;  %v2020_v37 = vunpack.c.h.s8.bf16 %v1864_v26  ;;  %v2022_v38 = vunpack.c.h.s8.bf16 %v1866_v27 }
  0xbe   : > { %4235 = vmatprep.subr.bf16.mxu1 %v1999_v39  ;;  %4072 = vmatpush1.bf16.msra.mxu0 %v1996_v40 }
  0xbf   : > { %904 = vadd.xlane.f32.xlu1 %v903_v46  ;;  %v1859_v46 = vld [vmem:[%s5221_s6 + $0x98] sm:$0xff]  ;;  %4236 = vmatpush1.bf16.msra.mxu1 %v1998_v41  ;;  %v1299_v41 = vsel %vm815_vm0, %v720_v32, 0.0 }
  0xc0   : > { %901 = vadd.xlane.f32.xlu0 %v900_v47  ;;  %v701_v47 = vld [vmem:[%s7570_s0 + $0x470] sm:$0xff]  ;;  %v2003_v49 = vunpack.c.l.s8.bf16 %v1859_v46  ;;  %4073 = vmatprep.subr.bf16.mxu0 %v2001_v48  ;;  %v5368_v48 = vand.u32 127, %v2736_v36 }
  0xc1   : > { %v1242_v55 = vsel %vm815_vm0, %v701_v47, 0.0  ;;  %v1871_v47 = vld [vmem:[%s5221_s6 + $0xf8] sm:$0xff] }
  0xc2   : > { %4237 = vmatprep.subr.bf16.mxu1 %v2003_v49  ;;  %4074 = vmatpush1.bf16.msra.mxu0 %v2000_v52  ;;  %v2027_v49 = vunpack.c.l.s8.bf16 %v1871_v47  ;;  %v2024_v52 = vunpack.c.l.s8.bf16 %v1868_v50  ;;  %v2742_v0 = vadd.s32 4294967288, %v5368_v48 }
  0xc3   : > { %1288 = vadd.xlane.f32.xlu1 %v1287_v58  ;;  %4238 = vmatpush1.bf16.msra.mxu1 %v2002_v53  ;;  %v2005_v58 = vunpack.c.h.s8.bf16 %v1857_v45  ;;  %v737_v45 = vld [vmem:[%s7570_s0 + $0x590] sm:$0xff]  ;;  %v2026_v53 = vunpack.c.l.s8.bf16 %v1870_v51 }
  0xc4   : > { %1285 = vadd.xlane.f32.xlu0 %v1284_v59  ;;  %v2007_v59 = vunpack.c.h.s8.bf16 %v1859_v46  ;;  %v1350_v57 = vsel %vm815_vm0, %v737_v45, 0.0 }
  0xc5   : > { %4075 = vmatprep.subr.bf16.mxu0 %v2005_v58 }
  0xc6   : > { %4239 = vmatprep.subr.bf16.mxu1 %v2007_v59  ;;  %4076 = vmatpush1.bf16.msra.mxu0 %v2004_v60 }
  0xc7   : > { %856 = vadd.xlane.f32.xlu1 %v855_v2  ;;  %v1863_v2 = vld [vmem:[%s5221_s6 + $0xb8] sm:$0xff]  ;;  %4240 = vmatpush1.bf16.msra.mxu1 %v2006_v61 }
  0xc8   : > { %853 = vadd.xlane.f32.xlu0 %v852_v3  ;;  %v735_v3 = vld [vmem:[%s7570_s0 + $0x580] sm:$0xff]  ;;  %v2011_v5 = vunpack.c.l.s8.bf16 %v1863_v2  ;;  %4077 = vmatprep.subr.bf16.mxu0 %v2009_v4 }
  0xc9   : > { %v1344_v11 = vsel %vm815_vm0, %v735_v3, 0.0  ;;  %v2031_v3 = vunpack.c.h.s8.bf16 %v1871_v47 }
  0xca   : > { %4241 = vmatprep.subr.bf16.mxu1 %v2011_v5  ;;  %4078 = vmatpush1.bf16.msra.mxu0 %v2008_v8 }
  0xcb   : > { %1240 = vadd.xlane.f32.xlu1 %v1239_v14  ;;  %4242 = vmatpush1.bf16.msra.mxu1 %v2010_v9  ;;  %v2013_v14 = vunpack.c.h.s8.bf16 %v1861_v1  ;;  %v593_v1 = vld [vmem:[%s7570_s0 + $0x110] sm:$0xff] }
  0xcc   : > { %1237 = vadd.xlane.f32.xlu0 %v1236_v15  ;;  %v2015_v15 = vunpack.c.h.s8.bf16 %v1863_v2 }
  0xcd   : > { %4079 = vmatprep.subr.bf16.mxu0 %v2013_v14 }
  0xce   : > { %4243 = vmatprep.subr.bf16.mxu1 %v2015_v15  ;;  %4080 = vmatpush1.bf16.msra.mxu0 %v2012_v16  ;;  %v721_v15 = vld [vmem:[%s7570_s0 + $0x510] sm:$0xff] }
  0xcf   : > { %910 = vadd.xlane.f32.xlu1 %v909_v22  ;;  %v1867_v22 = vld [vmem:[%s5221_s6 + $0xd8] sm:$0xff]  ;;  %4244 = vmatpush1.bf16.msra.mxu1 %v2014_v17 }
  0xd0   : > { %907 = vadd.xlane.f32.xlu0 %v906_v23  ;;  %v609_v23 = vld [vmem:[%s7570_s0 + $0x190] sm:$0xff]  ;;  %v2019_v25 = vunpack.c.l.s8.bf16 %v1867_v22  ;;  %4081 = vmatprep.subr.bf16.mxu0 %v2017_v24 }
  0xd1   : > { %v966_v31 = vsel %vm815_vm0, %v609_v23, 0.0 }
  0xd2   : > { %4245 = vmatprep.subr.bf16.mxu1 %v2019_v25  ;;  %4082 = vmatpush1.bf16.msra.mxu0 %v2016_v28  ;;  %v1305_v25 = vsel %vm815_vm0, %v722_v12, 0.0  ;;  %v1302_v28 = vsel %vm815_vm0, %v721_v15, 0.0 }
  0xd3   : > { %1294 = vadd.xlane.f32.xlu1 %v1293_v34  ;;  %4246 = vmatpush1.bf16.msra.mxu1 %v2018_v29  ;;  %v2021_v34 = vunpack.c.h.s8.bf16 %v1865_v21  ;;  %v612_v29 = vld [vmem:[%s7570_s0 + $0x1a8] sm:$0xff] }
  0xd4   : > { %1291 = vadd.xlane.f32.xlu0 %v1290_v35  ;;  %v2023_v35 = vunpack.c.h.s8.bf16 %v1867_v22 }
  0xd5   : > { %4083 = vmatprep.subr.bf16.mxu0 %v2021_v34 }
  0xd6   : > { %4247 = vmatprep.subr.bf16.mxu1 %v2023_v35  ;;  %4084 = vmatpush1.bf16.msra.mxu0 %v2020_v37 }
  0xd7   : > { %862 = vadd.xlane.f32.xlu1 %v861_v42  ;;  %v1296_v42 = vsel %vm815_vm0, %v719_v33, 0.0  ;;  %4248 = vmatpush1.bf16.msra.mxu1 %v2022_v38  ;;  %v975_v38 = vsel %vm815_vm0, %v612_v29, 0.0 }
  0xd8   : > { %859 = vadd.xlane.f32.xlu0 %v858_v43  ;;  %v1869_v43 = vld [vmem:[%s5221_s6 + $0xe8] sm:$0xff]  ;;  %4249 = vmatprep.subr.bf16.mxu1 %v2027_v49 }
  0xd9   : > { %v2025_v46 = vunpack.c.l.s8.bf16 %v1869_v43  ;;  %v2029_v2 = vunpack.c.h.s8.bf16 %v1869_v43 }
  0xdb   : > { %1246 = vadd.xlane.f32.xlu1 %v1245_v54  ;;  %4085 = vmatprep.subr.bf16.mxu0 %v2025_v46  ;;  %v739_v46 = vld [vmem:[%s7570_s0 + $0x5a0] sm:$0xff] }
  0xdc   : > { %1243 = vadd.xlane.f32.xlu0 %v1242_v55  ;;  %4086 = vmatpush1.bf16.msra.mxu0 %v2024_v52 }
  0xdd   : > { %4250 = vmatpush1.bf16.msra.mxu1 %v2026_v53  ;;  %4087 = vmatprep.subr.bf16.mxu0 %v2029_v2 }
  0xde   : > { %4251 = vmatprep.subr.bf16.mxu1 %v2031_v3 }
  0xdf   : > { %964 = vadd.xlane.f32.xlu1 %v963_v62  ;;  %v594_v62 = vld [vmem:[%s7570_s0 + $0x118] sm:$0xff] }
  0xe0   : > { %961 = vadd.xlane.f32.xlu0 %v960_v63  ;;  %v5377_v63 = vshrl.u32 %v2736_v36, 7  ;;  %4088 = vmatpush1.bf16.msra.mxu0 %v2028_v6 }
  0xe1   : > { %4252 = vmatpush1.bf16.msra.mxu1 %v2030_v7 }
  0xe2   : > { %7604 = vst [vmem:[#allocation3_spill] sm:$0xff] %v5377_v63  ;;  %v5395_v16 = vsub.s32 %v5368_v48, %v5377_v63  ;;  %v5398_v17 = vsub.s32 %v2742_v0, %v5377_v63 }
  0xe3   : > { %1348 = vadd.xlane.f32.xlu1 %v1347_v10  ;;  %v921_v10 = vsel %vm815_vm0, %v594_v62, 0.0  ;;  %v595_v62 = vld [vmem:[%s7570_s0 + $0x120] sm:$0xff] }
  0xe4   : > { %1345 = vadd.xlane.f32.xlu0 %v1344_v11  ;;  %v918_v11 = vsel %vm815_vm0, %v593_v1, 0.0  ;;  %7605 = vst [vmem:[#allocation4_spill] sm:$0xff] %v5395_v16  ;;  %7606 = vst [vmem:[#allocation5_spill] sm:$0xff] %v5398_v17  ;;  %v924_v12 = vsel %vm815_vm0, %v595_v62, 0.0 }
  0xe7   : > { %916 = vadd.xlane.f32.xlu1 %v915_v18  ;;  %v2749_v18 = vadd.s32 4294967280, %v5368_v48 }
  0xe8   : > { %913 = vadd.xlane.f32.xlu0 %v912_v19  ;;  %v2756_v19 = vadd.s32 4294967272, %v5368_v48 }
  0xea   : > { %v5416_v32 = vsub.s32 %v2756_v19, %v5377_v63 }
  0xeb   : > { %970 = vadd.xlane.f32.xlu1 %v969_v30  ;;  %v611_v30 = vld [vmem:[%s7570_s0 + $0x1a0] sm:$0xff] }
  0xec   : > { %967 = vadd.xlane.f32.xlu0 %v966_v31  ;;  %v1250_v39 = vpop.xlane.xlu1 %1249  ;;  %v5413_v31 = vsub.s32 %v2749_v18, %v5377_v63  ;;  %7608 = vst [vmem:[#allocation7_spill] sm:$0xff] %v5416_v32 }
  0xed   : > { %v866_v40 = vpop.xlane.xlu0 %865  ;;  %v1728_v58 = vmul.f32 0.015625, %v1250_v39  ;;  %v972_v39 = vsel %vm815_vm0, %v611_v30, 0.0 }
  0xee   : > { %v1600_v59 = vmul.f32 0.015625, %v866_v40  ;;  %7607 = vst [vmem:[#allocation6_spill] sm:$0xff] %v5413_v31 }
  0xef   : > { %1300 = vadd.xlane.f32.xlu1 %v1299_v41 }
  0xf0   : > { %1297 = vadd.xlane.f32.xlu0 %v1296_v42  ;;  %v1253_v54 = vpop.xlane.xlu1 %1252 }
  0xf1   : > { %v869_v55 = vpop.xlane.xlu0 %868  ;;  %v1729_v60 = vmul.f32 0.015625, %v1253_v54 }
  0xf2   : > { %v1601_v61 = vmul.f32 0.015625, %v869_v55  ;;  %v1359_v55 = vsel %vm815_vm0, %v740_v44, 0.0 }
  0xf3   : > { %v5383_v4 = vpack.c.bf16 %v1729_v60, %v1728_v58  ;;  %1354 = vadd.xlane.f32.xlu1 %v1353_v56  ;;  %v1356_v58 = vsel %vm815_vm0, %v739_v46, 0.0 }
  0xf4   : > { %v2232_v5 = vpack.c.bf16 %v1601_v61, %v1600_v59  ;;  %1351 = vadd.xlane.f32.xlu0 %v1350_v57  ;;  %v821_v8 = vpop.xlane.xlu1 %820  ;;  %v596_v59 = vld [vmem:[%s7570_s0 + $0x128] sm:$0xff] }
  0xf5   : > { %v818_v9 = vpop.xlane.xlu0 %817  ;;  %v1585_v13 = vmul.f32 0.015625, %v821_v8  ;;  %v2624_v45 = vunpack.c.l.b16 %v5383_v4  ;;  %v2625_v47 = vunpack.c.h.b16 %v5383_v4  ;;  %v724_v4 = vld [vmem:[%s7570_s0 + $0x528] sm:$0xff] }
  0xf6   : > { %v1584_v14 = vmul.f32 0.015625, %v818_v9  ;;  %v2496_v20 = vunpack.c.l.b16 %v2232_v5  ;;  %v2497_v21 = vunpack.c.h.b16 %v2232_v5  ;;  %v723_v5 = vld [vmem:[%s7570_s0 + $0x520] sm:$0xff]  ;;  %v927_v9 = vsel %vm815_vm0, %v596_v59, 0.0  ;;  %v741_v59 = vld [vmem:[%s7570_s0 + $0x5b0] sm:$0xff] }
  0xf7   : > { %922 = vadd.xlane.f32.xlu1 %v921_v10  ;;  %v3482_v0 = vrot.slane %v2624_v45, %v5395_v16  ;;  %v3486_v1 = vrot.slane %v2625_v47, %v5398_v17  ;;  %v1311_v15 = vsel %vm815_vm0, %v724_v4, 0.0  ;;  %v1308_v18 = vsel %vm815_vm0, %v723_v5, 0.0 }
  0xf8   : > { %v5402_v22 = vpack.c.bf16 %v1585_v13, %v1584_v14  ;;  %919 = vadd.xlane.f32.xlu0 %v918_v11  ;;  %v875_v23 = vpop.xlane.xlu1 %874  ;;  %v2850_v34 = vrot.slane %v2496_v20, %v5395_v16  ;;  %v2854_v35 = vrot.slane %v2497_v21, %v5398_v17 }
  0xf9   : > { %v872_v24 = vpop.xlane.xlu0 %871  ;;  %v1603_v26 = vmul.f32 0.015625, %v875_v23  ;;  %v3487_v19 = vsel %vm2747_vm1, %v3486_v1, %v3482_v0  ;;  %v614_v23 = vld [vmem:[%s7570_s0 + $0x1b8] sm:$0xff] }
  0xfa   : > { %v1602_v27 = vmul.f32 0.015625, %v872_v24  ;;  %v2855_v52 = vsel %vm2747_vm1, %v2854_v35, %v2850_v34  ;;  %v2480_v2 = vunpack.c.l.b16 %v5402_v22  ;;  %v2481_v3 = vunpack.c.h.b16 %v5402_v22  ;;  %v613_v24 = vld [vmem:[%s7570_s0 + $0x1b0] sm:$0xff] }
  0xfb   : > { %1306 = vadd.xlane.f32.xlu1 %v1305_v25 }
  0xfc   : > { %v2233_v33 = vpack.c.bf16 %v1603_v26, %v1602_v27  ;;  %1303 = vadd.xlane.f32.xlu0 %v1302_v28  ;;  %v1205_v36 = vpop.xlane.xlu1 %1204  ;;  %v2741_v20 = vrot.slane %v2480_v2, %v5395_v16  ;;  %v2746_v21 = vrot.slane %v2481_v3, %v5398_v17 }
  0xfd   : > { %v1202_v37 = vpop.xlane.xlu0 %1201  ;;  %v1713_v42 = vmul.f32 0.015625, %v1205_v36 }
  0xfe   : > { %v2498_v40 = vunpack.c.l.b16 %v2233_v33  ;;  %v2499_v41 = vunpack.c.h.b16 %v2233_v33  ;;  %v1712_v43 = vmul.f32 0.015625, %v1202_v37  ;;  %v2748_v45 = vsel %vm2747_vm1, %v2746_v21, %v2741_v20 }
  0xff   : > { %976 = vadd.xlane.f32.xlu1 %v975_v38  ;;  %v2763_v38 = vadd.s32 4294967264, %v5368_v48 }
 0x100   : > { %v2859_v49 = vrot.slane %v2498_v40, %v5413_v31  ;;  %v2864_v50 = vrot.slane %v2499_v41, %v5416_v32  ;;  %v5432_v51 = vpack.c.bf16 %v1713_v42, %v1712_v43  ;;  %973 = vadd.xlane.f32.xlu0 %v972_v39  ;;  %v1259_v53 = vpop.xlane.xlu1 %1258  ;;  %v981_v39 = vsel %vm815_vm0, %v614_v23, 0.0 }
 0x101   : > { %v1256_v54 = vpop.xlane.xlu0 %1255  ;;  %v1731_v57 = vmul.f32 0.015625, %v1259_v53  ;;  %v978_v40 = vsel %vm815_vm0, %v613_v24, 0.0  ;;  %v5500_v0 = vsub.s32 %v2763_v38, %v5377_v63 }
 0x102   : > { %v2860_v56 = vsel %vm2754_vm2, %v2859_v49, %v2855_v52  ;;  %v1730_v61 = vmul.f32 0.015625, %v1256_v54  ;;  %v2608_v25 = vunpack.c.l.b16 %v5432_v51  ;;  %v2609_v26 = vunpack.c.h.b16 %v5432_v51 }
 0x103   : > { %v5442_v60 = vsel %vm2761_vm3, %v2864_v50, %v2860_v56  ;;  %1360 = vadd.xlane.f32.xlu1 %v1359_v55  ;;  %v2770_v50 = vadd.s32 4294967256, %v5368_v48  ;;  %v742_v56 = vld [vmem:[%s7570_s0 + $0x5b8] sm:$0xff]  ;;  %7609 = vst [vmem:[#allocation8_spill] sm:$0xff] %v5500_v0 }
 0x104   : > { %v2297_v6 = vpack.c.bf16 %v1731_v57, %v1730_v61  ;;  %1357 = vadd.xlane.f32.xlu0 %v1356_v58  ;;  %v827_v7 = vpop.xlane.xlu1 %826  ;;  %v3403_v46 = vrot.slane %v2608_v25, %v5395_v16  ;;  %v3407_v47 = vrot.slane %v2609_v26, %v5398_v17 }
 0x105   : > { %v824_v8 = vpop.xlane.xlu0 %823  ;;  %v1587_v10 = vmul.f32 0.015625, %v827_v7  ;;  %v5504_v2 = vsub.s32 %v2770_v50, %v5377_v63  ;;  %v615_v50 = vld [vmem:[%s7570_s0 + $0x1c0] sm:$0xff] }
 0x106   : > { %v1586_v11 = vmul.f32 0.015625, %v824_v8  ;;  %v2626_v13 = vunpack.c.l.b16 %v2297_v6  ;;  %v2627_v14 = vunpack.c.h.b16 %v2297_v6  ;;  %v3408_v1 = vsel %vm2747_vm1, %v3407_v47, %v3403_v46  ;;  %v616_v46 = vld [vmem:[%s7570_s0 + $0x1c8] sm:$0xff] }
 0x107   : > { %928 = vadd.xlane.f32.xlu1 %v927_v9  ;;  %7610 = vst [vmem:[#allocation9_spill] sm:$0xff] %v5504_v2  ;;  %v1365_v6 = vsel %vm815_vm0, %v742_v56, 0.0 }
 0x108   : > { %v2225_v22 = vpack.c.bf16 %v1587_v10, %v1586_v11  ;;  %v3491_v27 = vrot.slane %v2626_v13, %v5413_v31  ;;  %v3496_v28 = vrot.slane %v2627_v14, %v5416_v32  ;;  %925 = vadd.xlane.f32.xlu0 %v924_v12  ;;  %v1211_v29 = vpop.xlane.xlu1 %1210  ;;  %v1362_v10 = vsel %vm815_vm0, %v741_v59, 0.0  ;;  %v598_v11 = vld [vmem:[%s7570_s0 + $0x138] sm:$0xff]  ;;  %v597_v12 = vld [vmem:[%s7570_s0 + $0x130] sm:$0xff]  ;;  %v744_v59 = vld [vmem:[%s7570_s0 + $0x5c8] sm:$0xff] }
 0x109   : > { %v1208_v30 = vpop.xlane.xlu0 %1207  ;;  %v1715_v35 = vmul.f32 0.015625, %v1211_v29  ;;  %v933_v23 = vsel %vm815_vm0, %v598_v11, 0.0  ;;  %v930_v24 = vsel %vm815_vm0, %v597_v12, 0.0  ;;  %v726_v29 = vld [vmem:[%s7570_s0 + $0x538] sm:$0xff]  ;;  %v599_v11 = vld [vmem:[%s7570_s0 + $0x140] sm:$0xff] }
 0x10a   : > { %v2482_v33 = vunpack.c.l.b16 %v2225_v22  ;;  %v2483_v34 = vunpack.c.h.b16 %v2225_v22  ;;  %v1714_v36 = vmul.f32 0.015625, %v1208_v30  ;;  %v3492_v37 = vsel %vm2754_vm2, %v3491_v27, %v3487_v19  ;;  %v725_v30 = vld [vmem:[%s7570_s0 + $0x530] sm:$0xff] }
 0x10b   : > { %v5479_v41 = vsel %vm2761_vm3, %v3496_v28, %v3492_v37  ;;  %1312 = vadd.xlane.f32.xlu1 %v1311_v15 }
 0x10c   : > { %v2753_v42 = vrot.slane %v2482_v33, %v5413_v31  ;;  %v2760_v43 = vrot.slane %v2483_v34, %v5416_v32  ;;  %v2289_v44 = vpack.c.bf16 %v1715_v35, %v1714_v36  ;;  %1309 = vadd.xlane.f32.xlu0 %v1308_v18  ;;  %v881_v49 = vpop.xlane.xlu1 %880 }
 0x10d   : > { %v878_v51 = vpop.xlane.xlu0 %877  ;;  %v1605_v55 = vmul.f32 0.015625, %v881_v49 }
 0x10e   : > { %v2755_v52 = vsel %vm2754_vm2, %v2753_v42, %v2748_v45  ;;  %v2610_v53 = vunpack.c.l.b16 %v2289_v44  ;;  %v2611_v54 = vunpack.c.h.b16 %v2289_v44  ;;  %v1604_v58 = vmul.f32 0.015625, %v878_v51 }
 0x10f   : > { %v5492_v57 = vsel %vm2761_vm3, %v2760_v43, %v2755_v52  ;;  %982 = vadd.xlane.f32.xlu1 %v981_v39  ;;  %v1314_v42 = vsel %vm815_vm0, %v725_v30, 0.0 }
 0x110   : > { %v3412_v61 = vrot.slane %v2610_v53, %v5413_v31  ;;  %v3417_v62 = vrot.slane %v2611_v54, %v5416_v32  ;;  %v2234_v3 = vpack.c.bf16 %v1605_v55, %v1604_v58  ;;  %979 = vadd.xlane.f32.xlu0 %v978_v40  ;;  %v1265_v4 = vpop.xlane.xlu1 %1264  ;;  %v1317_v40 = vsel %vm815_vm0, %v726_v29, 0.0 }
 0x111   : > { %v1262_v5 = vpop.xlane.xlu0 %1261  ;;  %v1733_v8 = vmul.f32 0.015625, %v1265_v4  ;;  %v987_v55 = vsel %vm815_vm0, %v616_v46, 0.0  ;;  %v984_v58 = vsel %vm815_vm0, %v615_v50, 0.0  ;;  %v2784_v46 = vadd.s32 4294967240, %v5368_v48  ;;  %v730_v50 = vld [vmem:[%s7570_s0 + $0x558] sm:$0xff] }
 0x112   : > { %v3413_v7 = vsel %vm2754_vm2, %v3412_v61, %v3408_v1  ;;  %v1732_v9 = vmul.f32 0.015625, %v1262_v5  ;;  %v2500_v14 = vunpack.c.l.b16 %v2234_v3  ;;  %v2501_v15 = vunpack.c.h.b16 %v2234_v3  ;;  %v743_v3 = vld [vmem:[%s7570_s0 + $0x5c0] sm:$0xff] }
 0x113   : > { %v5516_v13 = vsel %vm2761_vm3, %v3417_v62, %v3413_v7  ;;  %1366 = vadd.xlane.f32.xlu1 %v1365_v6  ;;  %v1371_v7 = vsel %vm815_vm0, %v744_v59, 0.0 }
 0x114   : > { %v2298_v18 = vpack.c.bf16 %v1733_v8, %v1732_v9  ;;  %v2869_v19 = vrot.slane %v2500_v14, %v5500_v0  ;;  %v2874_v20 = vrot.slane %v2501_v15, %v5504_v2  ;;  %1363 = vadd.xlane.f32.xlu0 %v1362_v10  ;;  %v833_v21 = vpop.xlane.xlu1 %832  ;;  %v1368_v8 = vsel %vm815_vm0, %v743_v3, 0.0  ;;  %v600_v9 = vld [vmem:[%s7570_s0 + $0x148] sm:$0xff] }
 0x115   : > { %v830_v22 = vpop.xlane.xlu0 %829  ;;  %v1589_v27 = vmul.f32 0.015625, %v833_v21  ;;  %v620_v3 = vld [vmem:[%s7570_s0 + $0x1e8] sm:$0xff] }
 0x116   : > { %v2628_v25 = vunpack.c.l.b16 %v2298_v18  ;;  %v2629_v26 = vunpack.c.h.b16 %v2298_v18  ;;  %v1588_v28 = vmul.f32 0.015625, %v830_v22  ;;  %v2870_v33 = vsel %vm7603_vm4, %v2869_v19, %v5442_v60 }
 0x117   : > { %v5531_v34 = vsel %vm7602_vm5, %v2874_v20, %v2870_v33  ;;  %934 = vadd.xlane.f32.xlu1 %v933_v23  ;;  %v939_v18 = vsel %vm815_vm0, %v600_v9, 0.0  ;;  %v936_v19 = vsel %vm815_vm0, %v599_v11, 0.0  ;;  %v727_v20 = vld [vmem:[%s7570_s0 + $0x540] sm:$0xff]  ;;  %v746_v33 = vld [vmem:[%s7570_s0 + $0x5d8] sm:$0xff] }
 0x118   : > { %v3501_v35 = vrot.slane %v2628_v25, %v5500_v0  ;;  %v3506_v36 = vrot.slane %v2629_v26, %v5504_v2  ;;  %v2226_v37 = vpack.c.bf16 %v1589_v27, %v1588_v28  ;;  %931 = vadd.xlane.f32.xlu0 %v930_v24  ;;  %v1217_v38 = vpop.xlane.xlu1 %1216  ;;  %v1320_v24 = vsel %vm815_vm0, %v727_v20, 0.0  ;;  %v618_v25 = vld [vmem:[%s7570_s0 + $0x1d8] sm:$0xff]  ;;  %v617_v26 = vld [vmem:[%s7570_s0 + $0x1d0] sm:$0xff] }
 0x119   : > { %v1214_v39 = vpop.xlane.xlu0 %1213  ;;  %v1717_v45 = vmul.f32 0.015625, %v1217_v38  ;;  %v993_v29 = vsel %vm815_vm0, %v618_v25, 0.0  ;;  %v990_v30 = vsel %vm815_vm0, %v617_v26, 0.0  ;;  %v1377_v38 = vsel %vm815_vm0, %v746_v33, 0.0  ;;  %v603_v25 = vld [vmem:[%s7570_s0 + $0x160] sm:$0xff]  ;;  %v732_v26 = vld [vmem:[%s7570_s0 + $0x568] sm:$0xff] }
 0x11a   : > { %v3502_v43 = vsel %vm7603_vm4, %v3501_v35, %v5479_v41  ;;  %v2484_v60 = vunpack.c.l.b16 %v2226_v37  ;;  %v2485_v44 = vunpack.c.h.b16 %v2226_v37  ;;  %v1716_v49 = vmul.f32 0.015625, %v1214_v39  ;;  %v745_v35 = vld [vmem:[%s7570_s0 + $0x5d0] sm:$0xff] }
 0x11b   : > { %v5543_v47 = vsel %vm7602_vm5, %v3506_v36, %v3502_v43  ;;  %1318 = vadd.xlane.f32.xlu1 %v1317_v40  ;;  %v1374_v39 = vsel %vm815_vm0, %v745_v35, 0.0  ;;  %v602_v40 = vld [vmem:[%s7570_s0 + $0x158] sm:$0xff] }
 0x11c   : > { %v2767_v51 = vrot.slane %v2484_v60, %v5500_v0  ;;  %v2774_v52 = vrot.slane %v2485_v44, %v5504_v2  ;;  %v2290_v41 = vpack.c.bf16 %v1717_v45, %v1716_v49  ;;  %1315 = vadd.xlane.f32.xlu0 %v1314_v42  ;;  %v5550_v53 = vpop.xlane.xlu1 %886  ;;  %v601_v42 = vld [vmem:[%s7570_s0 + $0x150] sm:$0xff]  ;;  %v945_v44 = vsel %vm815_vm0, %v602_v40, 0.0  ;;  %v622_v40 = vld [vmem:[%s7570_s0 + $0x1f8] sm:$0xff] }
 0x11d   : > { %v5552_v54 = vpop.xlane.xlu0 %883  ;;  %v2777_v45 = vadd.s32 4294967248, %v5368_v48  ;;  %v942_v49 = vsel %vm815_vm0, %v601_v42, 0.0  ;;  %v1607_v59 = vmul.f32 0.015625, %v5550_v53  ;;  %v2812_v53 = vadd.s32 4294967208, %v5368_v48  ;;  %v621_v42 = vld [vmem:[%s7570_s0 + $0x1f0] sm:$0xff] }
 0x11e   : > { %v2769_v56 = vsel %vm7603_vm4, %v2767_v51, %v5492_v57  ;;  %v2612_v62 = vunpack.c.l.b16 %v2290_v41  ;;  %v2613_v1 = vunpack.c.h.b16 %v2290_v41  ;;  %v5646_v51 = vld [vmem:[%s5221_s6 + $0x108] sm:$0xff]  ;;  %v2791_v41 = vadd.s32 4294967232, %v5368_v48 }
 0x11f   : > { %v5562_v61 = vsel %vm7602_vm5, %v2774_v52, %v2769_v56  ;;  %988 = vadd.xlane.f32.xlu1 %v987_v55  ;;  %7611 = vst [vmem:[#allocation10_spill] sm:$0xff] %v5646_v51  ;;  %v5649_v52 = vld [vmem:[%s5221_s6 + $0x118] sm:$0xff]  ;;  %v2798_v55 = vadd.s32 4294967224, %v5368_v48  ;;  %v729_v56 = vld [vmem:[%s7570_s0 + $0x550] sm:$0xff]  ;;  %v5674_v9 = vsub.s32 %v2777_v45, %v5377_v63  ;;  %v5722_v45 = vsub.s32 %v2812_v53, %v5377_v63 }
 0x120   : > { %v3422_v4 = vrot.slane %v2612_v62, %v5500_v0  ;;  %v3427_v57 = vrot.slane %v2613_v1, %v5504_v2  ;;  %985 = vadd.xlane.f32.xlu0 %v984_v58  ;;  %v5569_v5 = vpop.xlane.xlu1 %1270  ;;  %7612 = vst [vmem:[#allocation11_spill] sm:$0xff] %v5649_v52  ;;  %v2033_v58 = vunpack.c.l.s8.bf16 %v5646_v51  ;;  %v1606_v62 = vmul.f32 0.015625, %v5552_v54  ;;  %v619_v54 = vld [vmem:[%s7570_s0 + $0x1e0] sm:$0xff] }
 0x121   : > { %v5571_v6 = vpop.xlane.xlu0 %1267  ;;  %v2805_v1 = vadd.s32 4294967216, %v5368_v48  ;;  %v1326_v11 = vsel %vm815_vm0, %v729_v56, 0.0  ;;  %v5690_v20 = vsub.s32 %v2791_v41, %v5377_v63  ;;  %v996_v35 = vsel %vm815_vm0, %v619_v54, 0.0  ;;  %v749_v56 = vld [vmem:[%s7570_s0 + $0x5f0] sm:$0xff] }
 0x122   : > { %v3423_v10 = vsel %vm7603_vm4, %v3422_v4, %v5516_v13  ;;  %v728_v13 = vld [vmem:[%s7570_s0 + $0x548] sm:$0xff]  ;;  %v2035_v4 = vunpack.c.l.s8.bf16 %v5649_v52  ;;  %4098 = vmatprep.subr.bf16.mxu0 %v2033_v58  ;;  %v1735_v58 = vmul.f32 0.015625, %v5569_v5  ;;  %v5755_v53 = vsel %vm815_vm0, %v621_v42, 0.0  ;;  %v606_v5 = vld [vmem:[%s7570_s0 + $0x178] sm:$0xff] }
 0x123   : > { %v5584_v12 = vsel %vm7602_vm5, %v3427_v57, %v3423_v10  ;;  %1372 = vadd.xlane.f32.xlu1 %v1371_v7  ;;  %v1323_v23 = vsel %vm815_vm0, %v728_v13, 0.0  ;;  %v5677_v10 = vsub.s32 %v2784_v46, %v5377_v63  ;;  %v604_v13 = vld [vmem:[%s7570_s0 + $0x168] sm:$0xff]  ;;  %v5706_v33 = vsub.s32 %v2805_v1, %v5377_v63 }
 0x124   : > { %1369 = vadd.xlane.f32.xlu0 %v1368_v8  ;;  %v5586_v14 = vpop.xlane.xlu1 %838  ;;  %v1329_v8 = vsel %vm815_vm0, %v730_v50, 0.0  ;;  %4262 = vmatprep.subr.bf16.mxu1 %v2035_v4  ;;  %v5729_v41 = vsel %vm815_vm0, %v604_v13, 0.0  ;;  %v5743_v1 = vsel %vm815_vm0, %v732_v26, 0.0  ;;  %v734_v13 = vld [vmem:[%s7570_s0 + $0x578] sm:$0xff]  ;;  %v640_v42 = vld [vmem:[%s7570_s0 + $0x288] sm:$0xff] }
 0x125   : > { %v5588_v15 = vpop.xlane.xlu0 %835 }
 0x127   : > { %940 = vadd.xlane.f32.xlu1 %v939_v18  ;;  %v748_v18 = vld [vmem:[%s7570_s0 + $0x5e8] sm:$0xff] }
 0x128   : > { %937 = vadd.xlane.f32.xlu0 %v936_v19  ;;  %v5598_v21 = vpop.xlane.xlu1 %1222  ;;  %v747_v19 = vld [vmem:[%s7570_s0 + $0x5e0] sm:$0xff] }
 0x129   : > { %v5600_v22 = vpop.xlane.xlu0 %1219  ;;  %v1380_v50 = vsel %vm815_vm0, %v747_v19, 0.0  ;;  %v605_v19 = vld [vmem:[%s7570_s0 + $0x170] sm:$0xff] }
 0x12a   : > { %v5802_v32 = vsel %vm815_vm0, %v605_v19, 0.0 }
 0x12b   : > { %1324 = vadd.xlane.f32.xlu1 %v1323_v23  ;;  %v5693_v23 = vsub.s32 %v2798_v55, %v5377_v63  ;;  %v750_v55 = vld [vmem:[%s7570_s0 + $0x5f8] sm:$0xff] }
 0x12c   : > { %1321 = vadd.xlane.f32.xlu0 %v1320_v24  ;;  %v5610_v27 = vpop.xlane.xlu1 %892  ;;  %v999_v24 = vsel %vm815_vm0, %v620_v3, 0.0 }
 0x12d   : > { %v5612_v28 = vpop.xlane.xlu0 %889 }
 0x12e   : > { %v1608_v0 = vmul.f32 0.015625, %v5612_v28  ;;  %v5818_v28 = vsel %vm815_vm0, %v640_v42, 0.0 }
 0x12f   : > { %994 = vadd.xlane.f32.xlu1 %v993_v29  ;;  %v2819_v29 = vadd.s32 4294967200, %v5368_v48 }
 0x130   : > { %991 = vadd.xlane.f32.xlu0 %v990_v30  ;;  %v5622_v36 = vpop.xlane.xlu1 %1276  ;;  %v5703_v30 = vpack.c.bf16 %v1607_v59, %v1606_v62  ;;  %v1734_v59 = vmul.f32 0.015625, %v5571_v6  ;;  %v5740_v62 = vsel %vm815_vm0, %v603_v25, 0.0  ;;  %v1591_v25 = vmul.f32 0.015625, %v5586_v14 }
 0x131   : > { %v5624_v37 = vpop.xlane.xlu0 %1273  ;;  %v5749_v4 = vsub.s32 %v2819_v29, %v5377_v63 }
 0x132   : > { %v2502_v6 = vunpack.c.l.b16 %v5703_v30  ;;  %v2299_v14 = vpack.c.bf16 %v1735_v58, %v1734_v59  ;;  %v2503_v2 = vunpack.c.h.b16 %v5703_v30  ;;  %v5812_v30 = vsel %vm815_vm0, %v734_v13, 0.0 }
 0x133   : > { %1378 = vadd.xlane.f32.xlu1 %v1377_v38  ;;  %v731_v38 = vld [vmem:[%s7570_s0 + $0x560] sm:$0xff] }
 0x134   : > { %1375 = vadd.xlane.f32.xlu0 %v1374_v39  ;;  %v5634_v43 = vpop.xlane.xlu1 %844  ;;  %v2826_v39 = vadd.s32 4294967192, %v5368_v48  ;;  %v5746_v3 = vsel %vm815_vm0, %v731_v38, 0.0  ;;  %v733_v38 = vld [vmem:[%s7570_s0 + $0x570] sm:$0xff]  ;;  %v2879_v58 = vrot.slane %v2502_v6, %v5674_v9  ;;  %v2630_v6 = vunpack.c.l.b16 %v2299_v14 }
 0x135   : > { %v5636_v60 = vpop.xlane.xlu0 %841 }
 0x136   : > { %v5762_v54 = vsub.s32 %v2826_v39, %v5377_v63  ;;  %v2833_v39 = vadd.s32 4294967184, %v5368_v48 }
 0x137   : > { %946 = vadd.xlane.f32.xlu1 %v945_v44 }
 0x138   : > { %943 = vadd.xlane.f32.xlu0 %v942_v49  ;;  %v5664_v57 = vpop.xlane.xlu1 %1228  ;;  %v1383_v49 = vsel %vm815_vm0, %v748_v18, 0.0  ;;  %v5768_v18 = vsel %vm815_vm0, %v749_v56, 0.0  ;;  %v639_v56 = vld [vmem:[%s7570_s0 + $0x280] sm:$0xff]  ;;  %v5821_v31 = vsub.s32 %v2833_v39, %v5377_v63  ;;  %v2884_v39 = vrot.slane %v2503_v2, %v5677_v10 }
 0x139   : > { %v5666_v7 = vpop.xlane.xlu0 %1225  ;;  %v1593_v2 = vmul.f32 0.015625, %v5634_v43 }
 0x13b   : > { %1330 = vadd.xlane.f32.xlu1 %v1329_v8  ;;  %v5752_v8 = vsel %vm815_vm0, %v622_v40, 0.0  ;;  %v2840_v40 = vadd.s32 4294967176, %v5368_v48  ;;  %v1609_v48 = vmul.f32 0.015625, %v5610_v27  ;;  %v5815_v27 = vsel %vm815_vm0, %v733_v38, 0.0 }
 0x13c   : > { %1327 = vadd.xlane.f32.xlu0 %v1326_v11  ;;  %v5719_v44 = vpop.xlane.xlu1 %898  ;;  %v5765_v11 = vsel %vm815_vm0, %v750_v55, 0.0  ;;  %v5793_v55 = vsel %vm815_vm0, %v606_v5, 0.0 }
 0x13d   : > { %v5724_v46 = vpop.xlane.xlu0 %895  ;;  %v5824_v17 = vsub.s32 %v2840_v40, %v5377_v63  ;;  %v5845_v40 = vpack.c.bf16 %v1609_v48, %v1608_v0  ;;  %v2631_v63 = vunpack.c.h.b16 %v2299_v14  ;;  %v1592_v0 = vmul.f32 0.015625, %v5636_v60 }
 0x13e   : > { %v3511_v60 = vrot.slane %v2630_v6, %v5674_v9  ;;  %v1720_v6 = vmul.f32 0.015625, %v5666_v7 }
 0x13f   : > { %1000 = vadd.xlane.f32.xlu1 %v999_v24  ;;  %v1590_v24 = vmul.f32 0.015625, %v5588_v15  ;;  %v1719_v15 = vmul.f32 0.015625, %v5598_v21  ;;  %v768_v21 = vld [vmem:[%s7570_s0 + $0x688] sm:$0xff] }
 0x140   : > { %997 = vadd.xlane.f32.xlu0 %v996_v35  ;;  %v5778_v26 = vpop.xlane.xlu1 %1282  ;;  %v1718_v35 = vmul.f32 0.015625, %v5600_v22  ;;  %v767_v22 = vld [vmem:[%s7570_s0 + $0x680] sm:$0xff]  ;;  %v5830_v38 = vsel %vm815_vm0, %v768_v21, 0.0  ;;  %v752_v21 = vld [vmem:[%s7570_s0 + $0x608] sm:$0xff] }
 0x141   : > { %v5780_v29 = vpop.xlane.xlu0 %1279  ;;  %v2227_v59 = vpack.c.bf16 %v1591_v25, %v1590_v24  ;;  %v5833_v42 = vsel %vm815_vm0, %v767_v22, 0.0  ;;  %v623_v25 = vld [vmem:[%s7570_s0 + $0x200] sm:$0xff]  ;;  %v642_v24 = vld [vmem:[%s7570_s0 + $0x298] sm:$0xff]  ;;  %v2880_v22 = vsel %vm7600_vm6, %v2879_v58, %v5531_v34  ;;  %v1739_v7 = vmul.f32 0.015625, %v5778_v26 }
 0x142   : > { %v2291_v13 = vpack.c.bf16 %v1719_v15, %v1718_v35  ;;  %v1737_v15 = vmul.f32 0.015625, %v5622_v36  ;;  %v1736_v35 = vmul.f32 0.015625, %v5624_v37  ;;  %v5869_v34 = vsel %vm815_vm0, %v623_v25, 0.0 }
 0x143   : > { %1384 = vadd.xlane.f32.xlu1 %v1383_v49  ;;  %v5827_v49 = vsel %vm815_vm0, %v639_v56, 0.0  ;;  %v641_v56 = vld [vmem:[%s7570_s0 + $0x290] sm:$0xff]  ;;  %v2486_v36 = vunpack.c.l.b16 %v2227_v59  ;;  %v5872_v43 = vsel %vm815_vm0, %v642_v24, 0.0  ;;  %v2885_v58 = vsel %vm7601_vm7, %v2884_v39, %v2880_v22 }
 0x144   : > { %1381 = vadd.xlane.f32.xlu0 %v1380_v50  ;;  %v851_v5 = vpop.xlane.xlu1 %850  ;;  %v624_v50 = vld [vmem:[%s7570_s0 + $0x208] sm:$0xff]  ;;  %7613 = vst [vmem:[#allocation12_spill] sm:$0xff] %v5872_v43  ;;  %v5876_v14 = vsel %vm815_vm0, %v641_v56, 0.0  ;;  %v2487_v52 = vunpack.c.h.b16 %v2227_v59  ;;  %v2300_v51 = vpack.c.bf16 %v1737_v15, %v1736_v35  ;;  %v3516_v25 = vrot.slane %v2631_v63, %v5677_v10 }
 0x145   : > { %v848_v19 = vpop.xlane.xlu0 %847  ;;  %v5866_v16 = vsel %vm815_vm0, %v624_v50, 0.0  ;;  %v2504_v50 = vunpack.c.l.b16 %v5845_v40  ;;  %v2228_v24 = vpack.c.bf16 %v1593_v2, %v1592_v0  ;;  %v1721_v43 = vmul.f32 0.015625, %v5664_v57 }
 0x146   : > { %v2781_v56 = vrot.slane %v2486_v36, %v5674_v9  ;;  %v1610_v59 = vmul.f32 0.015625, %v5724_v46  ;;  %v3512_v63 = vsel %vm7600_vm6, %v3511_v60, %v5543_v47  ;;  %v2788_v35 = vrot.slane %v2487_v52, %v5677_v10 }
 0x147   : > { %952 = vadd.xlane.f32.xlu1 %v5729_v41  ;;  %v2614_v41 = vunpack.c.l.b16 %v2291_v13  ;;  %v2632_v46 = vunpack.c.l.b16 %v2300_v51  ;;  %v2488_v22 = vunpack.c.l.b16 %v2228_v24  ;;  %v1595_v2 = vmul.f32 0.015625, %v851_v5 }
 0x148   : > { %949 = vadd.xlane.f32.xlu0 %v5740_v62  ;;  %v5861_v37 = vpop.xlane.xlu1 %1234  ;;  %v5879_v62 = vsel %vm815_vm0, %v752_v21, 0.0  ;;  %v2615_v21 = vunpack.c.h.b16 %v2291_v13  ;;  %v2505_v13 = vunpack.c.h.b16 %v5845_v40  ;;  %v1594_v0 = vmul.f32 0.015625, %v848_v19 }
 0x149   : > { %v5863_v48 = vpop.xlane.xlu0 %1231  ;;  %7614 = vst [vmem:[#allocation13_spill] sm:$0xff] %v5879_v62  ;;  %v1611_v62 = vmul.f32 0.015625, %v5719_v44  ;;  %v3432_v57 = vrot.slane %v2614_v41, %v5674_v9  ;;  %v2889_v44 = vrot.slane %v2504_v50, %v5690_v20  ;;  %v2783_v47 = vsel %vm7600_vm6, %v2781_v56, %v5562_v61 }
 0x14a   : > { %v3437_v26 = vrot.slane %v2615_v21, %v5677_v10  ;;  %v2633_v36 = vunpack.c.h.b16 %v2300_v51  ;;  %v2894_v41 = vrot.slane %v2505_v13, %v5693_v23  ;;  %v3521_v61 = vrot.slane %v2632_v46, %v5690_v20 }
 0x14b   : > { %1336 = vadd.xlane.f32.xlu1 %v5743_v1  ;;  %v1738_v1 = vmul.f32 0.015625, %v5780_v29  ;;  %v2237_v29 = vpack.c.bf16 %v1611_v62, %v1610_v59  ;;  %v3433_v60 = vsel %vm7600_vm6, %v3432_v57, %v5584_v12  ;;  %v2489_v50 = vunpack.c.h.b16 %v2228_v24 }
 0x14c   : > { %1333 = vadd.xlane.f32.xlu0 %v5746_v3  ;;  %v905_v39 = vpop.xlane.xlu1 %904  ;;  %v2292_v3 = vpack.c.bf16 %v1721_v43, %v1720_v6  ;;  %v2890_v51 = vsel %vm2796_vm8, %v2889_v44, %v2885_v58  ;;  %v5911_v6 = vpack.c.bf16 %v1595_v2, %v1594_v0  ;;  %v2790_v12 = vsel %vm7601_vm7, %v2788_v35, %v2783_v47 }
 0x14d   : > { %v902_v15 = vpop.xlane.xlu0 %901  ;;  %v2301_v43 = vpack.c.bf16 %v1739_v7, %v1738_v1  ;;  %v1613_v5 = vmul.f32 0.015625, %v905_v39  ;;  %v3438_v56 = vsel %vm7601_vm7, %v3437_v26, %v3433_v60  ;;  %v2506_v21 = vunpack.c.l.b16 %v2237_v29 }
 0x14e   : > { %v1612_v19 = vmul.f32 0.015625, %v902_v15  ;;  %v2616_v62 = vunpack.c.l.b16 %v2292_v3  ;;  %v2895_v57 = vsel %vm7591_vm9, %v2894_v41, %v2890_v51  ;;  %v2802_v7 = vrot.slane %v2489_v50, %v5693_v23 }
 0x14f   : > { %1006 = vadd.xlane.f32.xlu1 %v5752_v8  ;;  %v3517_v8 = vsel %vm7601_vm7, %v3516_v25, %v3512_v63  ;;  %v3526_v25 = vrot.slane %v2633_v36, %v5693_v23  ;;  %v2634_v58 = vunpack.c.l.b16 %v2301_v43  ;;  %v2617_v1 = vunpack.c.h.b16 %v2292_v3 }
 0x150   : > { %1003 = vadd.xlane.f32.xlu0 %v5755_v53  ;;  %v1289_v52 = vpop.xlane.xlu1 %1288  ;;  %v2795_v53 = vrot.slane %v2488_v22, %v5690_v20  ;;  %v2238_v39 = vpack.c.bf16 %v1613_v5, %v1612_v19  ;;  %v3442_v13 = vrot.slane %v2616_v62, %v5690_v20  ;;  %v2507_v44 = vunpack.c.h.b16 %v2237_v29 }
 0x151   : > { %v1286_v40 = vpop.xlane.xlu0 %1285  ;;  %v1741_v15 = vmul.f32 0.015625, %v1289_v52  ;;  %v2899_v46 = vrot.slane %v2506_v21, %v5706_v33  ;;  %v2635_v22 = vunpack.c.h.b16 %v2301_v43  ;;  %v1723_v2 = vmul.f32 0.015625, %v5861_v37 }
 0x152   : > { %v1740_v63 = vmul.f32 0.015625, %v1286_v40  ;;  %v2797_v35 = vsel %vm2796_vm8, %v2795_v53, %v2790_v12  ;;  %v1722_v0 = vmul.f32 0.015625, %v5863_v48  ;;  %v3531_v36 = vrot.slane %v2634_v58, %v5706_v33 }
 0x153   : > { %1390 = vadd.xlane.f32.xlu1 %v5765_v11  ;;  %v3522_v11 = vsel %vm2796_vm8, %v3521_v61, %v3517_v8  ;;  %v2508_v29 = vunpack.c.l.b16 %v2238_v39  ;;  %v3447_v40 = vrot.slane %v2617_v1, %v5693_v23  ;;  %v3443_v37 = vsel %vm2796_vm8, %v3442_v13, %v3438_v56 }
 0x154   : > { %1387 = vadd.xlane.f32.xlu0 %v5768_v18  ;;  %v857_v24 = vpop.xlane.xlu1 %856  ;;  %v2490_v18 = vunpack.c.l.b16 %v5911_v6  ;;  %v3527_v26 = vsel %vm7591_vm9, %v3526_v25, %v3522_v11  ;;  %v2302_v52 = vpack.c.bf16 %v1741_v15, %v1740_v63  ;;  %v2904_v48 = vrot.slane %v2507_v44, %v5722_v45 }
 0x155   : > { %v854_v59 = vpop.xlane.xlu0 %853  ;;  %v1597_v60 = vmul.f32 0.015625, %v857_v24  ;;  %v2900_v19 = vsel %vm2810_vm10, %v2899_v46, %v2895_v57  ;;  %v3536_v8 = vrot.slane %v2635_v22, %v5722_v45  ;;  %v5940_v41 = vpack.c.bf16 %v1723_v2, %v1722_v0 }
 0x156   : > { %v1596_v43 = vmul.f32 0.015625, %v854_v59  ;;  %v2809_v5 = vrot.slane %v2490_v18, %v5706_v33  ;;  %v2509_v61 = vunpack.c.h.b16 %v2238_v39  ;;  %v3532_v53 = vsel %vm2810_vm10, %v3531_v36, %v3527_v26 }
 0x157   : > { %958 = vadd.xlane.f32.xlu1 %v5793_v55  ;;  %v2804_v55 = vsel %vm7591_vm9, %v2802_v7, %v2797_v35  ;;  %v2909_v62 = vrot.slane %v2508_v29, %v5749_v4  ;;  %v3448_v24 = vsel %vm7591_vm9, %v3447_v40, %v3443_v37  ;;  %v2905_v59 = vsel %vm2817_vm11, %v2904_v48, %v2900_v19 }
 0x158   : > { %955 = vadd.xlane.f32.xlu0 %v5802_v32  ;;  %v1241_v3 = vpop.xlane.xlu1 %1240  ;;  %v2491_v32 = vunpack.c.h.b16 %v5911_v6  ;;  %v2636_v6 = vunpack.c.l.b16 %v2302_v52  ;;  %v5945_v56 = vpack.c.bf16 %v1597_v60, %v1596_v43  ;;  %v2618_v39 = vunpack.c.l.b16 %v5940_v41 }
 0x159   : > { %v1238_v47 = vpop.xlane.xlu0 %1237  ;;  %v2914_v15 = vrot.slane %v2509_v61, %v5762_v54  ;;  %v2637_v63 = vunpack.c.h.b16 %v2302_v52  ;;  %v3537_v1 = vsel %vm2817_vm11, %v3536_v8, %v3532_v53  ;;  %v2910_v44 = vsel %vm2824_vm12, %v2909_v62, %v2905_v59 }
 0x15a   : > { %v1724_v25 = vmul.f32 0.015625, %v1238_v47  ;;  %v2816_v58 = vrot.slane %v2491_v32, %v5722_v45  ;;  %vm4032_vm9 = vcmask 1041409   ;;  %v2492_v18 = vunpack.c.l.b16 %v5945_v56 }
 0x15b   : > { %1342 = vadd.xlane.f32.xlu1 %v5812_v30  ;;  %v1725_v30 = vmul.f32 0.015625, %v1241_v3  ;;  %v3452_v47 = vrot.slane %v2618_v39, %v5706_v33  ;;  %v3546_v26 = vrot.slane %v2637_v63, %v5762_v54  ;;  %v2493_v48 = vunpack.c.h.b16 %v5945_v56  ;;  %v751_v63 = vld [vmem:[%s7570_s0 + $0x600] sm:$0xff] }
 0x15c   : > { %1339 = vadd.xlane.f32.xlu0 %v5815_v27  ;;  %v911_v50 = vpop.xlane.xlu1 %910  ;;  %v2811_v27 = vsel %vm2810_vm10, %v2809_v5, %v2804_v55  ;;  %v2915_v55 = vsel %vm2831_vm13, %v2914_v15, %v2910_v44 }
 0x15d   : > { %v908_v51 = vpop.xlane.xlu0 %907  ;;  %v1615_v12 = vmul.f32 0.015625, %v911_v50  ;;  %v2294_v46 = vpack.c.bf16 %v1725_v30, %v1724_v25  ;;  %v2818_v2 = vsel %vm2817_vm11, %v2816_v58, %v2811_v27  ;;  %v3453_v61 = vsel %vm2810_vm10, %v3452_v47, %v3448_v24 }
 0x15e   : > { %v1614_v21 = vmul.f32 0.015625, %v908_v51 }
 0x15f   : > { %1060 = vadd.xlane.f32.xlu1 %v5818_v28  ;;  %v3541_v28 = vrot.slane %v2636_v6, %v5749_v4  ;;  %v2620_v32 = vunpack.c.l.b16 %v2294_v46  ;;  %v2621_v51 = vunpack.c.h.b16 %v2294_v46 }
 0x160   : > { %v2239_v57 = vpack.c.bf16 %v1615_v12, %v1614_v21  ;;  %1057 = vadd.xlane.f32.xlu0 %v5827_v49  ;;  %v1295_v11 = vpop.xlane.xlu1 %1294  ;;  %v2619_v49 = vunpack.c.h.b16 %v5940_v41 }
 0x161   : > { %v1292_v7 = vpop.xlane.xlu0 %1291  ;;  %v1743_v35 = vmul.f32 0.015625, %v1295_v11  ;;  %v3542_v5 = vsel %vm2824_vm12, %v3541_v28, %v3537_v1  ;;  %v3462_v24 = vrot.slane %v2620_v32, %v5749_v4  ;;  %v3467_v11 = vrot.slane %v2621_v51, %v5762_v54  ;;  %v626_v32 = vld [vmem:[%s7570_s0 + $0x218] sm:$0xff]  ;;  %v6028_v51 = vld [vmem:[%s5221_s6 + $0x110] sm:$0xff] }
 0x162   : > { %v1742_v13 = vmul.f32 0.015625, %v1292_v7  ;;  %v2510_v22 = vunpack.c.l.b16 %v2239_v57  ;;  %v2511_v0 = vunpack.c.h.b16 %v2239_v57  ;;  %v3457_v50 = vrot.slane %v2619_v49, %v5722_v45 }
 0x163   : > { %1444 = vadd.xlane.f32.xlu1 %v5830_v38  ;;  %v2823_v38 = vrot.slane %v2492_v18, %v5749_v4  ;;  %v3547_v25 = vsel %vm2831_vm13, %v3546_v26, %v3542_v5 }
 0x164   : > { %v2303_v3 = vpack.c.bf16 %v1743_v35, %v1742_v13  ;;  %v2919_v36 = vrot.slane %v2510_v22, %v5821_v31  ;;  %1441 = vadd.xlane.f32.xlu0 %v5833_v42  ;;  %v863_v29 = vpop.xlane.xlu1 %862  ;;  %v2924_v19 = vrot.slane %v2511_v0, %v5824_v17  ;;  %v3458_v57 = vsel %vm2817_vm11, %v3457_v50, %v3453_v61  ;;  %v770_v22 = vld [vmem:[%s7570_s0 + $0x698] sm:$0xff] }
 0x165   : > { %v860_v52 = vpop.xlane.xlu0 %859  ;;  %v1599_v43 = vmul.f32 0.015625, %v863_v29  ;;  %v2825_v21 = vsel %vm2824_vm12, %v2823_v38, %v2818_v2  ;;  %v3463_v2 = vsel %vm2824_vm12, %v3462_v24, %v3458_v57  ;;  %v1392_v0 = vsel %vm815_vm0, %v751_v63, 0.0  ;;  %v7616_v29 = vld [vmem:[#allocation13_spill] sm:$0xff]  ;;  %v6047_v57 = vld [vmem:[%s5221_s6 + $0x128] sm:$0xff] }
 0x166   : > { %v2638_v40 = vunpack.c.l.b16 %v2303_v3  ;;  %v2639_v60 = vunpack.c.h.b16 %v2303_v3  ;;  %v1598_v37 = vmul.f32 0.015625, %v860_v52  ;;  %v2920_v6 = vsel %vm2838_vm14, %v2919_v36, %v2915_v55  ;;  %v769_v52 = vld [vmem:[%s7570_s0 + $0x690] sm:$0xff] }
 0x167   : > { %1012 = vadd.xlane.f32.xlu1 %v5866_v16  ;;  %v2830_v16 = vrot.slane %v2493_v48, %v5762_v54  ;;  %v2925_v39 = vsel %vm2845_vm15, %v2924_v19, %v2920_v6  ;;  %v3468_v38 = vsel %vm2831_vm13, %v3467_v11, %v3463_v2  ;;  %v1446_v5 = vsel %vm815_vm0, %v769_v52, 0.0 }
 0x168   : > { %v3551_v8 = vrot.slane %v2638_v40, %v5821_v31  ;;  %v3556_v42 = vrot.slane %v2639_v60, %v5824_v17  ;;  %v2231_v41 = vpack.c.bf16 %v1599_v43, %v1598_v37  ;;  %1009 = vadd.xlane.f32.xlu0 %v5869_v34  ;;  %v1247_v53 = vpop.xlane.xlu1 %1246  ;;  %v7615_v34 = vld [vmem:[#allocation12_spill] sm:$0xff]  ;;  %v1449_v60 = vsel %vm815_vm0, %v770_v22, 0.0 }
 0x169   : > { %v1244_v62 = vpop.xlane.xlu0 %1243  ;;  %v1727_v56 = vmul.f32 0.015625, %v1247_v53  ;;  %v2832_v3 = vsel %vm2831_vm13, %v2830_v16, %v2825_v21 }
 0x16a   : > { %v2494_v12 = vunpack.c.l.b16 %v2231_v41  ;;  %v1726_v30 = vmul.f32 0.015625, %v1244_v62  ;;  %v3552_v59 = vsel %vm2838_vm14, %v3551_v8, %v3547_v25  ;;  %v2495_v27 = vunpack.c.h.b16 %v2231_v41  ;;  %v625_v8 = vld [vmem:[%s7570_s0 + $0x210] sm:$0xff]  ;;  %v754_v25 = vld [vmem:[%s7570_s0 + $0x618] sm:$0xff] }
 0x16b   : > { %1066 = vadd.xlane.f32.xlu1 %v7615_v34  ;;  %v3557_v15 = vsel %vm2845_vm15, %v3556_v42, %v3552_v59  ;;  %v6021_v42 = vld [vmem:[%s5221_s6 + $0x100] sm:$0xff]  ;;  %v2034_v59 = vunpack.c.l.s8.bf16 %v6028_v51  ;;  %v753_v34 = vld [vmem:[%s7570_s0 + $0x610] sm:$0xff] }
 0x16c   : > { %v2295_v58 = vpack.c.bf16 %v1727_v56, %v1726_v30  ;;  %v2837_v7 = vrot.slane %v2494_v12, %v5821_v31  ;;  %1063 = vadd.xlane.f32.xlu0 %v5876_v14  ;;  %v965_v1 = vpop.xlane.xlu1 %964  ;;  %v4034_v13 = vsel %vm4032_vm9, %v3557_v15, %v2925_v39  ;;  %v2844_v14 = vrot.slane %v2495_v27, %v5824_v17  ;;  %v7617_v27 = vld [vmem:[#allocation10_spill] sm:$0xff]  ;;  %v644_v39 = vld [vmem:[%s7570_s0 + $0x2a8] sm:$0xff]  ;;  %v7618_v15 = vld [vmem:[#allocation11_spill] sm:$0xff] }
 0x16d   : > { %v962_v35 = vpop.xlane.xlu0 %961  ;;  %v1633_v18 = vmul.f32 0.015625, %v965_v1  ;;  %v4042_v49 = vpack.c.b16 %v4034_v13, %v4034_v13  ;;  %v1017_v12 = vsel %vm815_vm0, %v626_v32, 0.0  ;;  %v1014_v30 = vsel %vm815_vm0, %v625_v8, 0.0 }
 0x16e   : > { %v2622_v44 = vunpack.c.l.b16 %v2295_v58  ;;  %v2623_v28 = vunpack.c.h.b16 %v2295_v58  ;;  %v1632_v46 = vmul.f32 0.015625, %v962_v35  ;;  %v2839_v43 = vsel %vm2838_vm14, %v2837_v7, %v2832_v3  ;;  %v6068_v3 = vld [vmem:[%s5221_s6 + $0x120] sm:$0xff] }
 0x16f   : > { %1396 = vadd.xlane.f32.xlu1 %v7616_v29  ;;  %4089 = vmatprep.mubr.bf16.mxu0 %v4042_v49  ;;  %v2846_v61 = vsel %vm2845_vm15, %v2844_v14, %v2839_v43  ;;  %v2032_v21 = vunpack.c.l.s8.bf16 %v6021_v42  ;;  %v2037_v58 = vunpack.c.h.s8.bf16 %v7617_v27  ;;  %v2039_v63 = vunpack.c.h.s8.bf16 %v7618_v15  ;;  %v7619_v43 = vld [vmem:[#allocation4_spill] sm:$0xff]  ;;  %v7622_v27 = vld [vmem:[#allocation7_spill] sm:$0xff] }
 0x170   : > { %v3472_v47 = vrot.slane %v2622_v44, %v5821_v31  ;;  %v3477_v26 = vrot.slane %v2623_v28, %v5824_v17  ;;  %v6003_v36 = vpack.c.bf16 %v1633_v18, %v1632_v46  ;;  %4253 = vmatprep.mubr.bf16.mxu1 %v4042_v49  ;;  %v1349_v55 = vpop.xlane.xlu1 %1348  ;;  %1393 = vadd.xlane.f32.xlu0 %v1392_v0  ;;  %v1401_v44 = vsel %vm815_vm0, %v754_v25, 0.0  ;;  %v643_v28 = vld [vmem:[%s7570_s0 + $0x2a0] sm:$0xff]  ;;  %v772_v18 = vld [vmem:[%s7570_s0 + $0x6a8] sm:$0xff]  ;;  %v6061_v46 = vld [vmem:[%s5221_s6 + $0x138] sm:$0xff] }
 0x171   : > { %v1346_v40 = vpop.xlane.xlu0 %1345  ;;  %v1761_v37 = vmul.f32 0.015625, %v1349_v55  ;;  %v771_v49 = vld [vmem:[%s7570_s0 + $0x6a0] sm:$0xff]  ;;  %v2036_v0 = vunpack.c.h.s8.bf16 %v6021_v42  ;;  %v1398_v14 = vsel %vm815_vm0, %v753_v34, 0.0  ;;  %v1068_v52 = vsel %vm815_vm0, %v643_v28, 0.0 }
 0x172   : > { %v1760_v48 = vmul.f32 0.015625, %v1346_v40  ;;  %v3473_v19 = vsel %vm2838_vm14, %v3472_v47, %v3468_v38  ;;  %v2528_v11 = vunpack.c.l.b16 %v6003_v36  ;;  %v2529_v7 = vunpack.c.h.b16 %v6003_v36 }
 0x173   : > { %1450 = vadd.xlane.f32.xlu1 %v1449_v60  ;;  %v3478_v50 = vsel %vm2845_vm15, %v3477_v26, %v3473_v19  ;;  %v1071_v47 = vsel %vm815_vm0, %v644_v39, 0.0  ;;  %v2038_v26 = vunpack.c.h.s8.bf16 %v6028_v51  ;;  %v2041_v36 = vunpack.c.l.s8.bf16 %v6047_v57  ;;  %v6078_v60 = vld [vmem:[%s5221_s6 + $0x130] sm:$0xff]  ;;  %v6106_v39 = vld [vmem:[%s5221_s6 + $0x148] sm:$0xff] }
 0x174   : > { %v6023_v41 = vpack.c.bf16 %v1761_v37, %v1760_v48  ;;  %v917_v53 = vpop.xlane.xlu1 %916  ;;  %v4033_v6 = vsel %vm4032_vm9, %v3478_v50, %v2846_v61  ;;  %1447 = vadd.xlane.f32.xlu0 %v1446_v5  ;;  %v1455_v55 = vsel %vm815_vm0, %v772_v18, 0.0  ;;  %v2043_v40 = vunpack.c.l.s8.bf16 %v6061_v46  ;;  %v7620_v48 = vld [vmem:[#allocation5_spill] sm:$0xff] }
 0x175   : > { %v914_v62 = vpop.xlane.xlu0 %913  ;;  %v1617_v56 = vmul.f32 0.015625, %v917_v53  ;;  %v4041_v24 = vpack.c.b16 %v4033_v6, %v4033_v6  ;;  %v3008_v37 = vrot.slane %v2528_v11, %v7619_v43  ;;  %v3012_v38 = vrot.slane %v2529_v7, %v7620_v48  ;;  %v628_v53 = vld [vmem:[%s7570_s0 + $0x228] sm:$0xff] }
 0x176   : > { %v1616_v16 = vmul.f32 0.015625, %v914_v62  ;;  %v1452_v19 = vsel %vm815_vm0, %v771_v49, 0.0  ;;  %v2040_v8 = vunpack.c.l.s8.bf16 %v6068_v3  ;;  %v627_v62 = vld [vmem:[%s7570_s0 + $0x220] sm:$0xff]  ;;  %v756_v6 = vld [vmem:[%s7570_s0 + $0x628] sm:$0xff]  ;;  %v2045_v25 = vunpack.c.h.s8.bf16 %v6047_v57 }
 0x177   : > { %1018 = vadd.xlane.f32.xlu1 %v1017_v12  ;;  %4090 = vmatmul.mubr.bf16.vlgmr.msra.gmra.mrb[0].mxu0 %v4041_v24  ;;  %v2656_v12 = vunpack.c.l.b16 %v6023_v41  ;;  %v3013_v15 = vsel %vm2747_vm1, %v3012_v38, %v3008_v37  ;;  %v1023_v11 = vsel %vm815_vm0, %v628_v53, 0.0  ;;  %v1020_v7 = vsel %vm815_vm0, %v627_v62, 0.0 }
 0x178   : > { %v6051_v1 = vpack.c.bf16 %v1617_v56, %v1616_v16  ;;  %4254 = vmatmul.mubr.bf16.vlgmr.msra.gmra.mrb[0].mxu1 %v4041_v24  ;;  %v971_v35 = vpop.xlane.xlu1 %970  ;;  %1015 = vadd.xlane.f32.xlu0 %v1014_v30  ;;  %v755_v56 = vld [vmem:[%s7570_s0 + $0x620] sm:$0xff]  ;;  %v2042_v30 = vunpack.c.l.s8.bf16 %v6078_v60  ;;  %v2657_v16 = vunpack.c.h.b16 %v6023_v41  ;;  %v7621_v24 = vld [vmem:[#allocation6_spill] sm:$0xff]  ;;  %v6112_v41 = vsel %vm815_vm0, %v756_v6, 0.0 }
 0x179   : > { %v968_v13 = vpop.xlane.xlu0 %967  ;;  %v1635_v22 = vmul.f32 0.015625, %v971_v35  ;;  %4099 = vmatpush1.bf16.msra.mxu0 %v2032_v21  ;;  %4263 = vmatpush1.bf16.msra.mxu1 %v2034_v59  ;;  %v2047_v21 = vunpack.c.h.s8.bf16 %v6061_v46  ;;  %v646_v35 = vld [vmem:[%s7570_s0 + $0x2b8] sm:$0xff]  ;;  %v6122_v18 = vsel %vm815_vm0, %v755_v56, 0.0  ;;  %v645_v46 = vld [vmem:[%s7570_s0 + $0x2b0] sm:$0xff] }
 0x17a   : > { %v1634_v2 = vmul.f32 0.015625, %v968_v13  ;;  %4100 = vmatprep.subr.bf16.mxu0 %v2037_v58  ;;  %4264 = vmatprep.subr.bf16.mxu1 %v2039_v63  ;;  %v6118_v13 = vld [vmem:[%s5221_s6 + $0x158] sm:$0xff] }
 0x17b   : > { %1402 = vadd.xlane.f32.xlu1 %v1401_v44  ;;  %v2055_v6 = vunpack.c.h.s8.bf16 %v6118_v13 }
 0x17c   : > { %v2249_v29 = vpack.c.bf16 %v1635_v22, %v1634_v2  ;;  %v1301_v32 = vpop.xlane.xlu1 %1300  ;;  %1399 = vadd.xlane.f32.xlu0 %v1398_v14  ;;  %v2044_v22 = vunpack.c.h.s8.bf16 %v6068_v3  ;;  %v6129_v2 = vld [vmem:[%s5221_s6 + $0x140] sm:$0xff]  ;;  %v2046_v14 = vunpack.c.h.s8.bf16 %v6078_v60  ;;  %v6142_v3 = vsel %vm815_vm0, %v646_v35, 0.0 }
 0x17d   : > { %v1298_v5 = vpop.xlane.xlu0 %1297  ;;  %v1745_v50 = vmul.f32 0.015625, %v1301_v32  ;;  %4101 = vmatpush1.bf16.msra.mxu0 %v2036_v0  ;;  %4265 = vmatpush1.bf16.msra.mxu1 %v2038_v26  ;;  %v6137_v26 = vld [vmem:[%s5221_s6 + $0x150] sm:$0xff]  ;;  %v6147_v60 = vsel %vm815_vm0, %v645_v46, 0.0  ;;  %v2048_v32 = vunpack.c.l.s8.bf16 %v6129_v2 }
 0x17e   : > { %v2530_v42 = vunpack.c.l.b16 %v2249_v29  ;;  %v2531_v61 = vunpack.c.h.b16 %v2249_v29  ;;  %v1744_v51 = vmul.f32 0.015625, %v1298_v5  ;;  %4102 = vmatprep.subr.bf16.mxu0 %v2041_v36  ;;  %4266 = vmatprep.subr.bf16.mxu1 %v2043_v40  ;;  %v3640_v36 = vrot.slane %v2656_v12, %v7619_v43  ;;  %v6151_v5 = vld [vmem:[%s5221_s6 + $0x168] sm:$0xff] }
 0x17f   : > { %1072 = vadd.xlane.f32.xlu1 %v1071_v47  ;;  %v2049_v47 = vunpack.c.l.s8.bf16 %v6106_v39  ;;  %v3644_v29 = vrot.slane %v2657_v16, %v7620_v48  ;;  %v2512_v40 = vunpack.c.l.b16 %v6051_v1  ;;  %v2054_v12 = vunpack.c.h.s8.bf16 %v6137_v26 }
 0x180   : > { %v3017_v59 = vrot.slane %v2530_v42, %v7621_v24  ;;  %v3022_v58 = vrot.slane %v2531_v61, %v7622_v27  ;;  %v6103_v34 = vpack.c.bf16 %v1745_v50, %v1744_v51  ;;  %v1355_v63 = vpop.xlane.xlu1 %1354  ;;  %1069 = vadd.xlane.f32.xlu0 %v1068_v52  ;;  %v2051_v52 = vunpack.c.l.s8.bf16 %v6118_v13 }
 0x181   : > { %v1352_v57 = vpop.xlane.xlu0 %1351  ;;  %v1763_v28 = vmul.f32 0.015625, %v1355_v63  ;;  %4103 = vmatpush1.bf16.msra.mxu0 %v2040_v8  ;;  %4267 = vmatpush1.bf16.msra.mxu1 %v2042_v30  ;;  %v2513_v8 = vunpack.c.h.b16 %v6051_v1  ;;  %v2050_v61 = vunpack.c.l.s8.bf16 %v6137_v26  ;;  %v2053_v50 = vunpack.c.h.s8.bf16 %v6106_v39  ;;  %v6168_v39 = vld [vmem:[%s5221_s6 + $0x160] sm:$0xff] }
 0x182   : > { %v3018_v44 = vsel %vm2754_vm2, %v3017_v59, %v3013_v15  ;;  %v1762_v0 = vmul.f32 0.015625, %v1352_v57  ;;  %4104 = vmatprep.subr.bf16.mxu0 %v2045_v25  ;;  %4268 = vmatprep.subr.bf16.mxu1 %v2047_v21  ;;  %v3645_v1 = vsel %vm2747_vm1, %v3644_v29, %v3640_v36  ;;  %v2057_v56 = vunpack.c.l.s8.bf16 %v6151_v5  ;;  %v6171_v15 = vld [vmem:[%s5221_s6 + $0x170] sm:$0xff]  ;;  %v774_v29 = vld [vmem:[%s7570_s0 + $0x6b8] sm:$0xff] }
 0x183   : > { %v6132_v49 = vsel %vm2761_vm3, %v3022_v58, %v3018_v44  ;;  %1456 = vadd.xlane.f32.xlu1 %v1455_v55  ;;  %v2929_v30 = vrot.slane %v2512_v40, %v7619_v43  ;;  %v6165_v58 = vld [vmem:[%s5221_s6 + $0x178] sm:$0xff]  ;;  %v2933_v63 = vrot.slane %v2513_v8, %v7620_v48  ;;  %v2640_v57 = vunpack.c.l.b16 %v6103_v34 }
 0x184   : > { %v2313_v37 = vpack.c.bf16 %v1763_v28, %v1762_v0  ;;  %v923_v38 = vpop.xlane.xlu1 %922  ;;  %1453 = vadd.xlane.f32.xlu0 %v1452_v19  ;;  %v2052_v19 = vunpack.c.h.s8.bf16 %v6129_v2  ;;  %v2059_v0 = vunpack.c.l.s8.bf16 %v6165_v58 }
 0x185   : > { %v1619_v55 = vmul.f32 0.015625, %v923_v38  ;;  %v920_v42 = vpop.xlane.xlu0 %919  ;;  %4105 = vmatpush1.bf16.msra.mxu0 %v2044_v22  ;;  %4269 = vmatpush1.bf16.msra.mxu1 %v2046_v14  ;;  %v2934_v40 = vsel %vm2747_vm1, %v2933_v63, %v2929_v30  ;;  %v2060_v30 = vunpack.c.h.s8.bf16 %v6168_v39 }
 0x186   : > { %v2658_v51 = vunpack.c.l.b16 %v2313_v37  ;;  %v2659_v53 = vunpack.c.h.b16 %v2313_v37  ;;  %v1618_v62 = vmul.f32 0.015625, %v920_v42  ;;  %4106 = vmatprep.subr.bf16.mxu0 %v2049_v47  ;;  %4270 = vmatprep.subr.bf16.mxu1 %v2051_v52  ;;  %v2061_v52 = vunpack.c.h.s8.bf16 %v6151_v5  ;;  %v6199_v5 = vld [vmem:[%s5221_s6 + $0x188] sm:$0xff] }
 0x187   : > { %1024 = vadd.xlane.f32.xlu1 %v1023_v11  ;;  %v2641_v11 = vunpack.c.h.b16 %v6103_v34  ;;  %v2056_v34 = vunpack.c.l.s8.bf16 %v6168_v39  ;;  %v3561_v37 = vrot.slane %v2640_v57, %v7619_v43  ;;  %v2065_v63 = vunpack.c.l.s8.bf16 %v6199_v5 }
 0x188   : > { %v3649_v25 = vrot.slane %v2658_v51, %v7621_v24  ;;  %v3654_v21 = vrot.slane %v2659_v53, %v7622_v27  ;;  %v2241_v16 = vpack.c.bf16 %v1619_v55, %v1618_v62  ;;  %v1307_v59 = vpop.xlane.xlu1 %1306  ;;  %1021 = vadd.xlane.f32.xlu0 %v1020_v7  ;;  %v2058_v7 = vunpack.c.l.s8.bf16 %v6171_v15 }
 0x189   : > { %v1747_v35 = vmul.f32 0.015625, %v1307_v59  ;;  %v1304_v13 = vpop.xlane.xlu0 %1303  ;;  %4107 = vmatpush1.bf16.msra.mxu0 %v2048_v32  ;;  %4271 = vmatpush1.bf16.msra.mxu1 %v2050_v61  ;;  %v3565_v38 = vrot.slane %v2641_v11, %v7620_v48  ;;  %v2063_v62 = vunpack.c.h.s8.bf16 %v6165_v58  ;;  %v629_v59 = vld [vmem:[%s7570_s0 + $0x230] sm:$0xff]  ;;  %v2062_v58 = vunpack.c.h.s8.bf16 %v6171_v15 }
 0x18a   : > { %v3650_v44 = vsel %vm2754_vm2, %v3649_v25, %v3645_v1  ;;  %v2514_v28 = vunpack.c.l.b16 %v2241_v16  ;;  %v2515_v46 = vunpack.c.h.b16 %v2241_v16  ;;  %v1746_v22 = vmul.f32 0.015625, %v1304_v13  ;;  %4108 = vmatprep.subr.bf16.mxu0 %v2053_v50  ;;  %4272 = vmatprep.subr.bf16.mxu1 %v2055_v6  ;;  %v6226_v13 = vld [vmem:[%s5221_s6 + $0x180] sm:$0xff] }
 0x18b   : > { %v6178_v2 = vsel %vm2761_vm3, %v3654_v21, %v3650_v44  ;;  %1408 = vadd.xlane.f32.xlu1 %v6112_v41  ;;  %v773_v41 = vld [vmem:[%s7570_s0 + $0x6b0] sm:$0xff]  ;;  %v3566_v25 = vsel %vm2747_vm1, %v3565_v38, %v3561_v37  ;;  %v2069_v37 = vunpack.c.h.s8.bf16 %v6199_v5 }
 0x18c   : > { %v2938_v14 = vrot.slane %v2514_v28, %v7621_v24  ;;  %v2943_v47 = vrot.slane %v2515_v46, %v7622_v27  ;;  %v2305_v26 = vpack.c.bf16 %v1747_v35, %v1746_v22  ;;  %v977_v36 = vpop.xlane.xlu1 %976  ;;  %1405 = vadd.xlane.f32.xlu0 %v6122_v18  ;;  %v1461_v18 = vsel %vm815_vm0, %v774_v29, 0.0  ;;  %v7623_v46 = vld [vmem:[#allocation8_spill] sm:$0xff] }
 0x18d   : > { %v1637_v32 = vmul.f32 0.015625, %v977_v36  ;;  %v974_v8 = vpop.xlane.xlu0 %973  ;;  %4109 = vmatpush1.bf16.msra.mxu0 %v2052_v19  ;;  %4273 = vmatpush1.bf16.msra.mxu1 %v2054_v12  ;;  %v1458_v53 = vsel %vm815_vm0, %v773_v41, 0.0  ;;  %v757_v41 = vld [vmem:[%s7570_s0 + $0x630] sm:$0xff] }
 0x18e   : > { %v2939_v55 = vsel %vm2754_vm2, %v2938_v14, %v2934_v40  ;;  %v2642_v42 = vunpack.c.l.b16 %v2305_v26  ;;  %v2643_v61 = vunpack.c.h.b16 %v2305_v26  ;;  %v1636_v50 = vmul.f32 0.015625, %v974_v8  ;;  %4110 = vmatprep.subr.bf16.mxu0 %v2057_v56  ;;  %4274 = vmatprep.subr.bf16.mxu1 %v2059_v0  ;;  %v630_v56 = vld [vmem:[%s7570_s0 + $0x238] sm:$0xff]  ;;  %v7624_v0 = vld [vmem:[#allocation9_spill] sm:$0xff] }
 0x18f   : > { %v6202_v51 = vsel %vm2761_vm3, %v2943_v47, %v2939_v55  ;;  %1078 = vadd.xlane.f32.xlu1 %v6142_v3  ;;  %v6215_v3 = vld [vmem:[%s5221_s6 + $0x198] sm:$0xff]  ;;  %v1029_v28 = vsel %vm815_vm0, %v630_v56, 0.0  ;;  %v1026_v47 = vsel %vm815_vm0, %v629_v59, 0.0  ;;  %v648_v56 = vld [vmem:[%s7570_s0 + $0x2c8] sm:$0xff] }
 0x190   : > { %v3570_v6 = vrot.slane %v2642_v42, %v7621_v24  ;;  %v3575_v1 = vrot.slane %v2643_v61, %v7622_v27  ;;  %v2250_v19 = vpack.c.bf16 %v1637_v32, %v1636_v50  ;;  %v1361_v12 = vpop.xlane.xlu1 %1360  ;;  %1075 = vadd.xlane.f32.xlu0 %v6147_v60  ;;  %v6229_v60 = vld [vmem:[%s5221_s6 + $0x190] sm:$0xff]  ;;  %v2067_v15 = vunpack.c.l.s8.bf16 %v6215_v3  ;;  %v758_v26 = vld [vmem:[%s7570_s0 + $0x638] sm:$0xff]  ;;  %v6251_v42 = vld [vmem:[%s5221_s6 + $0x1a8] sm:$0xff] }
 0x191   : > { %v1765_v21 = vmul.f32 0.015625, %v1361_v12  ;;  %v1358_v16 = vpop.xlane.xlu0 %1357  ;;  %4111 = vmatpush1.bf16.msra.mxu0 %v2056_v34  ;;  %4275 = vmatpush1.bf16.msra.mxu1 %v2058_v7  ;;  %v2066_v40 = vunpack.c.l.s8.bf16 %v6229_v60  ;;  %v1413_v50 = vsel %vm815_vm0, %v758_v26, 0.0  ;;  %v2071_v5 = vunpack.c.h.s8.bf16 %v6215_v3 }
 0x192   : > { %v3571_v39 = vsel %vm2754_vm2, %v3570_v6, %v3566_v25  ;;  %v2532_v57 = vunpack.c.l.b16 %v2250_v19  ;;  %v2533_v11 = vunpack.c.h.b16 %v2250_v19  ;;  %v1764_v35 = vmul.f32 0.015625, %v1358_v16  ;;  %4112 = vmatprep.subr.bf16.mxu0 %v2061_v52  ;;  %4276 = vmatprep.subr.bf16.mxu1 %v2063_v62 }
 0x193   : > { %v6232_v44 = vsel %vm2761_vm3, %v3575_v1, %v3571_v39  ;;  %1462 = vadd.xlane.f32.xlu1 %v1461_v18  ;;  %v2064_v52 = vunpack.c.l.s8.bf16 %v6226_v13  ;;  %v1410_v6 = vsel %vm815_vm0, %v757_v41, 0.0  ;;  %v6262_v1 = vld [vmem:[%s5221_s6 + $0x1b8] sm:$0xff]  ;;  %v2070_v3 = vunpack.c.h.s8.bf16 %v6229_v60  ;;  %v1892_v39 = vld [vmem:[%s5221_s6 + $0x1a0] sm:$0xff] }
 0x194   : > { %v3027_v22 = vrot.slane %v2532_v57, %v7623_v46  ;;  %v3032_v34 = vrot.slane %v2533_v11, %v7624_v0  ;;  %v2314_v14 = vpack.c.bf16 %v1765_v21, %v1764_v35  ;;  %v929_v7 = vpop.xlane.xlu1 %928  ;;  %1459 = vadd.xlane.f32.xlu0 %v1458_v53  ;;  %v2073_v25 = vunpack.c.l.s8.bf16 %v6251_v42  ;;  %v1894_v57 = vld [vmem:[%s5221_s6 + $0x1b0] sm:$0xff] }
 0x195   : > { %v1621_v36 = vmul.f32 0.015625, %v929_v7  ;;  %v926_v29 = vpop.xlane.xlu0 %925  ;;  %4113 = vmatpush1.bf16.msra.mxu0 %v2060_v30  ;;  %4277 = vmatpush1.bf16.msra.mxu1 %v2062_v58  ;;  %v2068_v30 = vunpack.c.h.s8.bf16 %v6226_v13  ;;  %v2075_v35 = vunpack.c.l.s8.bf16 %v6262_v1  ;;  %v2072_v7 = vunpack.c.l.s8.bf16 %v1892_v39 }
 0x196   : > { %v3028_v38 = vsel %vm7603_vm4, %v3027_v22, %v6132_v49  ;;  %v2660_v32 = vunpack.c.l.b16 %v2314_v14  ;;  %v2661_v8 = vunpack.c.h.b16 %v2314_v14  ;;  %v1620_v55 = vmul.f32 0.015625, %v926_v29  ;;  %4114 = vmatprep.subr.bf16.mxu0 %v2065_v63  ;;  %4278 = vmatprep.subr.bf16.mxu1 %v2067_v15  ;;  %v647_v63 = vld [vmem:[%s7570_s0 + $0x2c0] sm:$0xff]  ;;  %v776_v14 = vld [vmem:[%s7570_s0 + $0x6c8] sm:$0xff] }
 0x197   : > { %v6254_v61 = vsel %vm7602_vm5, %v3032_v34, %v3028_v38  ;;  %1030 = vadd.xlane.f32.xlu1 %v1029_v28  ;;  %v1083_v15 = vsel %vm815_vm0, %v648_v56, 0.0  ;;  %v1080_v34 = vsel %vm815_vm0, %v647_v63, 0.0  ;;  %v2077_v41 = vunpack.c.h.s8.bf16 %v6251_v42  ;;  %v1897_v38 = vld [vmem:[%s5221_s6 + $0x1c8] sm:$0xff]  ;;  %v1899_v42 = vld [vmem:[%s5221_s6 + $0x1d8] sm:$0xff] }
 0x198   : > { %v3659_v18 = vrot.slane %v2660_v32, %v7623_v46  ;;  %v3664_v49 = vrot.slane %v2661_v8, %v7624_v0  ;;  %v2242_v53 = vpack.c.bf16 %v1621_v36, %v1620_v55  ;;  %v1313_v62 = vpop.xlane.xlu1 %1312  ;;  %1027 = vadd.xlane.f32.xlu0 %v1026_v47  ;;  %v2074_v47 = vunpack.c.l.s8.bf16 %v1894_v57 }
 0x199   : > { %v1749_v19 = vmul.f32 0.015625, %v1313_v62  ;;  %v1310_v12 = vpop.xlane.xlu0 %1309  ;;  %4115 = vmatpush1.bf16.msra.mxu0 %v2064_v52  ;;  %4279 = vmatpush1.bf16.msra.mxu1 %v2066_v40  ;;  %v775_v40 = vld [vmem:[%s7570_s0 + $0x6c0] sm:$0xff]  ;;  %v1467_v55 = vsel %vm815_vm0, %v776_v14, 0.0  ;;  %v2078_v62 = vunpack.c.h.s8.bf16 %v1894_v57  ;;  %v2083_v56 = vunpack.c.l.s8.bf16 %v1899_v42 }
 0x19a   : > { %v3660_v21 = vsel %vm7603_vm4, %v3659_v18, %v6178_v2  ;;  %v2516_v16 = vunpack.c.l.b16 %v2242_v53  ;;  %v2517_v59 = vunpack.c.h.b16 %v2242_v53  ;;  %v1748_v58 = vmul.f32 0.015625, %v1310_v12  ;;  %4116 = vmatprep.subr.bf16.mxu0 %v2069_v37  ;;  %4280 = vmatprep.subr.bf16.mxu1 %v2071_v5  ;;  %v632_v5 = vld [vmem:[%s7570_s0 + $0x248] sm:$0xff]  ;;  %v631_v12 = vld [vmem:[%s7570_s0 + $0x240] sm:$0xff] }
 0x19b   : > { %v6278_v11 = vsel %vm7602_vm5, %v3664_v49, %v3660_v21  ;;  %1414 = vadd.xlane.f32.xlu1 %v1413_v50  ;;  %v2079_v37 = vunpack.c.h.s8.bf16 %v6262_v1  ;;  %v2076_v18 = vunpack.c.h.s8.bf16 %v1892_v39  ;;  %v1464_v53 = vsel %vm815_vm0, %v775_v40, 0.0  ;;  %v1896_v1 = vld [vmem:[%s5221_s6 + $0x1c0] sm:$0xff]  ;;  %v760_v21 = vld [vmem:[%s7570_s0 + $0x648] sm:$0xff]  ;;  %v1902_v40 = vld [vmem:[%s5221_s6 + $0x1f0] sm:$0xff] }
 0x19c   : > { %v2948_v2 = vrot.slane %v2516_v16, %v7623_v46  ;;  %v2953_v13 = vrot.slane %v2517_v59, %v7624_v0  ;;  %v2306_v60 = vpack.c.bf16 %v1749_v19, %v1748_v58  ;;  %v6283_v28 = vpop.xlane.xlu1 %982  ;;  %1411 = vadd.xlane.f32.xlu0 %v1410_v6  ;;  %v2081_v6 = vunpack.c.l.s8.bf16 %v1897_v38  ;;  %v759_v39 = vld [vmem:[%s7570_s0 + $0x640] sm:$0xff] }
 0x19d   : > { %v6286_v22 = vpop.xlane.xlu0 %979  ;;  %4117 = vmatpush1.bf16.msra.mxu0 %v2068_v30  ;;  %4281 = vmatpush1.bf16.msra.mxu1 %v2070_v3  ;;  %v1898_v30 = vld [vmem:[%s5221_s6 + $0x1d0] sm:$0xff]  ;;  %v2080_v16 = vunpack.c.l.s8.bf16 %v1896_v1  ;;  %v1032_v59 = vsel %vm815_vm0, %v631_v12, 0.0  ;;  %v2085_v63 = vunpack.c.h.s8.bf16 %v1897_v38  ;;  %v2087_v57 = vunpack.c.h.s8.bf16 %v1899_v42  ;;  %v634_v12 = vld [vmem:[%s7570_s0 + $0x258] sm:$0xff] }
 0x19e   : > { %v2949_v26 = vsel %vm7603_vm4, %v2948_v2, %v6202_v51  ;;  %v2644_v36 = vunpack.c.l.b16 %v2306_v60  ;;  %v2645_v29 = vunpack.c.h.b16 %v2306_v60  ;;  %4118 = vmatprep.subr.bf16.mxu0 %v2073_v25  ;;  %4282 = vmatprep.subr.bf16.mxu1 %v2075_v35  ;;  %v2082_v58 = vunpack.c.l.s8.bf16 %v1898_v30  ;;  %v1901_v35 = vld [vmem:[%s5221_s6 + $0x1e8] sm:$0xff]  ;;  %v1903_v60 = vld [vmem:[%s5221_s6 + $0x1f8] sm:$0xff] }
 0x19f   : > { %v6296_v52 = vsel %vm7602_vm5, %v2953_v13, %v2949_v26  ;;  %1084 = vadd.xlane.f32.xlu1 %v1083_v15  ;;  %v1419_v13 = vsel %vm815_vm0, %v760_v21, 0.0  ;;  %v2084_v14 = vunpack.c.h.s8.bf16 %v1896_v1  ;;  %v2089_v26 = vunpack.c.l.s8.bf16 %v1901_v35  ;;  %v633_v21 = vld [vmem:[%s7570_s0 + $0x250] sm:$0xff] }
 0x1a0   : > { %v3580_v51 = vrot.slane %v2644_v36, %v7623_v46  ;;  %v3585_v32 = vrot.slane %v2645_v29, %v7624_v0  ;;  %v6305_v8 = vpop.xlane.xlu1 %1366  ;;  %1081 = vadd.xlane.f32.xlu0 %v1080_v34  ;;  %v650_v34 = vld [vmem:[%s7570_s0 + $0x2d8] sm:$0xff]  ;;  %v1900_v36 = vld [vmem:[%s5221_s6 + $0x1e0] sm:$0xff]  ;;  %v649_v29 = vld [vmem:[%s7570_s0 + $0x2d0] sm:$0xff] }
 0x1a1   : > { %v6309_v50 = vpop.xlane.xlu0 %1363  ;;  %4119 = vmatpush1.bf16.msra.mxu0 %v2072_v7  ;;  %4283 = vmatpush1.bf16.msra.mxu1 %v2074_v47  ;;  %v1416_v7 = vsel %vm815_vm0, %v759_v39, 0.0  ;;  %v2086_v47 = vunpack.c.h.s8.bf16 %v1898_v30  ;;  %v1089_v38 = vsel %vm815_vm0, %v650_v34, 0.0  ;;  %v1086_v42 = vsel %vm815_vm0, %v649_v29, 0.0  ;;  %v6386_v39 = vld [vmem:[%s5221_s6 + $0x208] sm:$0xff]  ;;  %v651_v29 = vld [vmem:[%s7570_s0 + $0x2e0] sm:$0xff] }
 0x1a2   : > { %v3581_v49 = vsel %vm7603_vm4, %v3580_v51, %v6232_v44  ;;  %4120 = vmatprep.subr.bf16.mxu0 %v2077_v41  ;;  %4284 = vmatprep.subr.bf16.mxu1 %v2079_v37  ;;  %v1035_v44 = vsel %vm815_vm0, %v632_v5, 0.0  ;;  %v2091_v41 = vunpack.c.l.s8.bf16 %v1903_v60  ;;  %v2090_v5 = vunpack.c.l.s8.bf16 %v1902_v40  ;;  %7625 = vst [vmem:[#allocation12_spill] sm:$0xff] %v6386_v39 }
 0x1a3   : > { %v6319_v19 = vsel %vm7602_vm5, %v3585_v32, %v3581_v49  ;;  %1468 = vadd.xlane.f32.xlu1 %v1467_v55  ;;  %v778_v32 = vld [vmem:[%s7570_s0 + $0x6d8] sm:$0xff]  ;;  %v2088_v55 = vunpack.c.l.s8.bf16 %v1900_v36  ;;  %v777_v49 = vld [vmem:[%s7570_s0 + $0x6d0] sm:$0xff] }
 0x1a4   : > { %v6325_v3 = vpop.xlane.xlu1 %934  ;;  %1465 = vadd.xlane.f32.xlu0 %v1464_v53  ;;  %v2095_v53 = vunpack.c.h.s8.bf16 %v1903_v60  ;;  %v1470_v30 = vsel %vm815_vm0, %v777_v49, 0.0  ;;  %v2097_v60 = vunpack.c.l.s8.bf16 %v6386_v39  ;;  %v764_v49 = vld [vmem:[%s7570_s0 + $0x668] sm:$0xff] }
 0x1a5   : > { %v6328_v25 = vpop.xlane.xlu0 %931  ;;  %4121 = vmatpush1.bf16.msra.mxu0 %v2076_v18  ;;  %4285 = vmatpush1.bf16.msra.mxu1 %v2078_v62  ;;  %v2093_v18 = vunpack.c.h.s8.bf16 %v1901_v35  ;;  %v1038_v35 = vsel %vm815_vm0, %v633_v21, 0.0  ;;  %v782_v21 = vld [vmem:[%s7570_s0 + $0x6f8] sm:$0xff] }
 0x1a6   : > { %4122 = vmatprep.subr.bf16.mxu0 %v2081_v6  ;;  %4286 = vmatprep.subr.bf16.mxu1 %v2083_v56  ;;  %v1473_v6 = vsel %vm815_vm0, %v778_v32, 0.0  ;;  %v2092_v56 = vunpack.c.h.s8.bf16 %v1900_v36  ;;  %v635_v32 = vld [vmem:[%s7570_s0 + $0x260] sm:$0xff] }
 0x1a7   : > { %1036 = vadd.xlane.f32.xlu1 %v1035_v44  ;;  %v2094_v44 = vunpack.c.h.s8.bf16 %v1902_v40  ;;  %v779_v40 = vld [vmem:[%s7570_s0 + $0x6e0] sm:$0xff] }
 0x1a8   : > { %v6338_v2 = vpop.xlane.xlu1 %1318  ;;  %1033 = vadd.xlane.f32.xlu0 %v1032_v59  ;;  %v1041_v59 = vsel %vm815_vm0, %v634_v12, 0.0  ;;  %v1623_v12 = vmul.f32 0.015625, %v6325_v3 }
 0x1a9   : > { %v6342_v15 = vpop.xlane.xlu0 %1315  ;;  %4123 = vmatpush1.bf16.msra.mxu0 %v2080_v16  ;;  %4287 = vmatpush1.bf16.msra.mxu1 %v2082_v58 }
 0x1aa   : > { %4124 = vmatprep.subr.bf16.mxu0 %v2085_v63  ;;  %4288 = vmatprep.subr.bf16.mxu1 %v2087_v57  ;;  %v762_v63 = vld [vmem:[%s7570_s0 + $0x658] sm:$0xff] }
 0x1ab   : > { %1420 = vadd.xlane.f32.xlu1 %v1419_v13  ;;  %v6389_v57 = vld [vmem:[%s5221_s6 + $0x218] sm:$0xff]  ;;  %v761_v13 = vld [vmem:[%s7570_s0 + $0x650] sm:$0xff] }
 0x1ac   : > { %v6353_v37 = vpop.xlane.xlu1 %988  ;;  %1417 = vadd.xlane.f32.xlu0 %v1416_v7  ;;  %7626 = vst [vmem:[#allocation13_spill] sm:$0xff] %v6389_v57  ;;  %v2099_v34 = vunpack.c.l.s8.bf16 %v6389_v57  ;;  %v1425_v7 = vsel %vm815_vm0, %v762_v63, 0.0  ;;  %v1422_v36 = vsel %vm815_vm0, %v761_v13, 0.0  ;;  %v6455_v63 = vsel %vm815_vm0, %v635_v32, 0.0 }
 0x1ad   : > { %v6356_v51 = vpop.xlane.xlu0 %985  ;;  %4125 = vmatpush1.bf16.msra.mxu0 %v2084_v14  ;;  %4289 = vmatpush1.bf16.msra.mxu1 %v2086_v47 }
 0x1ae   : > { %4126 = vmatprep.subr.bf16.mxu0 %v2089_v26  ;;  %4290 = vmatprep.subr.bf16.mxu1 %v2091_v41  ;;  %v652_v26 = vld [vmem:[%s7570_s0 + $0x2e8] sm:$0xff] }
 0x1af   : > { %1090 = vadd.xlane.f32.xlu1 %v1089_v38  ;;  %v780_v41 = vld [vmem:[%s7570_s0 + $0x6e8] sm:$0xff] }
 0x1b0   : > { %v6365_v62 = vpop.xlane.xlu1 %1372  ;;  %1087 = vadd.xlane.f32.xlu0 %v1086_v42  ;;  %v636_v38 = vld [vmem:[%s7570_s0 + $0x268] sm:$0xff]  ;;  %v1638_v42 = vmul.f32 0.015625, %v6286_v22  ;;  %v1766_v22 = vmul.f32 0.015625, %v6309_v50  ;;  %v1476_v50 = vsel %vm815_vm0, %v779_v40, 0.0  ;;  %v6483_v40 = vsel %vm815_vm0, %v782_v21, 0.0 }
 0x1b1   : > { %v6368_v1 = vpop.xlane.xlu0 %1369  ;;  %4127 = vmatpush1.bf16.msra.mxu0 %v2088_v55  ;;  %4291 = vmatpush1.bf16.msra.mxu1 %v2090_v5  ;;  %v1639_v55 = vmul.f32 0.015625, %v6283_v28  ;;  %v1767_v28 = vmul.f32 0.015625, %v6305_v8  ;;  %v1479_v8 = vsel %vm815_vm0, %v780_v41, 0.0  ;;  %v1047_v3 = vsel %vm815_vm0, %v636_v38, 0.0  ;;  %v765_v38 = vld [vmem:[%s7570_s0 + $0x670] sm:$0xff] }
 0x1b2   : > { %4128 = vmatprep.subr.bf16.mxu0 %v2093_v18  ;;  %4292 = vmatprep.subr.bf16.mxu1 %v2095_v53  ;;  %v1095_v18 = vsel %vm815_vm0, %v652_v26, 0.0  ;;  %v763_v53 = vld [vmem:[%s7570_s0 + $0x660] sm:$0xff]  ;;  %v1641_v21 = vmul.f32 0.015625, %v6353_v37 }
 0x1b3   : > { %1474 = vadd.xlane.f32.xlu1 %v1473_v6  ;;  %v654_v6 = vld [vmem:[%s7570_s0 + $0x2f8] sm:$0xff]  ;;  %v6461_v13 = vsel %vm815_vm0, %v763_v53, 0.0  ;;  %v6472_v26 = vpack.c.bf16 %v1639_v55, %v1638_v42  ;;  %v6488_v32 = vpack.c.bf16 %v1767_v28, %v1766_v22  ;;  %v1751_v55 = vmul.f32 0.015625, %v6338_v2  ;;  %v672_v53 = vld [vmem:[%s7570_s0 + $0x388] sm:$0xff] }
 0x1b4   : > { %v6377_v16 = vpop.xlane.xlu1 %940  ;;  %1471 = vadd.xlane.f32.xlu0 %v1470_v30  ;;  %v1750_v42 = vmul.f32 0.015625, %v6342_v15  ;;  %v800_v28 = vld [vmem:[%s7570_s0 + $0x788] sm:$0xff] }
 0x1b5   : > { %v6380_v58 = vpop.xlane.xlu0 %937  ;;  %4129 = vmatpush1.bf16.msra.mxu0 %v2092_v56  ;;  %4293 = vmatpush1.bf16.msra.mxu1 %v2094_v44  ;;  %v1622_v56 = vmul.f32 0.015625, %v6328_v25  ;;  %v653_v44 = vld [vmem:[%s7570_s0 + $0x2f0] sm:$0xff]  ;;  %v2534_v37 = vunpack.c.l.b16 %v6472_v26  ;;  %v2662_v46 = vunpack.c.l.b16 %v6488_v32  ;;  %v2663_v39 = vunpack.c.h.b16 %v6488_v32 }
 0x1b6   : > { %4139 = vmatprep.subr.bf16.mxu0 %v2097_v60  ;;  %4303 = vmatprep.subr.bf16.mxu1 %v2099_v34  ;;  %v781_v25 = vld [vmem:[%s7570_s0 + $0x6f0] sm:$0xff]  ;;  %v638_v60 = vld [vmem:[%s7570_s0 + $0x278] sm:$0xff]  ;;  %v6480_v41 = vsel %vm815_vm0, %v653_v44, 0.0  ;;  %v656_v44 = vld [vmem:[%s7570_s0 + $0x308] sm:$0xff]  ;;  %v6551_v24 = vpack.c.bf16 %v1751_v55, %v1750_v42  ;;  %v2535_v55 = vunpack.c.h.b16 %v6472_v26 }
 0x1b7   : > { %1042 = vadd.xlane.f32.xlu1 %v1041_v59  ;;  %v1092_v59 = vsel %vm815_vm0, %v651_v29, 0.0  ;;  %v637_v34 = vld [vmem:[%s7570_s0 + $0x270] sm:$0xff]  ;;  %v6477_v29 = vsel %vm815_vm0, %v654_v6, 0.0  ;;  %v671_v6 = vld [vmem:[%s7570_s0 + $0x380] sm:$0xff]  ;;  %v6506_v22 = vsel %vm815_vm0, %v781_v25, 0.0  ;;  %v6509_v2 = vsel %vm815_vm0, %v638_v60, 0.0 }
 0x1b8   : > { %v6397_v14 = vpop.xlane.xlu1 %1324  ;;  %1039 = vadd.xlane.f32.xlu0 %v1038_v35  ;;  %v6458_v35 = vsel %vm815_vm0, %v764_v49, 0.0  ;;  %v6512_v15 = vsel %vm815_vm0, %v637_v34, 0.0  ;;  %v6526_v25 = vsel %vm815_vm0, %v765_v38, 0.0  ;;  %v655_v60 = vld [vmem:[%s7570_s0 + $0x300] sm:$0xff]  ;;  %v674_v34 = vld [vmem:[%s7570_s0 + $0x398] sm:$0xff]  ;;  %v6547_v38 = vsel %vm815_vm0, %v800_v28, 0.0 }
 0x1b9   : > { %v6400_v47 = vpop.xlane.xlu0 %1321  ;;  %v6563_v28 = vsel %vm815_vm0, %v674_v34, 0.0  ;;  %v1624_v34 = vmul.f32 0.015625, %v6380_v58  ;;  %v784_v26 = vld [vmem:[%s7570_s0 + $0x708] sm:$0xff] }
 0x1ba   : > { %7628 = vst [vmem:[#allocation11_spill] sm:$0xff] %v6563_v28 }
 0x1bb   : > { %1426 = vadd.xlane.f32.xlu1 %v1425_v7  ;;  %v766_v7 = vld [vmem:[%s7570_s0 + $0x678] sm:$0xff] }
 0x1bc   : > { %v6423_v5 = vpop.xlane.xlu1 %994  ;;  %1423 = vadd.xlane.f32.xlu0 %v1422_v36 }
 0x1bd   : > { %v6439_v30 = vpop.xlane.xlu0 %991 }
 0x1bf   : > { %1096 = vadd.xlane.f32.xlu1 %v1095_v18  ;;  %v6490_v18 = vpack.c.bf16 %v1623_v12, %v1622_v56  ;;  %v6515_v12 = vsel %vm815_vm0, %v766_v7, 0.0  ;;  %v799_v56 = vld [vmem:[%s7570_s0 + $0x780] sm:$0xff]  ;;  %v673_v7 = vld [vmem:[%s7570_s0 + $0x390] sm:$0xff] }
 0x1c0   : > { %v6474_v36 = vpop.xlane.xlu1 %1378  ;;  %1093 = vadd.xlane.f32.xlu0 %v1092_v59  ;;  %v1640_v59 = vmul.f32 0.015625, %v6356_v51  ;;  %v6541_v51 = vsel %vm815_vm0, %v672_v53, 0.0  ;;  %v6554_v43 = vsel %vm815_vm0, %v799_v56, 0.0  ;;  %v6557_v53 = vsel %vm815_vm0, %v656_v44, 0.0 }
 0x1c1   : > { %v6494_v49 = vpop.xlane.xlu0 %1375  ;;  %v2518_v27 = vunpack.c.l.b16 %v6490_v18  ;;  %v6566_v57 = vsel %vm815_vm0, %v673_v7, 0.0  ;;  %v1768_v56 = vmul.f32 0.015625, %v6368_v1  ;;  %v3037_v44 = vrot.slane %v2534_v37, %v5674_v9 }
 0x1c2   : > { %7629 = vst [vmem:[#allocation14_spill] sm:$0xff] %v6566_v57  ;;  %v2252_v42 = vpack.c.bf16 %v1641_v21, %v1640_v59  ;;  %v3669_v1 = vrot.slane %v2662_v46, %v5674_v9  ;;  %v1753_v21 = vmul.f32 0.015625, %v6397_v14  ;;  %v1752_v59 = vmul.f32 0.015625, %v6400_v47 }
 0x1c3   : > { %1480 = vadd.xlane.f32.xlu1 %v1479_v8  ;;  %v6544_v8 = vsel %vm815_vm0, %v671_v6, 0.0  ;;  %v6560_v6 = vsel %vm815_vm0, %v655_v60, 0.0  ;;  %v1625_v60 = vmul.f32 0.015625, %v6377_v16  ;;  %v2958_v32 = vrot.slane %v2518_v27, %v5674_v9 }
 0x1c4   : > { %v6538_v0 = vpop.xlane.xlu1 %946  ;;  %1477 = vadd.xlane.f32.xlu0 %v1476_v50  ;;  %7627 = vst [vmem:[#allocation10_spill] sm:$0xff] %v6560_v6  ;;  %v1769_v50 = vmul.f32 0.015625, %v6365_v62  ;;  %v783_v62 = vld [vmem:[%s7570_s0 + $0x700] sm:$0xff]  ;;  %v2646_v16 = vunpack.c.l.b16 %v6551_v24  ;;  %v1643_v7 = vmul.f32 0.015625, %v6423_v5  ;;  %v1642_v37 = vmul.f32 0.015625, %v6439_v30 }
 0x1c5   : > { %v944_v48 = vpop.xlane.xlu0 %943  ;;  %v2536_v57 = vunpack.c.l.b16 %v2252_v42  ;;  %v6596_v27 = vsel %vm815_vm0, %v784_v26, 0.0  ;;  %v3042_v14 = vrot.slane %v2535_v55, %v5677_v10  ;;  %v3674_v47 = vrot.slane %v2663_v39, %v5677_v10 }
 0x1c6   : > { %v2316_v46 = vpack.c.bf16 %v1769_v50, %v1768_v56  ;;  %v2244_v5 = vpack.c.bf16 %v1625_v60, %v1624_v34  ;;  %v3670_v30 = vsel %vm7600_vm6, %v3669_v1, %v6278_v11  ;;  %v2647_v50 = vunpack.c.h.b16 %v6551_v24 }
 0x1c7   : > { %1048 = vadd.xlane.f32.xlu1 %v1047_v3  ;;  %v2519_v3 = vunpack.c.h.b16 %v6490_v18  ;;  %v6599_v18 = vsel %vm815_vm0, %v783_v62, 0.0  ;;  %v3590_v56 = vrot.slane %v2646_v16, %v5674_v9  ;;  %v2537_v55 = vunpack.c.h.b16 %v2252_v42 }
 0x1c8   : > { %v6575_v28 = vpop.xlane.xlu1 %1330  ;;  %1045 = vadd.xlane.f32.xlu0 %v6455_v63  ;;  %v3038_v63 = vsel %vm7600_vm6, %v3037_v44, %v6254_v61  ;;  %v2959_v61 = vsel %vm7600_vm6, %v2958_v32, %v6296_v52  ;;  %v2308_v44 = vpack.c.bf16 %v1753_v21, %v1752_v59  ;;  %v2253_v39 = vpack.c.bf16 %v1643_v7, %v1642_v37 }
 0x1c9   : > { %v6588_v58 = vpop.xlane.xlu0 %1327  ;;  %v3047_v60 = vrot.slane %v2536_v57, %v5690_v20  ;;  %v2664_v34 = vunpack.c.l.b16 %v2316_v46  ;;  %v1771_v11 = vmul.f32 0.015625, %v6474_v36  ;;  %v1770_v62 = vmul.f32 0.015625, %v6494_v49 }
 0x1ca   : > { %v3043_v24 = vsel %vm7601_vm7, %v3042_v14, %v3038_v63  ;;  %v2520_v1 = vunpack.c.l.b16 %v2244_v5  ;;  %v3675_v52 = vsel %vm7601_vm7, %v3674_v47, %v3670_v30  ;;  %v3591_v57 = vsel %vm7600_vm6, %v3590_v56, %v6319_v19 }
 0x1cb   : > { %1432 = vadd.xlane.f32.xlu1 %v6458_v35  ;;  %v2963_v35 = vrot.slane %v2519_v3, %v5677_v10  ;;  %v1626_v3 = vmul.f32 0.015625, %v944_v48  ;;  %v3595_v36 = vrot.slane %v2647_v50, %v5677_v10  ;;  %v2665_v32 = vunpack.c.h.b16 %v2316_v46 }
 0x1cc   : > { %v1001_v6 = vpop.xlane.xlu1 %1000  ;;  %1429 = vadd.xlane.f32.xlu0 %v6461_v13  ;;  %v1627_v13 = vmul.f32 0.015625, %v6538_v0  ;;  %v2648_v21 = vunpack.c.l.b16 %v2308_v44  ;;  %v2538_v59 = vunpack.c.l.b16 %v2253_v39  ;;  %v3048_v48 = vsel %vm2796_vm8, %v3047_v60, %v3043_v24 }
 0x1cd   : > { %v998_v26 = vpop.xlane.xlu0 %997  ;;  %v2964_v42 = vsel %vm7601_vm7, %v2963_v35, %v2959_v61  ;;  %v3679_v0 = vrot.slane %v2664_v34, %v5690_v20  ;;  %v2521_v7 = vunpack.c.h.b16 %v2244_v5  ;;  %v2317_v37 = vpack.c.bf16 %v1771_v11, %v1770_v62 }
 0x1ce   : > { %v2968_v19 = vrot.slane %v2520_v1, %v5690_v20  ;;  %v2245_v63 = vpack.c.bf16 %v1627_v13, %v1626_v3  ;;  %v1645_v14 = vmul.f32 0.015625, %v1001_v6  ;;  %v1644_v47 = vmul.f32 0.015625, %v998_v26 }
 0x1cf   : > { %1102 = vadd.xlane.f32.xlu1 %v6477_v29  ;;  %v3052_v29 = vrot.slane %v2537_v55, %v5693_v23  ;;  %v2649_v30 = vunpack.c.h.b16 %v2308_v44  ;;  %v2539_v35 = vunpack.c.h.b16 %v2253_v39  ;;  %v3596_v61 = vsel %vm7601_vm7, %v3595_v36, %v3591_v57 }
 0x1d0   : > { %v1385_v16 = vpop.xlane.xlu1 %1384  ;;  %1099 = vadd.xlane.f32.xlu0 %v6480_v41  ;;  %v3684_v5 = vrot.slane %v2665_v32, %v5693_v23  ;;  %v3600_v55 = vrot.slane %v2648_v21, %v5690_v20  ;;  %vm7630_vm6 = vcmask 654912   ;;  %v3680_v6 = vsel %vm2796_vm8, %v3679_v0, %v3675_v52 }
 0x1d1   : > { %v1382_v49 = vpop.xlane.xlu0 %1381  ;;  %v1773_v50 = vmul.f32 0.015625, %v1385_v16  ;;  %v3053_v60 = vsel %vm7630_vm6, %v3052_v29, %v3048_v48  ;;  %v2973_v26 = vrot.slane %v2521_v7, %v5693_v23  ;;  %v2666_v44 = vunpack.c.l.b16 %v2317_v37  ;;  %vm7631_vm7 = vmmov %vm7630_vm6 }
 0x1d2   : > { %v1772_v46 = vmul.f32 0.015625, %v1382_v49  ;;  %v2522_v39 = vunpack.c.l.b16 %v2245_v63  ;;  %v1754_v34 = vmul.f32 0.015625, %v6588_v58  ;;  %v2254_v11 = vpack.c.bf16 %v1645_v14, %v1644_v47 }
 0x1d3   : > { %1486 = vadd.xlane.f32.xlu1 %v6483_v40  ;;  %v3057_v40 = vrot.slane %v2538_v59, %v5706_v33  ;;  %v2969_v24 = vsel %vm2796_vm8, %v2968_v19, %v2964_v42  ;;  %v3605_v1 = vrot.slane %v2649_v30, %v5693_v23  ;;  %v3062_v13 = vrot.slane %v2539_v35, %v5722_v45 }
 0x1d4   : > { %v953_v41 = vpop.xlane.xlu1 %952  ;;  %1483 = vadd.xlane.f32.xlu0 %v6506_v22  ;;  %v1755_v22 = vmul.f32 0.015625, %v6575_v28  ;;  %v2318_v3 = vpack.c.bf16 %v1773_v50, %v1772_v46  ;;  %v3685_v52 = vsel %vm7630_vm6, %v3684_v5, %v3680_v6  ;;  %v2667_v57 = vunpack.c.h.b16 %v2317_v37 }
 0x1d5   : > { %v950_v56 = vpop.xlane.xlu0 %949  ;;  %v3058_v28 = vsel %vm2810_vm10, %v3057_v40, %v3053_v60  ;;  %v3689_v58 = vrot.slane %v2666_v44, %v5706_v33  ;;  %v2523_v36 = vunpack.c.h.b16 %v2245_v63  ;;  %v1629_v49 = vmul.f32 0.015625, %v953_v41 }
 0x1d6   : > { %v1628_v42 = vmul.f32 0.015625, %v950_v56  ;;  %v2974_v29 = vsel %vm7631_vm7, %v2973_v26, %v2969_v24  ;;  %v2978_v32 = vrot.slane %v2522_v39, %v5706_v33  ;;  %v2540_v21 = vunpack.c.l.b16 %v2254_v11 }
 0x1d7   : > { %1054 = vadd.xlane.f32.xlu1 %v6509_v2  ;;  %v3601_v2 = vsel %vm2796_vm8, %v3600_v55, %v3596_v61  ;;  %v3063_v0 = vsel %vm2817_vm11, %v3062_v13, %v3058_v28  ;;  %v2668_v7 = vunpack.c.l.b16 %v2318_v3  ;;  %v3694_v63 = vrot.slane %v2667_v57, %v5722_v45 }
 0x1d8   : > { %v1337_v62 = vpop.xlane.xlu1 %1336  ;;  %1051 = vadd.xlane.f32.xlu0 %v6512_v15  ;;  %v2309_v15 = vpack.c.bf16 %v1755_v22, %v1754_v34  ;;  %v3606_v48 = vsel %vm7630_vm6, %v3605_v1, %v3601_v2  ;;  %v3690_v41 = vsel %vm2810_vm10, %v3689_v58, %v3685_v52  ;;  %v2983_v30 = vrot.slane %v2523_v36, %v5722_v45 }
 0x1d9   : > { %v1334_v16 = vpop.xlane.xlu0 %1333  ;;  %v1757_v14 = vmul.f32 0.015625, %v1337_v62  ;;  %v2541_v35 = vunpack.c.h.b16 %v2254_v11  ;;  %v2246_v50 = vpack.c.bf16 %v1629_v49, %v1628_v42  ;;  %v2979_v46 = vsel %vm2810_vm10, %v2978_v32, %v2974_v29 }
 0x1da   : > { %v2650_v56 = vunpack.c.l.b16 %v2309_v15  ;;  %v2651_v55 = vunpack.c.h.b16 %v2309_v15  ;;  %v2669_v40 = vunpack.c.h.b16 %v2318_v3  ;;  %v3699_v60 = vrot.slane %v2668_v7, %v5749_v4 }
 0x1db   : > { %1438 = vadd.xlane.f32.xlu1 %v6515_v12  ;;  %v1756_v12 = vmul.f32 0.015625, %v1334_v16  ;;  %v3695_v44 = vsel %vm2817_vm11, %v3694_v63, %v3690_v41  ;;  %v2984_v34 = vsel %vm2817_vm11, %v2983_v30, %v2979_v46  ;;  %v3072_v11 = vrot.slane %v2541_v35, %v5762_v54 }
 0x1dc   : > { %v1007_v59 = vpop.xlane.xlu1 %1006  ;;  %1435 = vadd.xlane.f32.xlu0 %v6526_v25  ;;  %v3067_v25 = vrot.slane %v2540_v21, %v5749_v4  ;;  %v2524_v62 = vunpack.c.l.b16 %v2246_v50  ;;  %v3610_v1 = vrot.slane %v2650_v56, %v5706_v33  ;;  %v3615_v52 = vrot.slane %v2651_v55, %v5722_v45 }
 0x1dd   : > { %v1647_v37 = vmul.f32 0.015625, %v1007_v59  ;;  %v1004_v19 = vpop.xlane.xlu0 %1003  ;;  %v2310_v39 = vpack.c.bf16 %v1757_v14, %v1756_v12  ;;  %v3700_v2 = vsel %vm2824_vm12, %v3699_v60, %v3695_v44  ;;  %v3704_v28 = vrot.slane %v2669_v40, %v5762_v54  ;;  %v7632_v14 = vld [vmem:[#allocation10_spill] sm:$0xff] }
 0x1de   : > { %v1646_v47 = vmul.f32 0.015625, %v1004_v19  ;;  %v3068_v13 = vsel %vm2824_vm12, %v3067_v25, %v3063_v0  ;;  %v2525_v29 = vunpack.c.h.b16 %v2246_v50  ;;  %v2988_v32 = vrot.slane %v2524_v62, %v5749_v4  ;;  %v7633_v25 = vld [vmem:[#allocation11_spill] sm:$0xff] }
 0x1df   : > { %1156 = vadd.xlane.f32.xlu1 %v6541_v51  ;;  %v2652_v36 = vunpack.c.l.b16 %v2310_v39  ;;  %v3073_v21 = vsel %vm2831_vm13, %v3072_v11, %v3068_v13  ;;  %v3611_v19 = vsel %vm2810_vm10, %v3610_v1, %v3606_v48  ;;  %v2653_v63 = vunpack.c.h.b16 %v2310_v39  ;;  %v7634_v39 = vld [vmem:[#allocation14_spill] sm:$0xff] }
 0x1e0   : > { %v2255_v61 = vpack.c.bf16 %v1647_v37, %v1646_v47  ;;  %v1391_v5 = vpop.xlane.xlu1 %1390  ;;  %1153 = vadd.xlane.f32.xlu0 %v6544_v8  ;;  %v3705_v41 = vsel %vm2831_vm13, %v3704_v28, %v3700_v2  ;;  %v2993_v46 = vrot.slane %v2525_v29, %v5762_v54  ;;  %v802_v13 = vld [vmem:[%s7570_s0 + $0x798] sm:$0xff]  ;;  %v1904_v29 = vld [vmem:[%s5221_s6 + $0x200] sm:$0xff]  ;;  %vm7643_vm7 = vcmask 458112  }
 0x1e1   : > { %v1775_v6 = vmul.f32 0.015625, %v1391_v5  ;;  %v1388_v26 = vpop.xlane.xlu0 %1387  ;;  %v2989_v5 = vsel %vm2824_vm12, %v2988_v32, %v2984_v34  ;;  %v3625_v44 = vrot.slane %v2653_v63, %v5762_v54  ;;  %v2096_v63 = vunpack.c.l.s8.bf16 %v1904_v29  ;;  %vm7644_vm6 = vmmov %vm7643_vm7 }
 0x1e2   : > { %v2542_v22 = vunpack.c.l.b16 %v2255_v61  ;;  %v1774_v51 = vmul.f32 0.015625, %v1388_v26  ;;  %v2543_v24 = vunpack.c.h.b16 %v2255_v61  ;;  %v3616_v26 = vsel %vm2817_vm11, %v3615_v52, %v3611_v19 }
 0x1e3   : > { %1540 = vadd.xlane.f32.xlu1 %v6547_v38 }
 0x1e4   : > { %v3077_v8 = vrot.slane %v2542_v22, %v5821_v31  ;;  %v2319_v3 = vpack.c.bf16 %v1775_v6, %v1774_v51  ;;  %v959_v16 = vpop.xlane.xlu1 %958  ;;  %1537 = vadd.xlane.f32.xlu0 %v6554_v43  ;;  %v3082_v15 = vrot.slane %v2543_v24, %v5824_v17 }
 0x1e5   : > { %v1631_v57 = vmul.f32 0.015625, %v959_v16  ;;  %v956_v58 = vpop.xlane.xlu0 %955  ;;  %v801_v16 = vld [vmem:[%s7570_s0 + $0x790] sm:$0xff] }
 0x1e6   : > { %v2670_v38 = vunpack.c.l.b16 %v2319_v3  ;;  %v2671_v49 = vunpack.c.h.b16 %v2319_v3  ;;  %v1630_v42 = vmul.f32 0.015625, %v956_v58  ;;  %v3078_v37 = vsel %vm2838_vm14, %v3077_v8, %v3073_v21 }
 0x1e7   : > { %1108 = vadd.xlane.f32.xlu1 %v6557_v53  ;;  %v3620_v53 = vrot.slane %v2652_v36, %v5749_v4  ;;  %v3083_v48 = vsel %vm2845_vm15, %v3082_v15, %v3078_v37  ;;  %v2994_v8 = vsel %vm2831_vm13, %v2993_v46, %v2989_v5  ;;  %v1542_v15 = vsel %vm815_vm0, %v801_v16, 0.0  ;;  %v7635_v46 = vld [vmem:[#allocation12_spill] sm:$0xff] }
 0x1e8   : > { %v3709_v59 = vrot.slane %v2670_v38, %v5821_v31  ;;  %v3714_v0 = vrot.slane %v2671_v49, %v5824_v17  ;;  %v2247_v43 = vpack.c.bf16 %v1631_v57, %v1630_v42  ;;  %v1343_v7 = vpop.xlane.xlu1 %1342  ;;  %1105 = vadd.xlane.f32.xlu0 %v7632_v14  ;;  %v1545_v42 = vsel %vm815_vm0, %v802_v13, 0.0  ;;  %v6743_v5 = vld [vmem:[%s5221_s6 + $0x228] sm:$0xff] }
 0x1e9   : > { %v1759_v12 = vmul.f32 0.015625, %v1343_v7  ;;  %v1340_v47 = vpop.xlane.xlu0 %1339  ;;  %v3621_v62 = vsel %vm2824_vm12, %v3620_v53, %v3616_v26  ;;  %v786_v53 = vld [vmem:[%s7570_s0 + $0x718] sm:$0xff]  ;;  %v676_v26 = vld [vmem:[%s7570_s0 + $0x3a8] sm:$0xff] }
 0x1ea   : > { %v2526_v30 = vunpack.c.l.b16 %v2247_v43  ;;  %v1758_v35 = vmul.f32 0.015625, %v1340_v47  ;;  %v3710_v50 = vsel %vm2838_vm14, %v3709_v59, %v3705_v41  ;;  %v2527_v56 = vunpack.c.h.b16 %v2247_v43  ;;  %v6721_v59 = vld [vmem:[%s5221_s6 + $0x210] sm:$0xff] }
 0x1eb   : > { %1162 = vadd.xlane.f32.xlu1 %v7633_v25  ;;  %v3715_v61 = vsel %vm2845_vm15, %v3714_v0, %v3710_v50  ;;  %v3626_v36 = vsel %vm2831_vm13, %v3625_v44, %v3621_v62  ;;  %v657_v43 = vld [vmem:[%s7570_s0 + $0x310] sm:$0xff]  ;;  %v2100_v44 = vunpack.c.h.s8.bf16 %v1904_v29  ;;  %v675_v62 = vld [vmem:[%s7570_s0 + $0x3a0] sm:$0xff]  ;;  %v7637_v29 = vld [vmem:[#allocation4_spill] sm:$0xff] }
 0x1ec   : > { %v2998_v55 = vrot.slane %v2526_v30, %v5821_v31  ;;  %v2311_v40 = vpack.c.bf16 %v1759_v12, %v1758_v35  ;;  %v1061_v60 = vpop.xlane.xlu1 %1060  ;;  %v4036_v6 = vsel %vm4032_vm9, %v3715_v61, %v3083_v48  ;;  %1159 = vadd.xlane.f32.xlu0 %v7634_v39  ;;  %v3003_v3 = vrot.slane %v2527_v56, %v5824_v17  ;;  %v7636_v25 = vld [vmem:[#allocation13_spill] sm:$0xff] }
 0x1ed   : > { %v1665_v22 = vmul.f32 0.015625, %v1061_v60  ;;  %v1058_v51 = vpop.xlane.xlu0 %1057  ;;  %v4044_v11 = vpack.c.b16 %v4036_v6, %v4036_v6  ;;  %v2098_v30 = vunpack.c.l.s8.bf16 %v6721_v59  ;;  %v1110_v50 = vsel %vm815_vm0, %v657_v43, 0.0  ;;  %v785_v61 = vld [vmem:[%s7570_s0 + $0x710] sm:$0xff] }
 0x1ee   : > { %v2654_v24 = vunpack.c.l.b16 %v2311_v40  ;;  %v2655_v1 = vunpack.c.h.b16 %v2311_v40  ;;  %v1664_v34 = vmul.f32 0.015625, %v1058_v51  ;;  %v2999_v58 = vsel %vm2838_vm14, %v2998_v55, %v2994_v8  ;;  %v6746_v55 = vld [vmem:[%s5221_s6 + $0x238] sm:$0xff] }
 0x1ef   : > { %4130 = vmatprep.mubr.bf16.mxu0 %v4044_v11  ;;  %4294 = vmatprep.mubr.bf16.mxu1 %v4044_v11  ;;  %v3004_v0 = vsel %vm2845_vm15, %v3003_v3, %v2999_v58  ;;  %v2101_v56 = vunpack.c.h.s8.bf16 %v7635_v46  ;;  %v2103_v48 = vunpack.c.h.s8.bf16 %v7636_v25  ;;  %v1497_v6 = vsel %vm815_vm0, %v786_v53, 0.0  ;;  %v6796_v53 = vld [vmem:[%s5221_s6 + $0x248] sm:$0xff]  ;;  %v7639_v46 = vld [vmem:[#allocation6_spill] sm:$0xff]  ;;  %v7640_v25 = vld [vmem:[#allocation7_spill] sm:$0xff] }
 0x1f0   : > { %v3630_v52 = vrot.slane %v2654_v24, %v5821_v31  ;;  %v3635_v2 = vrot.slane %v2655_v1, %v5824_v17  ;;  %v6707_v28 = vpack.c.bf16 %v1665_v22, %v1664_v34  ;;  %1492 = vadd.xlane.f32.xlu1 %v6596_v27  ;;  %v1445_v57 = vpop.xlane.xlu1 %1444  ;;  %1489 = vadd.xlane.f32.xlu0 %v6599_v18  ;;  %v658_v27 = vld [vmem:[%s7570_s0 + $0x318] sm:$0xff]  ;;  %v804_v24 = vld [vmem:[%s7570_s0 + $0x7a8] sm:$0xff]  ;;  %v2102_v1 = vunpack.c.h.s8.bf16 %v6721_v59  ;;  %v6764_v34 = vld [vmem:[%s5221_s6 + $0x220] sm:$0xff] }
 0x1f1   : > { %v1793_v38 = vmul.f32 0.015625, %v1445_v57  ;;  %v1442_v49 = vpop.xlane.xlu0 %1441  ;;  %v1113_v41 = vsel %vm815_vm0, %v658_v27, 0.0  ;;  %v1494_v8 = vsel %vm815_vm0, %v785_v61, 0.0  ;;  %v2105_v3 = vunpack.c.l.s8.bf16 %v6743_v5 }
 0x1f2   : > { %v1792_v32 = vmul.f32 0.015625, %v1442_v49  ;;  %v3631_v21 = vsel %vm2838_vm14, %v3630_v52, %v3626_v36  ;;  %v2560_v39 = vunpack.c.l.b16 %v6707_v28  ;;  %v2561_v22 = vunpack.c.h.b16 %v6707_v28  ;;  %v6770_v52 = vld [vmem:[%s5221_s6 + $0x230] sm:$0xff]  ;;  %v660_v49 = vld [vmem:[%s7570_s0 + $0x328] sm:$0xff] }
 0x1f3   : > { %v3636_v18 = vsel %vm2845_vm15, %v3635_v2, %v3631_v21  ;;  %v2107_v16 = vunpack.c.l.s8.bf16 %v6746_v55  ;;  %v1167_v2 = vsel %vm815_vm0, %v676_v26, 0.0  ;;  %v1164_v58 = vsel %vm815_vm0, %v675_v62, 0.0  ;;  %v678_v26 = vld [vmem:[%s7570_s0 + $0x3b8] sm:$0xff]  ;;  %v677_v62 = vld [vmem:[%s7570_s0 + $0x3b0] sm:$0xff] }
 0x1f4   : > { %v6728_v7 = vpack.c.bf16 %v1793_v38, %v1792_v32  ;;  %1546 = vadd.xlane.f32.xlu1 %v1545_v42  ;;  %v1013_v37 = vpop.xlane.xlu1 %1012  ;;  %v4035_v19 = vsel %vm4032_vm9, %v3636_v18, %v3004_v0  ;;  %1543 = vadd.xlane.f32.xlu0 %v1542_v15  ;;  %v1551_v36 = vsel %vm815_vm0, %v804_v24, 0.0  ;;  %v803_v38 = vld [vmem:[%s7570_s0 + $0x7a0] sm:$0xff]  ;;  %v2104_v42 = vunpack.c.l.s8.bf16 %v6764_v34  ;;  %v7638_v15 = vld [vmem:[#allocation5_spill] sm:$0xff] }
 0x1f5   : > { %v1649_v14 = vmul.f32 0.015625, %v1013_v37  ;;  %v1010_v12 = vpop.xlane.xlu0 %1009  ;;  %v4043_v47 = vpack.c.b16 %v4035_v19, %v4035_v19  ;;  %v3166_v32 = vrot.slane %v2560_v39, %v7637_v29  ;;  %v3170_v21 = vrot.slane %v2561_v22, %v7638_v15  ;;  %v6819_v39 = vld [vmem:[%s5221_s6 + $0x240] sm:$0xff] }
 0x1f6   : > { %v1648_v35 = vmul.f32 0.015625, %v1010_v12  ;;  %v2106_v59 = vunpack.c.l.s8.bf16 %v6770_v52  ;;  %v2109_v37 = vunpack.c.h.s8.bf16 %v6743_v5  ;;  %v2111_v19 = vunpack.c.h.s8.bf16 %v6746_v55  ;;  %v788_v5 = vld [vmem:[%s7570_s0 + $0x728] sm:$0xff]  ;;  %v787_v55 = vld [vmem:[%s7570_s0 + $0x720] sm:$0xff] }
 0x1f7   : > { %4131 = vmatmul.mubr.bf16.vlgmr.msra.gmra.mrb[0].mxu0 %v4043_v47  ;;  %4295 = vmatmul.mubr.bf16.vlgmr.msra.gmra.mrb[0].mxu1 %v4043_v47  ;;  %v6789_v12 = vsel %vm815_vm0, %v660_v49, 0.0  ;;  %v659_v47 = vld [vmem:[%s7570_s0 + $0x320] sm:$0xff]  ;;  %v2113_v24 = vunpack.c.l.s8.bf16 %v6796_v53 }
 0x1f8   : > { %v6748_v40 = vpack.c.bf16 %v1649_v14, %v1648_v35  ;;  %1114 = vadd.xlane.f32.xlu1 %v1113_v41  ;;  %v1067_v60 = vpop.xlane.xlu1 %1066  ;;  %4140 = vmatpush1.bf16.msra.mxu0 %v2096_v63  ;;  %v1548_v14 = vsel %vm815_vm0, %v803_v38, 0.0  ;;  %v2108_v41 = vunpack.c.h.s8.bf16 %v6764_v34  ;;  %v2688_v35 = vunpack.c.l.b16 %v6728_v7  ;;  %v6829_v34 = vld [vmem:[%s5221_s6 + $0x250] sm:$0xff] }
 0x1f9   : > { %1111 = vadd.xlane.f32.xlu0 %v1110_v50  ;;  %v1667_v51 = vmul.f32 0.015625, %v1067_v60  ;;  %v1064_v11 = vpop.xlane.xlu0 %1063  ;;  %4304 = vmatpush1.bf16.msra.mxu1 %v2098_v30  ;;  %v6799_v30 = vld [vmem:[%s5221_s6 + $0x258] sm:$0xff]  ;;  %v2689_v50 = vunpack.c.h.b16 %v6728_v7  ;;  %v3171_v60 = vsel %vm2747_vm1, %v3170_v21, %v3166_v32  ;;  %v2114_v32 = vunpack.c.l.s8.bf16 %v6829_v34  ;;  %v6849_v21 = vld [vmem:[%s5221_s6 + $0x268] sm:$0xff] }
 0x1fa   : > { %v1666_v13 = vmul.f32 0.015625, %v1064_v11  ;;  %4141 = vmatprep.subr.bf16.mxu0 %v2101_v56  ;;  %4305 = vmatprep.subr.bf16.mxu1 %v2103_v48  ;;  %v1116_v11 = vsel %vm815_vm0, %v659_v47, 0.0 }
 0x1fc   : > { %v2265_v28 = vpack.c.bf16 %v1667_v51, %v1666_v13  ;;  %1498 = vadd.xlane.f32.xlu1 %v1497_v6  ;;  %v1397_v57 = vpop.xlane.xlu1 %1396  ;;  %4142 = vmatpush1.bf16.msra.mxu0 %v2100_v44  ;;  %v2110_v44 = vunpack.c.h.s8.bf16 %v6770_v52  ;;  %v3798_v52 = vrot.slane %v2688_v35, %v7637_v29  ;;  %v2121_v35 = vunpack.c.l.s8.bf16 %v6849_v21 }
 0x1fd   : > { %1495 = vadd.xlane.f32.xlu0 %v1494_v8  ;;  %v1777_v27 = vmul.f32 0.015625, %v1397_v57  ;;  %4306 = vmatpush1.bf16.msra.mxu1 %v2102_v1  ;;  %v1394_v43 = vpop.xlane.xlu0 %1393  ;;  %v2115_v1 = vunpack.c.l.s8.bf16 %v6799_v30  ;;  %v6841_v57 = vsel %vm815_vm0, %v678_v26, 0.0 }
 0x1fe   : > { %v2562_v0 = vunpack.c.l.b16 %v2265_v28  ;;  %v2563_v18 = vunpack.c.h.b16 %v2265_v28  ;;  %4143 = vmatprep.subr.bf16.mxu0 %v2105_v3  ;;  %4307 = vmatprep.subr.bf16.mxu1 %v2107_v16  ;;  %v1776_v63 = vmul.f32 0.015625, %v1394_v43  ;;  %v1503_v3 = vsel %vm815_vm0, %v788_v5, 0.0  ;;  %v6870_v5 = vld [vmem:[%s5221_s6 + $0x270] sm:$0xff] }
 0x1ff   : > { %v6836_v16 = vsel %vm815_vm0, %v787_v55, 0.0  ;;  %v2119_v43 = vunpack.c.h.s8.bf16 %v6799_v30 }
 0x200   : > { %v3175_v56 = vrot.slane %v2562_v0, %v7639_v46  ;;  %v3180_v48 = vrot.slane %v2563_v18, %v7640_v25  ;;  %1168 = vadd.xlane.f32.xlu1 %v1167_v2  ;;  %v1451_v61 = vpop.xlane.xlu1 %1450  ;;  %4144 = vmatpush1.bf16.msra.mxu0 %v2104_v42  ;;  %v6812_v6 = vpack.c.bf16 %v1777_v27, %v1776_v63  ;;  %v6845_v42 = vsel %vm815_vm0, %v677_v62, 0.0  ;;  %v6852_v27 = vld [vmem:[%s5221_s6 + $0x278] sm:$0xff] }
 0x201   : > { %1165 = vadd.xlane.f32.xlu0 %v1164_v58  ;;  %v1795_v7 = vmul.f32 0.015625, %v1451_v61  ;;  %4308 = vmatpush1.bf16.msra.mxu1 %v2106_v59  ;;  %v1448_v51 = vpop.xlane.xlu0 %1447  ;;  %v3802_v2 = vrot.slane %v2689_v50, %v7638_v15  ;;  %v2112_v58 = vunpack.c.l.s8.bf16 %v6819_v39  ;;  %v2545_v59 = vunpack.c.h.b16 %v6748_v40  ;;  %v6867_v61 = vld [vmem:[%s5221_s6 + $0x260] sm:$0xff] }
 0x202   : > { %v3176_v22 = vsel %vm2754_vm2, %v3175_v56, %v3171_v60  ;;  %4145 = vmatprep.subr.bf16.mxu0 %v2109_v37  ;;  %4309 = vmatprep.subr.bf16.mxu1 %v2111_v19  ;;  %v1794_v8 = vmul.f32 0.015625, %v1448_v51  ;;  %v2117_v18 = vunpack.c.h.s8.bf16 %v6796_v53  ;;  %v2123_v53 = vunpack.c.l.s8.bf16 %v6852_v27 }
 0x203   : > { %v6832_v13 = vsel %vm2761_vm3, %v3180_v48, %v3176_v22  ;;  %v3803_v47 = vsel %vm2747_vm1, %v3802_v2, %v3798_v52  ;;  %v3091_v55 = vrot.slane %v2545_v59, %v7638_v15  ;;  %v2672_v60 = vunpack.c.l.b16 %v6812_v6 }
 0x204   : > { %1552 = vadd.xlane.f32.xlu1 %v1551_v36  ;;  %v1019_v28 = vpop.xlane.xlu1 %1018  ;;  %4146 = vmatpush1.bf16.msra.mxu0 %v2108_v41  ;;  %v2329_v38 = vpack.c.bf16 %v1795_v7, %v1794_v8  ;;  %v2544_v36 = vunpack.c.l.b16 %v6748_v40  ;;  %v2118_v40 = vunpack.c.h.s8.bf16 %v6829_v34  ;;  %v2673_v7 = vunpack.c.h.b16 %v6812_v6 }
 0x205   : > { %1549 = vadd.xlane.f32.xlu0 %v1548_v14  ;;  %v1651_v49 = vmul.f32 0.015625, %v1019_v28  ;;  %4310 = vmatpush1.bf16.msra.mxu1 %v2110_v44  ;;  %v1016_v0 = vpop.xlane.xlu0 %1015  ;;  %v2116_v14 = vunpack.c.h.s8.bf16 %v6819_v39  ;;  %v2125_v6 = vunpack.c.h.s8.bf16 %v6849_v21 }
 0x206   : > { %4147 = vmatprep.subr.bf16.mxu0 %v2113_v24  ;;  %4311 = vmatprep.subr.bf16.mxu1 %v2115_v1  ;;  %v2690_v37 = vunpack.c.l.b16 %v2329_v38  ;;  %v2691_v19 = vunpack.c.h.b16 %v2329_v38  ;;  %v1650_v63 = vmul.f32 0.015625, %v1016_v0  ;;  %v2120_v24 = vunpack.c.l.s8.bf16 %v6867_v61  ;;  %v805_v0 = vld [vmem:[%s7570_s0 + $0x7b0] sm:$0xff] }
 0x207   : > { %v2122_v1 = vunpack.c.l.s8.bf16 %v6870_v5  ;;  %v3723_v38 = vrot.slane %v2673_v7, %v7638_v15  ;;  %v661_v7 = vld [vmem:[%s7570_s0 + $0x330] sm:$0xff] }
 0x208   : > { %1120 = vadd.xlane.f32.xlu1 %v6789_v12  ;;  %v1403_v41 = vpop.xlane.xlu1 %1402  ;;  %4148 = vmatpush1.bf16.msra.mxu0 %v2112_v58  ;;  %v3807_v30 = vrot.slane %v2690_v37, %v7639_v46  ;;  %v3812_v50 = vrot.slane %v2691_v19, %v7640_v25  ;;  %v2257_v56 = vpack.c.bf16 %v1651_v49, %v1650_v63  ;;  %v2124_v63 = vunpack.c.h.s8.bf16 %v6867_v61 }
 0x209   : > { %1117 = vadd.xlane.f32.xlu0 %v1116_v11  ;;  %v1779_v48 = vmul.f32 0.015625, %v1403_v41  ;;  %4312 = vmatpush1.bf16.msra.mxu1 %v2114_v32  ;;  %v3087_v12 = vrot.slane %v2544_v36, %v7637_v29  ;;  %v1400_v26 = vpop.xlane.xlu0 %1399  ;;  %v3719_v58 = vrot.slane %v2672_v60, %v7637_v29  ;;  %v2127_v32 = vunpack.c.h.s8.bf16 %v6852_v27 }
 0x20a   : > { %4149 = vmatprep.subr.bf16.mxu0 %v2117_v18  ;;  %4313 = vmatprep.subr.bf16.mxu1 %v2119_v43  ;;  %v3808_v44 = vsel %vm2754_vm2, %v3807_v30, %v3803_v47  ;;  %v2546_v39 = vunpack.c.l.b16 %v2257_v56  ;;  %v2547_v22 = vunpack.c.h.b16 %v2257_v56  ;;  %v1778_v51 = vmul.f32 0.015625, %v1400_v26  ;;  %v6898_v18 = vld [vmem:[%s5221_s6 + $0x288] sm:$0xff]  ;;  %v6901_v43 = vld [vmem:[%s5221_s6 + $0x298] sm:$0xff]  ;;  %v6920_v30 = vld [vmem:[%s5221_s6 + $0x290] sm:$0xff] }
 0x20b   : > { %v6878_v11 = vsel %vm2761_vm3, %v3812_v50, %v3808_v44  ;;  %v3092_v28 = vsel %vm2747_vm1, %v3091_v55, %v3087_v12  ;;  %v3724_v50 = vsel %vm2747_vm1, %v3723_v38, %v3719_v58  ;;  %v2129_v61 = vunpack.c.l.s8.bf16 %v6898_v18 }
 0x20c   : > { %1504 = vadd.xlane.f32.xlu1 %v1503_v3  ;;  %v1073_v62 = vpop.xlane.xlu1 %1072  ;;  %4150 = vmatpush1.bf16.msra.mxu0 %v2116_v14  ;;  %v3096_v34 = vrot.slane %v2546_v39, %v7639_v46  ;;  %v3101_v8 = vrot.slane %v2547_v22, %v7640_v25  ;;  %v2321_v52 = vpack.c.bf16 %v1779_v48, %v1778_v51  ;;  %v806_v3 = vld [vmem:[%s7570_s0 + $0x7b8] sm:$0xff]  ;;  %v2126_v14 = vunpack.c.h.s8.bf16 %v6870_v5 }
 0x20d   : > { %1501 = vadd.xlane.f32.xlu0 %v6836_v16  ;;  %v1669_v2 = vmul.f32 0.015625, %v1073_v62  ;;  %4314 = vmatpush1.bf16.msra.mxu1 %v2118_v40  ;;  %v1070_v49 = vpop.xlane.xlu0 %1069  ;;  %v1557_v19 = vsel %vm815_vm0, %v806_v3, 0.0  ;;  %v1554_v48 = vsel %vm815_vm0, %v805_v0, 0.0  ;;  %v2130_v51 = vunpack.c.l.s8.bf16 %v6920_v30  ;;  %v7641_v62 = vld [vmem:[#allocation8_spill] sm:$0xff] }
 0x20e   : > { %4151 = vmatprep.subr.bf16.mxu0 %v2121_v35  ;;  %4315 = vmatprep.subr.bf16.mxu1 %v2123_v53  ;;  %v3097_v16 = vsel %vm2754_vm2, %v3096_v34, %v3092_v28  ;;  %v2674_v21 = vunpack.c.l.b16 %v2321_v52  ;;  %v2675_v36 = vunpack.c.h.b16 %v2321_v52  ;;  %v1668_v59 = vmul.f32 0.015625, %v1070_v49  ;;  %v6917_v53 = vld [vmem:[%s5221_s6 + $0x280] sm:$0xff]  ;;  %v790_v52 = vld [vmem:[%s7570_s0 + $0x738] sm:$0xff] }
 0x20f   : > { %v6904_v37 = vsel %vm2761_vm3, %v3101_v8, %v3097_v16  ;;  %v2128_v22 = vunpack.c.l.s8.bf16 %v6917_v53  ;;  %v1122_v3 = vsel %vm815_vm0, %v661_v7, 0.0  ;;  %v2133_v28 = vunpack.c.h.s8.bf16 %v6898_v18 }
 0x210   : > { %1174 = vadd.xlane.f32.xlu1 %v6841_v57  ;;  %v1457_v27 = vpop.xlane.xlu1 %1456  ;;  %4152 = vmatpush1.bf16.msra.mxu0 %v2120_v24  ;;  %v3728_v47 = vrot.slane %v2674_v21, %v7639_v46  ;;  %v3733_v41 = vrot.slane %v2675_v36, %v7640_v25  ;;  %v2266_v40 = vpack.c.bf16 %v1669_v2, %v1668_v59  ;;  %v662_v57 = vld [vmem:[%s7570_s0 + $0x338] sm:$0xff]  ;;  %v2135_v58 = vunpack.c.h.s8.bf16 %v6901_v43  ;;  %v789_v21 = vld [vmem:[%s7570_s0 + $0x730] sm:$0xff]  ;;  %v6950_v36 = vld [vmem:[%s5221_s6 + $0x2a8] sm:$0xff] }
 0x211   : > { %1171 = vadd.xlane.f32.xlu0 %v6845_v42  ;;  %v1797_v35 = vmul.f32 0.015625, %v1457_v27  ;;  %4316 = vmatpush1.bf16.msra.mxu1 %v2122_v1  ;;  %v1454_v56 = vpop.xlane.xlu0 %1453  ;;  %v2131_v42 = vunpack.c.l.s8.bf16 %v6901_v43  ;;  %v1125_v39 = vsel %vm815_vm0, %v662_v57, 0.0  ;;  %v7642_v1 = vld [vmem:[#allocation9_spill] sm:$0xff]  ;;  %v6953_v59 = vld [vmem:[%s5221_s6 + $0x2b8] sm:$0xff]  ;;  %v1509_v43 = vsel %vm815_vm0, %v790_v52, 0.0 }
 0x212   : > { %4153 = vmatprep.subr.bf16.mxu0 %v2125_v6  ;;  %4317 = vmatprep.subr.bf16.mxu1 %v2127_v32  ;;  %v3729_v5 = vsel %vm2754_vm2, %v3728_v47, %v3724_v50  ;;  %v2564_v12 = vunpack.c.l.b16 %v2266_v40  ;;  %v2565_v55 = vunpack.c.h.b16 %v2266_v40  ;;  %v1796_v60 = vmul.f32 0.015625, %v1454_v56  ;;  %v6967_v40 = vld [vmem:[%s5221_s6 + $0x2a0] sm:$0xff]  ;;  %v1926_v50 = vld [vmem:[%s5221_s6 + $0x2b0] sm:$0xff] }
 0x213   : > { %v6931_v26 = vsel %vm2761_vm3, %v3733_v41, %v3729_v5  ;;  %v2134_v27 = vunpack.c.h.s8.bf16 %v6920_v30  ;;  %v680_v41 = vld [vmem:[%s7570_s0 + $0x3c8] sm:$0xff]  ;;  %v1506_v57 = vsel %vm815_vm0, %v789_v21, 0.0  ;;  %v2139_v30 = vunpack.c.l.s8.bf16 %v6953_v59  ;;  %v679_v5 = vld [vmem:[%s7570_s0 + $0x3c0] sm:$0xff] }
 0x214   : > { %1558 = vadd.xlane.f32.xlu1 %v1557_v19  ;;  %v1025_v44 = vpop.xlane.xlu1 %1024  ;;  %4154 = vmatpush1.bf16.msra.mxu0 %v2124_v63  ;;  %v3185_v24 = vrot.slane %v2564_v12, %v7641_v62  ;;  %v3190_v6 = vrot.slane %v2565_v55, %v7642_v1  ;;  %v2330_v34 = vpack.c.bf16 %v1797_v35, %v1796_v60  ;;  %v1179_v60 = vsel %vm815_vm0, %v680_v41, 0.0  ;;  %v663_v41 = vld [vmem:[%s7570_s0 + $0x340] sm:$0xff] }
 0x215   : > { %1555 = vadd.xlane.f32.xlu0 %v1554_v48  ;;  %v1653_v8 = vmul.f32 0.015625, %v1025_v44  ;;  %4318 = vmatpush1.bf16.msra.mxu1 %v2126_v14  ;;  %v1022_v2 = vpop.xlane.xlu0 %1021  ;;  %v2136_v7 = vunpack.c.l.s8.bf16 %v6967_v40 }
 0x216   : > { %4155 = vmatprep.subr.bf16.mxu0 %v2129_v61  ;;  %4319 = vmatprep.subr.bf16.mxu1 %v2131_v42  ;;  %v3186_v38 = vsel %vm7603_vm4, %v3185_v24, %v6832_v13  ;;  %v2692_v49 = vunpack.c.l.b16 %v2330_v34  ;;  %v2693_v32 = vunpack.c.h.b16 %v2330_v34  ;;  %v1652_v16 = vmul.f32 0.015625, %v1022_v2 }
 0x217   : > { %v6956_v0 = vsel %vm7602_vm5, %v3190_v6, %v3186_v38  ;;  %v2132_v13 = vunpack.c.h.s8.bf16 %v6917_v53  ;;  %v2137_v53 = vunpack.c.l.s8.bf16 %v6950_v36  ;;  %v1176_v24 = vsel %vm815_vm0, %v679_v5, 0.0  ;;  %v808_v6 = vld [vmem:[%s7570_s0 + $0x7c8] sm:$0xff]  ;;  %v1931_v38 = vld [vmem:[%s5221_s6 + $0x2d8] sm:$0xff] }
 0x218   : > { %1126 = vadd.xlane.f32.xlu1 %v1125_v39  ;;  %v1409_v18 = vpop.xlane.xlu1 %1408  ;;  %4156 = vmatpush1.bf16.msra.mxu0 %v2128_v22  ;;  %v3817_v19 = vrot.slane %v2692_v49, %v7641_v62  ;;  %v3822_v63 = vrot.slane %v2693_v32, %v7642_v1  ;;  %v2258_v14 = vpack.c.bf16 %v1653_v8, %v1652_v16  ;;  %v2138_v22 = vunpack.c.l.s8.bf16 %v1926_v50  ;;  %v1933_v5 = vld [vmem:[%s5221_s6 + $0x2e8] sm:$0xff] }
 0x219   : > { %1123 = vadd.xlane.f32.xlu0 %v1122_v3  ;;  %v1781_v47 = vmul.f32 0.015625, %v1409_v18  ;;  %4320 = vmatpush1.bf16.msra.mxu1 %v2130_v51  ;;  %v1406_v35 = vpop.xlane.xlu0 %1405  ;;  %v2141_v34 = vunpack.c.h.s8.bf16 %v6950_v36  ;;  %v2143_v8 = vunpack.c.h.s8.bf16 %v6953_v59  ;;  %v2140_v16 = vunpack.c.h.s8.bf16 %v6967_v40  ;;  %v1928_v18 = vld [vmem:[%s5221_s6 + $0x2c0] sm:$0xff] }
 0x21a   : > { %4157 = vmatprep.subr.bf16.mxu0 %v2133_v28  ;;  %4321 = vmatprep.subr.bf16.mxu1 %v2135_v58  ;;  %v3818_v56 = vsel %vm7603_vm4, %v3817_v19, %v6878_v11  ;;  %v2548_v48 = vunpack.c.l.b16 %v2258_v14  ;;  %v2549_v61 = vunpack.c.h.b16 %v2258_v14  ;;  %v1780_v42 = vmul.f32 0.015625, %v1406_v35  ;;  %v807_v28 = vld [vmem:[%s7570_s0 + $0x7c0] sm:$0xff]  ;;  %v1929_v58 = vld [vmem:[%s5221_s6 + $0x2c8] sm:$0xff]  ;;  %v1930_v14 = vld [vmem:[%s5221_s6 + $0x2d0] sm:$0xff] }
 0x21b   : > { %v6979_v12 = vsel %vm7602_vm5, %v3822_v63, %v3818_v56  ;;  %v1563_v36 = vsel %vm815_vm0, %v808_v6, 0.0  ;;  %v2142_v59 = vunpack.c.h.s8.bf16 %v1926_v50  ;;  %v2145_v19 = vunpack.c.l.s8.bf16 %v1929_v58  ;;  %v792_v56 = vld [vmem:[%s7570_s0 + $0x748] sm:$0xff] }
 0x21c   : > { %1510 = vadd.xlane.f32.xlu1 %v1509_v43  ;;  %v6981_v55 = vpop.xlane.xlu1 %1078  ;;  %4158 = vmatpush1.bf16.msra.mxu0 %v2132_v13  ;;  %v3106_v11 = vrot.slane %v2548_v48, %v7641_v62  ;;  %v3111_v44 = vrot.slane %v2549_v61, %v7642_v1  ;;  %v2322_v39 = vpack.c.bf16 %v1781_v47, %v1780_v42  ;;  %v1560_v13 = vsel %vm815_vm0, %v807_v28, 0.0  ;;  %v791_v42 = vld [vmem:[%s7570_s0 + $0x740] sm:$0xff] }
 0x21d   : > { %1507 = vadd.xlane.f32.xlu0 %v1506_v57  ;;  %4322 = vmatpush1.bf16.msra.mxu1 %v2134_v27  ;;  %v6987_v51 = vpop.xlane.xlu0 %1075  ;;  %v664_v27 = vld [vmem:[%s7570_s0 + $0x348] sm:$0xff]  ;;  %v2147_v63 = vunpack.c.l.s8.bf16 %v1931_v38  ;;  %v2144_v57 = vunpack.c.l.s8.bf16 %v1928_v18  ;;  %v1128_v50 = vsel %vm815_vm0, %v663_v41, 0.0  ;;  %v2149_v48 = vunpack.c.h.s8.bf16 %v1929_v58 }
 0x21e   : > { %4159 = vmatprep.subr.bf16.mxu0 %v2137_v53  ;;  %4323 = vmatprep.subr.bf16.mxu1 %v2139_v30  ;;  %v3107_v52 = vsel %vm7603_vm4, %v3106_v11, %v6904_v37  ;;  %v2676_v2 = vunpack.c.l.b16 %v2322_v39  ;;  %v2677_v3 = vunpack.c.h.b16 %v2322_v39  ;;  %v1131_v53 = vsel %vm815_vm0, %v664_v27, 0.0 }
 0x21f   : > { %v7003_v49 = vsel %vm7602_vm5, %v3111_v44, %v3107_v52  ;;  %v2146_v30 = vunpack.c.l.s8.bf16 %v1930_v14  ;;  %v2151_v61 = vunpack.c.h.s8.bf16 %v1931_v38  ;;  %v2148_v11 = vunpack.c.h.s8.bf16 %v1928_v18 }
 0x220   : > { %1180 = vadd.xlane.f32.xlu1 %v1179_v60  ;;  %v7005_v32 = vpop.xlane.xlu1 %1462  ;;  %4160 = vmatpush1.bf16.msra.mxu0 %v2136_v7  ;;  %v3738_v37 = vrot.slane %v2676_v2, %v7641_v62  ;;  %v3743_v21 = vrot.slane %v2677_v3, %v7642_v1  ;;  %v1935_v60 = vld [vmem:[%s5221_s6 + $0x2f8] sm:$0xff]  ;;  %v1515_v44 = vsel %vm815_vm0, %v792_v56, 0.0  ;;  %v2150_v39 = vunpack.c.h.s8.bf16 %v1930_v14  ;;  %v1934_v2 = vld [vmem:[%s5221_s6 + $0x2f0] sm:$0xff] }
 0x221   : > { %1177 = vadd.xlane.f32.xlu0 %v1176_v24  ;;  %4324 = vmatpush1.bf16.msra.mxu1 %v2138_v22  ;;  %v7012_v43 = vpop.xlane.xlu0 %1459  ;;  %v1932_v22 = vld [vmem:[%s5221_s6 + $0x2e0] sm:$0xff]  ;;  %v1512_v6 = vsel %vm815_vm0, %v791_v42, 0.0  ;;  %v2155_v52 = vunpack.c.l.s8.bf16 %v1935_v60  ;;  %v681_v3 = vld [vmem:[%s7570_s0 + $0x3d0] sm:$0xff]  ;;  %v2159_v18 = vunpack.c.h.s8.bf16 %v1935_v60  ;;  %v2158_v14 = vunpack.c.h.s8.bf16 %v1934_v2  ;;  %v7095_v60 = vld [vmem:[%s5221_s6 + $0x318] sm:$0xff] }
 0x222   : > { %4161 = vmatprep.subr.bf16.mxu0 %v2141_v34  ;;  %4325 = vmatprep.subr.bf16.mxu1 %v2143_v8  ;;  %v3739_v47 = vsel %vm7603_vm4, %v3738_v37, %v6931_v26  ;;  %v682_v34 = vld [vmem:[%s7570_s0 + $0x3d8] sm:$0xff]  ;;  %v2153_v8 = vunpack.c.l.s8.bf16 %v1933_v5  ;;  %v2152_v58 = vunpack.c.l.s8.bf16 %v1932_v22  ;;  %v793_v42 = vld [vmem:[%s7570_s0 + $0x750] sm:$0xff] }
 0x223   : > { %v7025_v40 = vsel %vm7602_vm5, %v3743_v21, %v3739_v47  ;;  %v1185_v38 = vsel %vm815_vm0, %v682_v34, 0.0  ;;  %v1182_v21 = vsel %vm815_vm0, %v681_v3, 0.0  ;;  %v1518_v34 = vsel %vm815_vm0, %v793_v42, 0.0  ;;  %v683_v3 = vld [vmem:[%s7570_s0 + $0x3e0] sm:$0xff]  ;;  %v686_v42 = vld [vmem:[%s7570_s0 + $0x3f8] sm:$0xff] }
 0x224   : > { %1564 = vadd.xlane.f32.xlu1 %v1563_v36  ;;  %v7027_v35 = vpop.xlane.xlu1 %1030  ;;  %4162 = vmatpush1.bf16.msra.mxu0 %v2140_v16  ;;  %v2154_v16 = vunpack.c.l.s8.bf16 %v1934_v2  ;;  %v810_v36 = vld [vmem:[%s7570_s0 + $0x7d8] sm:$0xff]  ;;  %v1670_v2 = vmul.f32 0.015625, %v6987_v51  ;;  %v1188_v51 = vsel %vm815_vm0, %v683_v3, 0.0  ;;  %vm7646_vm5 = vcmask 523712  }
 0x225   : > { %1561 = vadd.xlane.f32.xlu0 %v1560_v13  ;;  %4326 = vmatpush1.bf16.msra.mxu1 %v2142_v59  ;;  %v7030_v26 = vpop.xlane.xlu0 %1027  ;;  %v2157_v59 = vunpack.c.h.s8.bf16 %v1933_v5  ;;  %v809_v13 = vld [vmem:[%s7570_s0 + $0x7d0] sm:$0xff]  ;;  %v7092_v5 = vld [vmem:[%s5221_s6 + $0x308] sm:$0xff]  ;;  %vm7649_vm4 = vmmov %vm7646_vm5 }
 0x226   : > { %4163 = vmatprep.subr.bf16.mxu0 %v2145_v19  ;;  %4327 = vmatprep.subr.bf16.mxu1 %v2147_v63  ;;  %v2156_v19 = vunpack.c.h.s8.bf16 %v1932_v22  ;;  %v1569_v63 = vsel %vm815_vm0, %v810_v36, 0.0  ;;  %v1566_v41 = vsel %vm815_vm0, %v809_v13, 0.0  ;;  %v1655_v36 = vmul.f32 0.015625, %v7027_v35 }
 0x228   : > { %1132 = vadd.xlane.f32.xlu1 %v1131_v53  ;;  %v7041_v7 = vpop.xlane.xlu1 %1414  ;;  %4164 = vmatpush1.bf16.msra.mxu0 %v2144_v57  ;;  %v666_v57 = vld [vmem:[%s7570_s0 + $0x358] sm:$0xff]  ;;  %v665_v53 = vld [vmem:[%s7570_s0 + $0x350] sm:$0xff] }
 0x229   : > { %1129 = vadd.xlane.f32.xlu0 %v1128_v50  ;;  %4328 = vmatpush1.bf16.msra.mxu1 %v2146_v30  ;;  %v7045_v24 = vpop.xlane.xlu0 %1411  ;;  %v1137_v50 = vsel %vm815_vm0, %v666_v57, 0.0  ;;  %v667_v57 = vld [vmem:[%s7570_s0 + $0x360] sm:$0xff] }
 0x22a   : > { %4165 = vmatprep.subr.bf16.mxu0 %v2149_v48  ;;  %4329 = vmatprep.subr.bf16.mxu1 %v2151_v61  ;;  %v1134_v48 = vsel %vm815_vm0, %v665_v53, 0.0  ;;  %v794_v61 = vld [vmem:[%s7570_s0 + $0x758] sm:$0xff]  ;;  %v796_v53 = vld [vmem:[%s7570_s0 + $0x768] sm:$0xff] }
 0x22b   : > { %v1521_v22 = vsel %vm815_vm0, %v794_v61, 0.0 }
 0x22c   : > { %1516 = vadd.xlane.f32.xlu1 %v1515_v44  ;;  %v7055_v28 = vpop.xlane.xlu1 %1084  ;;  %4166 = vmatpush1.bf16.msra.mxu0 %v2148_v11  ;;  %v2161_v44 = vunpack.c.l.s8.bf16 %v7092_v5 }
 0x22d   : > { %1513 = vadd.xlane.f32.xlu0 %v1512_v6  ;;  %4330 = vmatpush1.bf16.msra.mxu1 %v2150_v39  ;;  %v7058_v37 = vpop.xlane.xlu0 %1081  ;;  %v2163_v39 = vunpack.c.l.s8.bf16 %v7095_v60 }
 0x22e   : > { %4167 = vmatprep.subr.bf16.mxu0 %v2153_v8  ;;  %4331 = vmatprep.subr.bf16.mxu1 %v2155_v52  ;;  %v684_v8 = vld [vmem:[%s7570_s0 + $0x3e8] sm:$0xff]  ;;  %v1671_v52 = vmul.f32 0.015625, %v6981_v55  ;;  %v1654_v55 = vmul.f32 0.015625, %v7030_v26 }
 0x230   : > { %1186 = vadd.xlane.f32.xlu1 %v1185_v38  ;;  %v7067_v27 = vpop.xlane.xlu1 %1468  ;;  %4168 = vmatpush1.bf16.msra.mxu0 %v2152_v58  ;;  %v1799_v38 = vmul.f32 0.015625, %v7005_v32  ;;  %v2267_v13 = vpack.c.bf16 %v1671_v52, %v1670_v2  ;;  %v1783_v32 = vmul.f32 0.015625, %v7041_v7  ;;  %v1527_v52 = vsel %vm815_vm0, %v796_v53, 0.0 }
 0x231   : > { %1183 = vadd.xlane.f32.xlu0 %v1182_v21  ;;  %4332 = vmatpush1.bf16.msra.mxu1 %v2154_v16  ;;  %v7070_v47 = vpop.xlane.xlu0 %1465  ;;  %v1798_v16 = vmul.f32 0.015625, %v7012_v43  ;;  %v1191_v21 = vsel %vm815_vm0, %v684_v8, 0.0  ;;  %v1782_v43 = vmul.f32 0.015625, %v7045_v24  ;;  %v1140_v8 = vsel %vm815_vm0, %v667_v57, 0.0 }
 0x232   : > { %4169 = vmatprep.subr.bf16.mxu0 %v2157_v59  ;;  %4333 = vmatprep.subr.bf16.mxu1 %v2159_v18  ;;  %v812_v18 = vld [vmem:[%s7570_s0 + $0x7e8] sm:$0xff]  ;;  %v2567_v3 = vunpack.c.h.b16 %v2267_v13 }
 0x233   : > { %v2331_v26 = vpack.c.bf16 %v1799_v38, %v1798_v16  ;;  %v2323_v61 = vpack.c.bf16 %v1783_v32, %v1782_v43  ;;  %v1672_v43 = vmul.f32 0.015625, %v7058_v37 }
 0x234   : > { %1570 = vadd.xlane.f32.xlu1 %v1569_v63  ;;  %v7079_v30 = vpop.xlane.xlu1 %1036  ;;  %4170 = vmatpush1.bf16.msra.mxu0 %v2156_v19  ;;  %v811_v19 = vld [vmem:[%s7570_s0 + $0x7e0] sm:$0xff]  ;;  %v1575_v63 = vsel %vm815_vm0, %v812_v18, 0.0 }
 0x235   : > { %1567 = vadd.xlane.f32.xlu0 %v1566_v41  ;;  %4334 = vmatpush1.bf16.msra.mxu1 %v2158_v14  ;;  %v7082_v56 = vpop.xlane.xlu0 %1033  ;;  %v668_v14 = vld [vmem:[%s7570_s0 + $0x368] sm:$0xff]  ;;  %v7137_v41 = vpack.c.bf16 %v1655_v36, %v1654_v55  ;;  %v1572_v24 = vsel %vm815_vm0, %v811_v19, 0.0  ;;  %v814_v55 = vld [vmem:[%s7570_s0 + $0x7f8] sm:$0xff]  ;;  %v2678_v32 = vunpack.c.l.b16 %v2323_v61 }
 0x236   : > { %4180 = vmatprep.subr.bf16.mxu0 %v2161_v44  ;;  %4344 = vmatprep.subr.bf16.mxu1 %v2163_v39  ;;  %v685_v44 = vld [vmem:[%s7570_s0 + $0x3f0] sm:$0xff]  ;;  %v670_v19 = vld [vmem:[%s7570_s0 + $0x378] sm:$0xff]  ;;  %v1656_v57 = vmul.f32 0.015625, %v7082_v56  ;;  %v1581_v37 = vsel %vm815_vm0, %v814_v55, 0.0 }
 0x237   : > { %v2550_v38 = vunpack.c.l.b16 %v7137_v41  ;;  %v1194_v36 = vsel %vm815_vm0, %v685_v44, 0.0  ;;  %v3748_v56 = vrot.slane %v2678_v32, %v5674_v9 }
 0x238   : > { %1138 = vadd.xlane.f32.xlu1 %v1137_v50  ;;  %v7097_v11 = vpop.xlane.xlu1 %1420  ;;  %v795_v50 = vld [vmem:[%s7570_s0 + $0x760] sm:$0xff] }
 0x239   : > { %1135 = vadd.xlane.f32.xlu0 %v1134_v48  ;;  %v7102_v6 = vpop.xlane.xlu0 %1417  ;;  %v2566_v48 = vunpack.c.l.b16 %v2267_v13  ;;  %v1524_v2 = vsel %vm815_vm0, %v795_v50, 0.0  ;;  %v1673_v13 = vmul.f32 0.015625, %v7055_v28  ;;  %v2695_v50 = vunpack.c.h.b16 %v2331_v26 }
 0x23b   : > { %v3195_v18 = vrot.slane %v2566_v48, %v5674_v9 }
 0x23c   : > { %1522 = vadd.xlane.f32.xlu1 %v1521_v22  ;;  %v7113_v58 = vpop.xlane.xlu1 %1090  ;;  %v1143_v22 = vsel %vm815_vm0, %v668_v14, 0.0  ;;  %v1800_v14 = vmul.f32 0.015625, %v7070_v47  ;;  %v2679_v47 = vunpack.c.h.b16 %v2323_v61 }
 0x23d   : > { %1519 = vadd.xlane.f32.xlu0 %v1518_v34  ;;  %v7120_v59 = vpop.xlane.xlu0 %1087  ;;  %v2694_v34 = vunpack.c.l.b16 %v2331_v26  ;;  %v2268_v26 = vpack.c.bf16 %v1673_v13, %v1672_v43  ;;  %v1675_v32 = vmul.f32 0.015625, %v7113_v58  ;;  %v3749_v13 = vsel %vm7644_vm6, %v3748_v56, %v7025_v40 }
 0x23f   : > { %v3827_v28 = vrot.slane %v2694_v34, %v5674_v9  ;;  %v1784_v34 = vmul.f32 0.015625, %v7102_v6  ;;  %v798_v6 = vld [vmem:[%s7570_s0 + $0x778] sm:$0xff]  ;;  %v2568_v43 = vunpack.c.l.b16 %v2268_v26 }
 0x240   : > { %1192 = vadd.xlane.f32.xlu1 %v1191_v21  ;;  %v7131_v35 = vpop.xlane.xlu1 %1474  ;;  %v1197_v21 = vsel %vm815_vm0, %v686_v42, 0.0  ;;  %v2551_v42 = vunpack.c.h.b16 %v7137_v41  ;;  %v3200_v41 = vrot.slane %v2567_v3, %v5677_v10  ;;  %v3753_v3 = vrot.slane %v2679_v47, %v5677_v10 }
 0x241   : > { %1189 = vadd.xlane.f32.xlu0 %v1188_v51  ;;  %v7139_v7 = vpop.xlane.xlu0 %1471  ;;  %v813_v51 = vld [vmem:[%s7570_s0 + $0x7f0] sm:$0xff] }
 0x242   : > { %v1578_v48 = vsel %vm815_vm0, %v813_v51, 0.0  ;;  %v3828_v51 = vsel %vm7644_vm6, %v3827_v28, %v6979_v12  ;;  %v1803_v12 = vmul.f32 0.015625, %v7131_v35  ;;  %v2569_v28 = vunpack.c.h.b16 %v2268_v26 }
 0x243   : > { %v3754_v47 = vsel %vm7649_vm4, %v3753_v3, %v3749_v13 }
 0x244   : > { %1576 = vadd.xlane.f32.xlu1 %v1575_v63  ;;  %v7157_v39 = vpop.xlane.xlu1 %1042  ;;  %v1801_v63 = vmul.f32 0.015625, %v7067_v27  ;;  %v3116_v27 = vrot.slane %v2550_v38, %v5674_v9 }
 0x245   : > { %1573 = vadd.xlane.f32.xlu0 %v1572_v24  ;;  %v7164_v16 = vpop.xlane.xlu0 %1039  ;;  %v1657_v24 = vmul.f32 0.015625, %v7079_v30  ;;  %v7194_v30 = vsel %vm815_vm0, %v670_v19, 0.0  ;;  %v3832_v19 = vrot.slane %v2695_v50, %v5677_v10 }
 0x246   : > { %v2332_v55 = vpack.c.bf16 %v1801_v63, %v1800_v14 }
 0x247   : > { %v2260_v38 = vpack.c.bf16 %v1657_v24, %v1656_v57 }
 0x248   : > { %1144 = vadd.xlane.f32.xlu1 %v1143_v22  ;;  %v7184_v53 = vpop.xlane.xlu1 %1426  ;;  %v1785_v22 = vmul.f32 0.015625, %v7097_v11  ;;  %v1674_v11 = vmul.f32 0.015625, %v7120_v59  ;;  %v797_v59 = vld [vmem:[%s7570_s0 + $0x770] sm:$0xff]  ;;  %v2696_v14 = vunpack.c.l.b16 %v2332_v55 }
 0x249   : > { %1141 = vadd.xlane.f32.xlu0 %v1140_v8  ;;  %v7191_v44 = vpop.xlane.xlu0 %1423  ;;  %v3196_v8 = vsel %vm7643_vm7, %v3195_v18, %v6956_v0  ;;  %v669_v0 = vld [vmem:[%s7570_s0 + $0x370] sm:$0xff]  ;;  %v1802_v18 = vmul.f32 0.015625, %v7139_v7  ;;  %vm7645_vm7 = vmmov %vm7644_vm6  ;;  %v2552_v24 = vunpack.c.l.b16 %v2260_v38  ;;  %v1533_v7 = vsel %vm815_vm0, %v798_v6, 0.0 }
 0x24a   : > { %v2324_v63 = vpack.c.bf16 %v1785_v22, %v1784_v34  ;;  %v1146_v35 = vsel %vm815_vm0, %v669_v0, 0.0  ;;  %v3201_v50 = vsel %vm7646_vm5, %v3200_v41, %v3196_v8  ;;  %vm7648_vm6 = vmmov %vm7646_vm5  ;;  %v3205_v22 = vrot.slane %v2568_v43, %v5690_v20 }
 0x24b   : > { %v2333_v56 = vpack.c.bf16 %v1803_v12, %v1802_v18  ;;  %v2697_v34 = vunpack.c.h.b16 %v2332_v55  ;;  %v2553_v0 = vunpack.c.h.b16 %v2260_v38  ;;  %v3837_v8 = vrot.slane %v2696_v14, %v5690_v20 }
 0x24c   : > { %1528 = vadd.xlane.f32.xlu1 %v1527_v52  ;;  %v1097_v61 = vpop.xlane.xlu1 %1096  ;;  %v3121_v52 = vrot.slane %v2551_v42, %v5677_v10  ;;  %v2269_v42 = vpack.c.bf16 %v1675_v32, %v1674_v11  ;;  %v2680_v6 = vunpack.c.l.b16 %v2324_v63  ;;  %v3126_v26 = vrot.slane %v2552_v24, %v5690_v20 }
 0x24d   : > { %1525 = vadd.xlane.f32.xlu0 %v1524_v2  ;;  %v1094_v58 = vpop.xlane.xlu0 %1093  ;;  %v3117_v2 = vsel %vm7645_vm7, %v3116_v27, %v7003_v49  ;;  %v1530_v49 = vsel %vm815_vm0, %v797_v59, 0.0  ;;  %vm7647_vm7 = vmmov %vm7646_vm5  ;;  %v1658_v41 = vmul.f32 0.015625, %v7164_v16  ;;  %v1677_v11 = vmul.f32 0.015625, %v1097_v61 }
 0x24e   : > { %v3833_v27 = vsel %vm7647_vm7, %v3832_v19, %v3828_v51  ;;  %v3122_v40 = vsel %vm7648_vm6, %v3121_v52, %v3117_v2  ;;  %v3210_v19 = vrot.slane %v2569_v28, %v5693_v23  ;;  %v2570_v32 = vunpack.c.l.b16 %v2269_v42 }
 0x24f   : > { %v1676_v52 = vmul.f32 0.015625, %v1094_v58  ;;  %v2681_v3 = vunpack.c.h.b16 %v2324_v63  ;;  %v2698_v55 = vunpack.c.l.b16 %v2333_v56  ;;  %v3206_v59 = vsel %vm2796_vm8, %v3205_v22, %v3201_v50 }
 0x250   : > { %1198 = vadd.xlane.f32.xlu1 %v1197_v21  ;;  %v1481_v57 = vpop.xlane.xlu1 %1480  ;;  %v3842_v2 = vrot.slane %v2697_v34, %v5693_v23  ;;  %v3758_v16 = vrot.slane %v2680_v6, %v5690_v20  ;;  %v3127_v13 = vsel %vm2796_vm8, %v3126_v26, %v3122_v40  ;;  %v2571_v61 = vunpack.c.h.b16 %v2269_v42 }
 0x251   : > { %1195 = vadd.xlane.f32.xlu0 %v1194_v36  ;;  %v1478_v21 = vpop.xlane.xlu0 %1477  ;;  %v1659_v36 = vmul.f32 0.015625, %v7157_v39  ;;  %v1805_v38 = vmul.f32 0.015625, %v1481_v57  ;;  %v3131_v39 = vrot.slane %v2553_v0, %v5693_v23  ;;  %v3215_v43 = vrot.slane %v2570_v32, %v5706_v33 }
 0x252   : > { %v1804_v12 = vmul.f32 0.015625, %v1478_v21  ;;  %v1787_v63 = vmul.f32 0.015625, %v7184_v53  ;;  %v1786_v14 = vmul.f32 0.015625, %v7191_v44  ;;  %v2270_v24 = vpack.c.bf16 %v1677_v11, %v1676_v52 }
 0x253   : > { %v2261_v58 = vpack.c.bf16 %v1659_v36, %v1658_v41  ;;  %v3763_v57 = vrot.slane %v2681_v3, %v5693_v23  ;;  %v2699_v50 = vunpack.c.h.b16 %v2333_v56  ;;  %v3847_v28 = vrot.slane %v2698_v55, %v5706_v33 }
 0x254   : > { %1582 = vadd.xlane.f32.xlu1 %v1581_v37  ;;  %v1049_v51 = vpop.xlane.xlu1 %1048  ;;  %v3838_v37 = vsel %vm2796_vm8, %v3837_v8, %v3833_v27  ;;  %v2334_v27 = vpack.c.bf16 %v1805_v38, %v1804_v12  ;;  %vm7650_vm0 = vcmask 654912   ;;  %v3759_v22 = vsel %vm2796_vm8, %v3758_v16, %v3754_v47 }
 0x255   : > { %1579 = vadd.xlane.f32.xlu0 %v1578_v48  ;;  %v1046_v18 = vpop.xlane.xlu0 %1045  ;;  %v3211_v42 = vsel %vm7650_vm0, %v3210_v19, %v3206_v59  ;;  %vm7651_vm4 = vmmov %vm7650_vm0  ;;  %v3220_v53 = vrot.slane %v2571_v61, %v5722_v45  ;;  %v2554_v44 = vunpack.c.l.b16 %v2261_v58  ;;  %v1661_v34 = vmul.f32 0.015625, %v1049_v51 }
 0x256   : > { %vm7652_vm5 = vmmov %vm7650_vm0  ;;  %v3216_v56 = vsel %vm2810_vm10, %v3215_v43, %v3211_v42  ;;  %v2325_v6 = vpack.c.bf16 %v1787_v63, %v1786_v14  ;;  %v2572_v8 = vunpack.c.l.b16 %v2270_v24  ;;  %v3852_v19 = vrot.slane %v2699_v50, %v5722_v45 }
 0x257   : > { %v3132_v21 = vsel %vm7652_vm5, %v3131_v39, %v3127_v13  ;;  %vm7653_vm7 = vmmov %vm7650_vm0  ;;  %v2700_v47 = vunpack.c.l.b16 %v2334_v27  ;;  %v2555_v11 = vunpack.c.h.b16 %v2261_v58  ;;  %v3136_v55 = vrot.slane %v2554_v44, %v5706_v33 }
 0x258   : > { %1150 = vadd.xlane.f32.xlu1 %v7194_v30  ;;  %v1433_v48 = vpop.xlane.xlu1 %1432  ;;  %v3843_v30 = vsel %vm7651_vm4, %v3842_v2, %v3838_v37  ;;  %v3764_v36 = vsel %vm7653_vm7, %v3763_v57, %v3759_v22  ;;  %v2573_v38 = vunpack.c.h.b16 %v2270_v24  ;;  %v3225_v59 = vrot.slane %v2572_v8, %v5749_v4 }
 0x259   : > { %1147 = vadd.xlane.f32.xlu0 %v1146_v35  ;;  %v1430_v40 = vpop.xlane.xlu0 %1429  ;;  %v1660_v35 = vmul.f32 0.015625, %v1046_v18  ;;  %v3848_v41 = vsel %vm2810_vm10, %v3847_v28, %v3843_v30  ;;  %v1789_v52 = vmul.f32 0.015625, %v1433_v48  ;;  %v2682_v18 = vunpack.c.l.b16 %v2325_v6 }
 0x25a   : > { %v1788_v51 = vmul.f32 0.015625, %v1430_v40  ;;  %v3853_v16 = vsel %vm2817_vm11, %v3852_v19, %v3848_v41  ;;  %v2683_v37 = vunpack.c.h.b16 %v2325_v6  ;;  %v2701_v13 = vunpack.c.h.b16 %v2334_v27 }
 0x25b   : > { %v2262_v12 = vpack.c.bf16 %v1661_v34, %v1660_v35  ;;  %v3857_v61 = vrot.slane %v2700_v47, %v5749_v4  ;;  %v3141_v48 = vrot.slane %v2555_v11, %v5722_v45  ;;  %v3137_v24 = vsel %vm2810_vm10, %v3136_v55, %v3132_v21 }
 0x25c   : > { %1534 = vadd.xlane.f32.xlu1 %v1533_v7  ;;  %v1103_v0 = vpop.xlane.xlu1 %1102  ;;  %v3221_v7 = vsel %vm2817_vm11, %v3220_v53, %v3216_v56  ;;  %v2326_v43 = vpack.c.bf16 %v1789_v52, %v1788_v51  ;;  %v3230_v57 = vrot.slane %v2573_v38, %v5762_v54  ;;  %v3768_v42 = vrot.slane %v2682_v18, %v5706_v33 }
 0x25d   : > { %1531 = vadd.xlane.f32.xlu0 %v1530_v49  ;;  %v1679_v26 = vmul.f32 0.015625, %v1103_v0  ;;  %v1100_v32 = vpop.xlane.xlu0 %1099  ;;  %v2556_v50 = vunpack.c.l.b16 %v2262_v12  ;;  %v3226_v30 = vsel %vm2824_vm12, %v3225_v59, %v3221_v7  ;;  %v3773_v53 = vrot.slane %v2683_v37, %v5722_v45 }
 0x25e   : > { %v1678_v3 = vmul.f32 0.015625, %v1100_v32  ;;  %v3858_v44 = vsel %vm2824_vm12, %v3857_v61, %v3853_v16  ;;  %v3862_v34 = vrot.slane %v2701_v13, %v5762_v54  ;;  %v2684_v0 = vunpack.c.l.b16 %v2326_v43 }
 0x25f   : > { %v3146_v41 = vrot.slane %v2556_v50, %v5749_v4  ;;  %v3231_v32 = vsel %vm2831_vm13, %v3230_v57, %v3226_v30  ;;  %v3769_v7 = vsel %vm2810_vm10, %v3768_v42, %v3764_v36  ;;  %v2685_v55 = vunpack.c.h.b16 %v2326_v43 }
 0x260   : > { %v1487_v49 = vpop.xlane.xlu1 %1486  ;;  %v2271_v2 = vpack.c.bf16 %v1679_v26, %v1678_v3  ;;  %v2557_v26 = vunpack.c.h.b16 %v2262_v12  ;;  %v3863_v12 = vsel %vm2831_vm13, %v3862_v34, %v3858_v44  ;;  %v3778_v18 = vrot.slane %v2684_v0, %v5749_v4 }
 0x261   : > { %v1807_v39 = vmul.f32 0.015625, %v1487_v49  ;;  %v1484_v58 = vpop.xlane.xlu0 %1483  ;;  %v3142_v16 = vsel %vm2817_vm11, %v3141_v48, %v3137_v24  ;;  %v3774_v57 = vsel %vm2817_vm11, %v3773_v53, %v3769_v7  ;;  %v3783_v50 = vrot.slane %v2685_v55, %v5762_v54 }
 0x262   : > { %v2574_v63 = vunpack.c.l.b16 %v2271_v2  ;;  %v1806_v14 = vmul.f32 0.015625, %v1484_v58  ;;  %v2575_v28 = vunpack.c.h.b16 %v2271_v2  ;;  %v3151_v37 = vrot.slane %v2557_v26, %v5762_v54 }
 0x263   : > { %v3147_v58 = vsel %vm2824_vm12, %v3146_v41, %v3142_v16  ;;  %v3779_v24 = vsel %vm2824_vm12, %v3778_v18, %v3774_v57  ;;  %v2167_v16 = vunpack.c.h.s8.bf16 %v7095_v60 }
 0x264   : > { %v1055_v40 = vpop.xlane.xlu1 %1054  ;;  %v2335_v27 = vpack.c.bf16 %v1807_v39, %v1806_v14  ;;  %v3235_v35 = vrot.slane %v2574_v63, %v5821_v31  ;;  %v3240_v19 = vrot.slane %v2575_v28, %v5824_v17 }
 0x265   : > { %v1663_v22 = vmul.f32 0.015625, %v1055_v40  ;;  %v1052_v21 = vpop.xlane.xlu0 %1051 }
 0x266   : > { %v2702_v56 = vunpack.c.l.b16 %v2335_v27  ;;  %v2703_v6 = vunpack.c.h.b16 %v2335_v27  ;;  %v1662_v8 = vmul.f32 0.015625, %v1052_v21  ;;  %v3236_v49 = vsel %vm2838_vm14, %v3235_v35, %v3231_v32 }
 0x267   : > { %v3241_v14 = vsel %vm2845_vm15, %v3240_v19, %v3236_v49 }
 0x268   : > { %v1439_v47 = vpop.xlane.xlu1 %1438  ;;  %v3867_v11 = vrot.slane %v2702_v56, %v5821_v31  ;;  %v3872_v52 = vrot.slane %v2703_v6, %v5824_v17  ;;  %v2263_v51 = vpack.c.bf16 %v1663_v22, %v1662_v8  ;;  %v3152_v22 = vsel %vm2831_vm13, %v3151_v37, %v3147_v58 }
 0x269   : > { %v1791_v3 = vmul.f32 0.015625, %v1439_v47  ;;  %v1436_v38 = vpop.xlane.xlu0 %1435  ;;  %v3784_v6 = vsel %vm2831_vm13, %v3783_v50, %v3779_v24 }
 0x26a   : > { %v2558_v59 = vunpack.c.l.b16 %v2263_v51  ;;  %v1790_v2 = vmul.f32 0.015625, %v1436_v38  ;;  %v3868_v39 = vsel %vm2838_vm14, %v3867_v11, %v3863_v12  ;;  %v2559_v13 = vunpack.c.h.b16 %v2263_v51  ;;  %v1936_v11 = vld [vmem:[%s5221_s6 + $0x300] sm:$0xff] }
 0x26b   : > { %v3873_v36 = vsel %vm2845_vm15, %v3872_v52, %v3868_v39  ;;  %v1938_v52 = vld [vmem:[%s5221_s6 + $0x310] sm:$0xff]  ;;  %v2160_v12 = vunpack.c.l.s8.bf16 %v1936_v11  ;;  %v2165_v39 = vunpack.c.h.s8.bf16 %v7092_v5  ;;  %v2164_v57 = vunpack.c.h.s8.bf16 %v1936_v11  ;;  %v1940_v5 = vld [vmem:[%s5221_s6 + $0x320] sm:$0xff]  ;;  %v1947_v11 = vld [vmem:[%s5221_s6 + $0x358] sm:$0xff] }
 0x26c   : > { %v1157_v61 = vpop.xlane.xlu1 %1156  ;;  %v2327_v43 = vpack.c.bf16 %v1791_v3, %v1790_v2  ;;  %v3156_v28 = vrot.slane %v2558_v59, %v5821_v31  ;;  %v4038_v48 = vsel %vm4032_vm9, %v3873_v36, %v3241_v14  ;;  %v3161_v44 = vrot.slane %v2559_v13, %v5824_v17  ;;  %v1943_v36 = vld [vmem:[%s5221_s6 + $0x338] sm:$0xff] }
 0x26d   : > { %v1697_v63 = vmul.f32 0.015625, %v1157_v61  ;;  %v1154_v40 = vpop.xlane.xlu0 %1153  ;;  %v4046_v34 = vpack.c.b16 %v4038_v48, %v4038_v48  ;;  %v2162_v18 = vunpack.c.l.s8.bf16 %v1938_v52  ;;  %v1941_v61 = vld [vmem:[%s5221_s6 + $0x328] sm:$0xff]  ;;  %v2166_v50 = vunpack.c.h.s8.bf16 %v1938_v52 }
 0x26e   : > { %v2686_v42 = vunpack.c.l.b16 %v2327_v43  ;;  %v2687_v30 = vunpack.c.h.b16 %v2327_v43  ;;  %v1696_v27 = vmul.f32 0.015625, %v1154_v40  ;;  %v3157_v8 = vsel %vm2838_vm14, %v3156_v28, %v3152_v22  ;;  %v1942_v40 = vld [vmem:[%s5221_s6 + $0x330] sm:$0xff] }
 0x26f   : > { %4171 = vmatprep.mubr.bf16.mxu0 %v4046_v34  ;;  %4335 = vmatprep.mubr.bf16.mxu1 %v4046_v34  ;;  %v3162_v7 = vsel %vm2845_vm15, %v3161_v44, %v3157_v8  ;;  %v2169_v60 = vunpack.c.l.s8.bf16 %v1941_v61  ;;  %v2171_v28 = vunpack.c.l.s8.bf16 %v1943_v36  ;;  %v2168_v44 = vunpack.c.l.s8.bf16 %v1940_v5 }
 0x270   : > { %v1541_v53 = vpop.xlane.xlu1 %1540  ;;  %v3788_v35 = vrot.slane %v2686_v42, %v5821_v31  ;;  %v3793_v21 = vrot.slane %v2687_v30, %v5824_v17  ;;  %v2280_v0 = vpack.c.bf16 %v1697_v63, %v1696_v27  ;;  %v2175_v8 = vunpack.c.h.s8.bf16 %v1943_v36 }
 0x271   : > { %v1825_v56 = vmul.f32 0.015625, %v1541_v53  ;;  %v1538_v26 = vpop.xlane.xlu0 %1537 }
 0x272   : > { %v3789_v41 = vsel %vm2838_vm14, %v3788_v35, %v3784_v6  ;;  %v1824_v19 = vmul.f32 0.015625, %v1538_v26  ;;  %v2592_v58 = vunpack.c.l.b16 %v2280_v0  ;;  %v2593_v43 = vunpack.c.h.b16 %v2280_v0  ;;  %v7319_v26 = vld [vmem:[%s5221_s6 + $0x348] sm:$0xff] }
 0x273   : > { %v3794_v32 = vsel %vm2845_vm15, %v3793_v21, %v3789_v41  ;;  %v2170_v21 = vunpack.c.l.s8.bf16 %v1942_v40  ;;  %v2173_v6 = vunpack.c.h.s8.bf16 %v1941_v61 }
 0x274   : > { %v1109_v47 = vpop.xlane.xlu1 %1108  ;;  %v7302_v51 = vpack.c.bf16 %v1825_v56, %v1824_v19  ;;  %v4037_v38 = vsel %vm4032_vm9, %v3794_v32, %v3162_v7  ;;  %v3324_v42 = vrot.slane %v2592_v58, %v7637_v29  ;;  %v3328_v30 = vrot.slane %v2593_v43, %v7638_v15 }
 0x275   : > { %v1681_v3 = vmul.f32 0.015625, %v1109_v47  ;;  %v1106_v55 = vpop.xlane.xlu0 %1105  ;;  %v4045_v59 = vpack.c.b16 %v4037_v38, %v4037_v38  ;;  %v2172_v7 = vunpack.c.h.s8.bf16 %v1940_v5 }
 0x276   : > { %v1680_v49 = vmul.f32 0.015625, %v1106_v55  ;;  %v2720_v0 = vunpack.c.l.b16 %v7302_v51  ;;  %v2721_v56 = vunpack.c.h.b16 %v7302_v51  ;;  %v3329_v52 = vsel %vm2747_vm1, %v3328_v30, %v3324_v42 }
 0x277   : > { %4172 = vmatmul.mubr.bf16.vlgmr.msra.gmra.mrb[0].mxu0 %v4045_v59  ;;  %4336 = vmatmul.mubr.bf16.vlgmr.msra.gmra.mrb[0].mxu1 %v4045_v59  ;;  %v7333_v59 = vld [vmem:[%s5221_s6 + $0x350] sm:$0xff] }
 0x278   : > { %v1163_v2 = vpop.xlane.xlu1 %1162  ;;  %v7308_v37 = vpack.c.bf16 %v1681_v3, %v1680_v49  ;;  %4181 = vmatpush1.bf16.msra.mxu0 %v2160_v12  ;;  %4345 = vmatpush1.bf16.msra.mxu1 %v2162_v18  ;;  %v2174_v49 = vunpack.c.h.s8.bf16 %v1942_v40  ;;  %v2177_v12 = vunpack.c.l.s8.bf16 %v7319_v26  ;;  %v7330_v18 = vld [vmem:[%s5221_s6 + $0x340] sm:$0xff]  ;;  %v2181_v40 = vunpack.c.h.s8.bf16 %v7319_v26 }
 0x279   : > { %v1699_v13 = vmul.f32 0.015625, %v1163_v2  ;;  %v1160_v63 = vpop.xlane.xlu0 %1159  ;;  %4182 = vmatprep.subr.bf16.mxu0 %v2165_v39  ;;  %4346 = vmatprep.subr.bf16.mxu1 %v2167_v16  ;;  %v3956_v2 = vrot.slane %v2720_v0, %v7637_v29  ;;  %v3960_v39 = vrot.slane %v2721_v56, %v7638_v15  ;;  %v2182_v42 = vunpack.c.h.s8.bf16 %v7333_v59 }
 0x27a   : > { %v1698_v14 = vmul.f32 0.015625, %v1160_v63  ;;  %v2576_v61 = vunpack.c.l.b16 %v7308_v37  ;;  %v2577_v43 = vunpack.c.h.b16 %v7308_v37  ;;  %v2183_v37 = vunpack.c.h.s8.bf16 %v1947_v11 }
 0x27c   : > { %v2281_v48 = vpack.c.bf16 %v1699_v13, %v1698_v14  ;;  %4183 = vmatpush1.bf16.msra.mxu0 %v2164_v57  ;;  %4347 = vmatpush1.bf16.msra.mxu1 %v2166_v50  ;;  %v2179_v13 = vunpack.c.l.s8.bf16 %v1947_v11  ;;  %v2176_v57 = vunpack.c.l.s8.bf16 %v7330_v18  ;;  %v2178_v50 = vunpack.c.l.s8.bf16 %v7333_v59 }
 0x27d   : > { %v1493_v24 = vpop.xlane.xlu1 %1492  ;;  %v1490_v22 = vpop.xlane.xlu0 %1489  ;;  %4184 = vmatprep.subr.bf16.mxu0 %v2169_v60  ;;  %4348 = vmatprep.subr.bf16.mxu1 %v2171_v28  ;;  %v3245_v30 = vrot.slane %v2576_v61, %v7637_v29  ;;  %v3249_v0 = vrot.slane %v2577_v43, %v7638_v15 }
 0x27e   : > { %v1809_v27 = vmul.f32 0.015625, %v1493_v24  ;;  %v2594_v34 = vunpack.c.l.b16 %v2281_v48  ;;  %v2595_v53 = vunpack.c.h.b16 %v2281_v48  ;;  %v1808_v35 = vmul.f32 0.015625, %v1490_v22 }
 0x27f   : > { %v3961_v48 = vsel %vm2747_vm1, %v3960_v39, %v3956_v2  ;;  %v2180_v24 = vunpack.c.h.s8.bf16 %v7330_v18  ;;  %v3250_v59 = vsel %vm2747_vm1, %v3249_v0, %v3245_v30 }
 0x280   : > { %v3333_v41 = vrot.slane %v2594_v34, %v7639_v46  ;;  %v3338_v19 = vrot.slane %v2595_v53, %v7640_v25  ;;  %v7323_v47 = vpack.c.bf16 %v1809_v27, %v1808_v35  ;;  %4185 = vmatpush1.bf16.msra.mxu0 %v2168_v44  ;;  %4349 = vmatpush1.bf16.msra.mxu1 %v2170_v21  ;;  %v7352_v53 = vld [vmem:[%s5221_s6 + $0x368] sm:$0xff]  ;;  %v1951_v35 = vld [vmem:[%s5221_s6 + $0x378] sm:$0xff]  ;;  %v7356_v21 = vld [vmem:[%s5221_s6 + $0x360] sm:$0xff] }
 0x281   : > { %v1547_v32 = vpop.xlane.xlu1 %1546  ;;  %v1544_v51 = vpop.xlane.xlu0 %1543  ;;  %4186 = vmatprep.subr.bf16.mxu0 %v2173_v6  ;;  %4350 = vmatprep.subr.bf16.mxu1 %v2175_v8 }
 0x282   : > { %v1827_v3 = vmul.f32 0.015625, %v1547_v32  ;;  %v3334_v55 = vsel %vm2754_vm2, %v3333_v41, %v3329_v52  ;;  %v1826_v38 = vmul.f32 0.015625, %v1544_v51  ;;  %v2704_v56 = vunpack.c.l.b16 %v7323_v47  ;;  %v7362_v41 = vld [vmem:[%s5221_s6 + $0x370] sm:$0xff] }
 0x283   : > { %v7338_v16 = vsel %vm2761_vm3, %v3338_v19, %v3334_v55  ;;  %v2705_v6 = vunpack.c.h.b16 %v7323_v47  ;;  %v2185_v51 = vunpack.c.l.s8.bf16 %v7352_v53  ;;  %v2184_v47 = vunpack.c.l.s8.bf16 %v7356_v21 }
 0x284   : > { %v2345_v36 = vpack.c.bf16 %v1827_v3, %v1826_v38  ;;  %4187 = vmatpush1.bf16.msra.mxu0 %v2172_v7  ;;  %4351 = vmatpush1.bf16.msra.mxu1 %v2174_v49  ;;  %v2187_v7 = vunpack.c.l.s8.bf16 %v1951_v35  ;;  %v2186_v18 = vunpack.c.l.s8.bf16 %v7362_v41  ;;  %v3877_v2 = vrot.slane %v2704_v56, %v7637_v29 }
 0x285   : > { %v1115_v58 = vpop.xlane.xlu1 %1114  ;;  %4188 = vmatprep.subr.bf16.mxu0 %v2177_v12  ;;  %4352 = vmatprep.subr.bf16.mxu1 %v2179_v13  ;;  %v3881_v39 = vrot.slane %v2705_v6, %v7638_v15  ;;  %v2189_v29 = vunpack.c.h.s8.bf16 %v7352_v53  ;;  %v2190_v30 = vunpack.c.h.s8.bf16 %v7362_v41 }
 0x286   : > { %v1683_v63 = vmul.f32 0.015625, %v1115_v58  ;;  %v1112_v14 = vpop.xlane.xlu0 %1111  ;;  %v2722_v5 = vunpack.c.l.b16 %v2345_v36  ;;  %v2723_v60 = vunpack.c.h.b16 %v2345_v36 }
 0x287   : > { %v1682_v28 = vmul.f32 0.015625, %v1112_v14 }
 0x288   : > { %v3965_v27 = vrot.slane %v2722_v5, %v7639_v46  ;;  %v3970_v22 = vrot.slane %v2723_v60, %v7640_v25  ;;  %4189 = vmatpush1.bf16.msra.mxu0 %v2176_v57  ;;  %4353 = vmatpush1.bf16.msra.mxu1 %v2178_v50  ;;  %v2191_v57 = vunpack.c.h.s8.bf16 %v1951_v35 }
 0x289   : > { %v2273_v44 = vpack.c.bf16 %v1683_v63, %v1682_v28  ;;  %v1499_v34 = vpop.xlane.xlu1 %1498  ;;  %4190 = vmatprep.subr.bf16.mxu0 %v2181_v40  ;;  %4354 = vmatprep.subr.bf16.mxu1 %v2183_v37  ;;  %v1953_v28 = vld [vmem:[%s5221_s6 + $0x388] sm:$0xff]  ;;  %v1955_v40 = vld [vmem:[%s5221_s6 + $0x398] sm:$0xff] }
 0x28a   : > { %v1811_v8 = vmul.f32 0.015625, %v1499_v34  ;;  %v1496_v26 = vpop.xlane.xlu0 %1495  ;;  %v3966_v19 = vsel %vm2754_vm2, %v3965_v27, %v3961_v48  ;;  %v3882_v48 = vsel %vm2747_vm1, %v3881_v39, %v3877_v2  ;;  %v1954_v34 = vld [vmem:[%s5221_s6 + $0x390] sm:$0xff]  ;;  %v2193_v35 = vunpack.c.l.s8.bf16 %v1953_v28  ;;  %v1959_v2 = vld [vmem:[%s5221_s6 + $0x3b8] sm:$0xff] }
 0x28b   : > { %v2578_v32 = vunpack.c.l.b16 %v2273_v44  ;;  %v2579_v11 = vunpack.c.h.b16 %v2273_v44  ;;  %v1810_v52 = vmul.f32 0.015625, %v1496_v26  ;;  %v7366_v3 = vsel %vm2761_vm3, %v3970_v22, %v3966_v19 }
 0x28c   : > { %4191 = vmatpush1.bf16.msra.mxu0 %v2180_v24  ;;  %4355 = vmatpush1.bf16.msra.mxu1 %v2182_v42  ;;  %v2188_v42 = vunpack.c.h.s8.bf16 %v7356_v21  ;;  %v2195_v0 = vunpack.c.l.s8.bf16 %v1955_v40  ;;  %vm7654_vm1 = vcmask 326912  }
 0x28d   : > { %v3254_v55 = vrot.slane %v2578_v32, %v7639_v46  ;;  %v3259_v38 = vrot.slane %v2579_v11, %v7640_v25  ;;  %v2337_v49 = vpack.c.bf16 %v1811_v8, %v1810_v52  ;;  %v1169_v12 = vpop.xlane.xlu1 %1168  ;;  %4192 = vmatprep.subr.bf16.mxu0 %v2185_v51  ;;  %4356 = vmatprep.subr.bf16.mxu1 %v2187_v7  ;;  %v2194_v32 = vunpack.c.l.s8.bf16 %v1954_v34  ;;  %vm7658_vm0 = vmmov %vm7654_vm1 }
 0x28e   : > { %v1701_v13 = vmul.f32 0.015625, %v1169_v12  ;;  %v1166_v61 = vpop.xlane.xlu0 %1165  ;;  %vm7660_vm5 = vmmov %vm7658_vm0 }
 0x28f   : > { %v3255_v36 = vsel %vm2754_vm2, %v3254_v55, %v3250_v59  ;;  %v2706_v58 = vunpack.c.l.b16 %v2337_v49  ;;  %v2707_v43 = vunpack.c.h.b16 %v2337_v49  ;;  %v1700_v63 = vmul.f32 0.015625, %v1166_v61  ;;  %v1957_v59 = vld [vmem:[%s5221_s6 + $0x3a8] sm:$0xff] }
 0x290   : > { %v7378_v14 = vsel %vm2761_vm3, %v3259_v38, %v3255_v36  ;;  %4193 = vmatpush1.bf16.msra.mxu0 %v2184_v47  ;;  %4357 = vmatpush1.bf16.msra.mxu1 %v2186_v18  ;;  %v2197_v55 = vunpack.c.h.s8.bf16 %v1953_v28  ;;  %v2199_v38 = vunpack.c.h.s8.bf16 %v1955_v40  ;;  %v2198_v36 = vunpack.c.h.s8.bf16 %v1954_v34 }
 0x291   : > { %v3886_v15 = vrot.slane %v2706_v58, %v7639_v46  ;;  %v3891_v50 = vrot.slane %v2707_v43, %v7640_v25  ;;  %v2282_v5 = vpack.c.bf16 %v1701_v13, %v1700_v63  ;;  %v1553_v60 = vpop.xlane.xlu1 %1552  ;;  %v1952_v25 = vld [vmem:[%s5221_s6 + $0x380] sm:$0xff]  ;;  %4194 = vmatprep.subr.bf16.mxu0 %v2189_v29  ;;  %4358 = vmatprep.subr.bf16.mxu1 %v2191_v57 }
 0x292   : > { %v1829_v37 = vmul.f32 0.015625, %v1553_v60  ;;  %v1550_v24 = vpop.xlane.xlu0 %1549  ;;  %v2192_v19 = vunpack.c.l.s8.bf16 %v1952_v25  ;;  %v2196_v61 = vunpack.c.h.s8.bf16 %v1952_v25  ;;  %v1956_v57 = vld [vmem:[%s5221_s6 + $0x3a0] sm:$0xff]  ;;  %v1958_v60 = vld [vmem:[%s5221_s6 + $0x3b0] sm:$0xff]  ;;  %v2207_v25 = vunpack.c.h.s8.bf16 %v1959_v2 }
 0x293   : > { %v3887_v27 = vsel %vm2754_vm2, %v3886_v15, %v3882_v48  ;;  %v2596_v22 = vunpack.c.l.b16 %v2282_v5  ;;  %v2597_v46 = vunpack.c.h.b16 %v2282_v5  ;;  %v1828_v44 = vmul.f32 0.015625, %v1550_v24 }
 0x294   : > { %v7392_v53 = vsel %vm2761_vm3, %v3891_v50, %v3887_v27  ;;  %4195 = vmatpush1.bf16.msra.mxu0 %v2188_v42  ;;  %4359 = vmatpush1.bf16.msra.mxu1 %v2190_v30  ;;  %vm7655_vm2 = vcmask 392512   ;;  %vm7656_vm3 = vmmov %vm7654_vm1  ;;  %v2201_v50 = vunpack.c.l.s8.bf16 %v1957_v59  ;;  %v2203_v5 = vunpack.c.l.s8.bf16 %v1959_v2 }
 0x295   : > { %v3343_v21 = vrot.slane %v2596_v22, %v7641_v62  ;;  %v3348_v56 = vrot.slane %v2597_v46, %v7642_v1  ;;  %v2346_v6 = vpack.c.bf16 %v1829_v37, %v1828_v44  ;;  %v1121_v8 = vpop.xlane.xlu1 %1120  ;;  %4196 = vmatprep.subr.bf16.mxu0 %v2193_v35  ;;  %4360 = vmatprep.subr.bf16.mxu1 %v2195_v0  ;;  %vm7657_vm6 = vmmov %vm7655_vm2  ;;  %v2200_v24 = vunpack.c.l.s8.bf16 %v1956_v57 }
 0x296   : > { %v1685_v26 = vmul.f32 0.015625, %v1121_v8  ;;  %v1118_v41 = vpop.xlane.xlu0 %1117  ;;  %v2202_v22 = vunpack.c.l.s8.bf16 %v1958_v60  ;;  %vm7659_vm4 = vmmov %vm7655_vm2  ;;  %v2205_v44 = vunpack.c.h.s8.bf16 %v1957_v59  ;;  %v2204_v8 = vunpack.c.h.s8.bf16 %v1956_v57 }
 0x297   : > { %v3344_v11 = vsel %vm7654_vm1, %v3343_v21, %v7338_v16  ;;  %v2724_v52 = vunpack.c.l.b16 %v2346_v6  ;;  %v2725_v51 = vunpack.c.h.b16 %v2346_v6  ;;  %v1684_v7 = vmul.f32 0.015625, %v1118_v41  ;;  %v1963_v21 = vld [vmem:[%s5221_s6 + $0x3d8] sm:$0xff]  ;;  %vm7661_vm7 = vmmov %vm7655_vm2 }
 0x298   : > { %v7399_v47 = vsel %vm7655_vm2, %v3348_v56, %v3344_v11  ;;  %4197 = vmatpush1.bf16.msra.mxu0 %v2192_v19  ;;  %4361 = vmatpush1.bf16.msra.mxu1 %v2194_v32  ;;  %v1960_v19 = vld [vmem:[%s5221_s6 + $0x3c0] sm:$0xff]  ;;  %v1962_v32 = vld [vmem:[%s5221_s6 + $0x3d0] sm:$0xff]  ;;  %vm7662_vm1 = vcmask 458112  }
 0x299   : > { %v3975_v49 = vrot.slane %v2724_v52, %v7641_v62  ;;  %v3980_v12 = vrot.slane %v2725_v51, %v7642_v1  ;;  %v2274_v18 = vpack.c.bf16 %v1685_v26, %v1684_v7  ;;  %v1505_v16 = vpop.xlane.xlu1 %1504  ;;  %4198 = vmatprep.subr.bf16.mxu0 %v2197_v55  ;;  %4362 = vmatprep.subr.bf16.mxu1 %v2199_v38  ;;  %v2206_v26 = vunpack.c.h.s8.bf16 %v1958_v60  ;;  %vm7663_vm2 = vmmov %vm7662_vm1 }
 0x29a   : > { %v1813_v39 = vmul.f32 0.015625, %v1505_v16  ;;  %v1502_v13 = vpop.xlane.xlu0 %1501  ;;  %v2210_v51 = vunpack.c.l.s8.bf16 %v1962_v32  ;;  %v2215_v55 = vunpack.c.h.s8.bf16 %v1963_v21  ;;  %v2212_v16 = vunpack.c.h.s8.bf16 %v1960_v19 }
 0x29b   : > { %v3976_v58 = vsel %vm7656_vm3, %v3975_v49, %v7366_v3  ;;  %v2580_v43 = vunpack.c.l.b16 %v2274_v18  ;;  %v2581_v63 = vunpack.c.h.b16 %v2274_v18  ;;  %v1812_v29 = vmul.f32 0.015625, %v1502_v13  ;;  %v1965_v49 = vld [vmem:[%s5221_s6 + $0x3e8] sm:$0xff]  ;;  %v1964_v13 = vld [vmem:[%s5221_s6 + $0x3e0] sm:$0xff]  ;;  %vm7664_vm3 = vmmov %vm7662_vm1 }
 0x29c   : > { %v7409_v15 = vsel %vm7657_vm6, %v3980_v12, %v3976_v58  ;;  %4199 = vmatpush1.bf16.msra.mxu0 %v2196_v61  ;;  %4363 = vmatpush1.bf16.msra.mxu1 %v2198_v36  ;;  %v1967_v12 = vld [vmem:[%s5221_s6 + $0x3f8] sm:$0xff]  ;;  %v2214_v59 = vunpack.c.h.s8.bf16 %v1962_v32  ;;  %v2217_v2 = vunpack.c.l.s8.bf16 %v1965_v49  ;;  %v1966_v61 = vld [vmem:[%s5221_s6 + $0x3f0] sm:$0xff]  ;;  %v2220_v60 = vunpack.c.h.s8.bf16 %v1964_v13 }
 0x29d   : > { %v3264_v28 = vrot.slane %v2580_v43, %v7641_v62  ;;  %v3269_v40 = vrot.slane %v2581_v63, %v7642_v1  ;;  %v2338_v48 = vpack.c.bf16 %v1813_v39, %v1812_v29  ;;  %v7414_v3 = vpop.xlane.xlu1 %1174  ;;  %4200 = vmatprep.subr.bf16.mxu0 %v2201_v50  ;;  %4364 = vmatprep.subr.bf16.mxu1 %v2203_v5  ;;  %v2219_v39 = vunpack.c.l.s8.bf16 %v1967_v12 }
 0x29e   : > { %v7416_v37 = vpop.xlane.xlu0 %1171  ;;  %v2216_v43 = vunpack.c.l.s8.bf16 %v1964_v13  ;;  %v2218_v63 = vunpack.c.l.s8.bf16 %v1966_v61  ;;  %v2221_v29 = vunpack.c.h.s8.bf16 %v1965_v49  ;;  %v2223_v57 = vunpack.c.h.s8.bf16 %v1967_v12 }
 0x29f   : > { %v3265_v42 = vsel %vm7658_vm0, %v3264_v28, %v7378_v14  ;;  %v2708_v30 = vunpack.c.l.b16 %v2338_v48  ;;  %v2709_v27 = vunpack.c.h.b16 %v2338_v48  ;;  %v1961_v14 = vld [vmem:[%s5221_s6 + $0x3c8] sm:$0xff]  ;;  %v2222_v28 = vunpack.c.h.s8.bf16 %v1966_v61  ;;  %s4590_s6 = sshll.u32 %s4692_s17, 2 }
 0x2a0   : > { %v7421_v46 = vsel %vm7659_vm4, %v3269_v40, %v3265_v42  ;;  %4201 = vmatpush1.bf16.msra.mxu0 %v2200_v24  ;;  %4365 = vmatpush1.bf16.msra.mxu1 %v2202_v22  ;;  %v2213_v7 = vunpack.c.h.s8.bf16 %v1961_v14  ;;  %vm7665_vm6 = vcmask 523712   ;;  %p540_p9 = scmp.lt.s32.totalorder %s4590_s6, 7 }
 0x2a1   : > { %v3896_v34 = vrot.slane %v2708_v30, %v7641_v62  ;;  %v3901_v35 = vrot.slane %v2709_v27, %v7642_v1  ;;  %v7425_v0 = vpop.xlane.xlu1 %1558  ;;  %4202 = vmatprep.subr.bf16.mxu0 %v2205_v44  ;;  %4366 = vmatprep.subr.bf16.mxu1 %v2207_v25  ;;  %v2209_v62 = vunpack.c.l.s8.bf16 %v1961_v14  ;;  %v2211_v1 = vunpack.c.l.s8.bf16 %v1963_v21  ;;  %vm7666_vm0 = vmmov %vm7665_vm6 }
 0x2a2   : > { %v7429_v56 = vpop.xlane.xlu0 %1555  ;;  %v1703_v30 = vmul.f32 0.015625, %v7414_v3  ;;  %v1702_v27 = vmul.f32 0.015625, %v7416_v37  ;;  %v1831_v44 = vmul.f32 0.015625, %v7425_v0  ;;  %vm7667_vm4 = vmmov %vm7666_vm0  ;;  %s7682_s6 = smov (!%p540_p9, %s4590_s6), 7 }
 0x2a3   : > { %v3897_v6 = vsel %vm7660_vm5, %v3896_v34, %v7392_v53  ;;  %v2208_v53 = vunpack.c.l.s8.bf16 %v1960_v19  ;;  %v1830_v25 = vmul.f32 0.015625, %v7429_v56  ;;  %vm7668_vm5 = vmmov %vm7662_vm1  ;;  %s542_s8 = scalar_lea.vmem %s7572_s2, %s7682_s6  ;;  %s547_s11 = scalar_lea.vmem %s7573_s3, %s7682_s6 }
 0x2a4   : > { %v7434_v41 = vsel %vm7661_vm7, %v3901_v35, %v3897_v6  ;;  %4203 = vmatpush1.bf16.msra.mxu0 %v2204_v8  ;;  %4367 = vmatpush1.bf16.msra.mxu1 %v2206_v26  ;;  %v2283_v21 = vpack.c.bf16 %v1703_v30, %v1702_v27  ;;  %vm7669_vm7 = vmmov %vm7666_vm0  ;;  %s4593_s17 = sshll.u32 %s7682_s6, 1 }
 0x2a5   : > { %v1127_v11 = vpop.xlane.xlu1 %1126  ;;  %4204 = vmatprep.subr.bf16.mxu0 %v2209_v62  ;;  %4368 = vmatprep.subr.bf16.mxu1 %v2211_v1  ;;  %v2347_v8 = vpack.c.bf16 %v1831_v44, %v1830_v25  ;;  %s557_s14 = scalar_lea.vmem %s7574_s4, %s4593_s17 }
 0x2a6   : > { %v1124_v52 = vpop.xlane.xlu0 %1123  ;;  %v1687_v34 = vmul.f32 0.015625, %v1127_v11  ;;  %v2598_v3 = vunpack.c.l.b16 %v2283_v21  ;;  %v2599_v49 = vunpack.c.h.b16 %v2283_v21 }
 0x2a7   : > { %v1686_v35 = vmul.f32 0.015625, %v1124_v52  ;;  %v2726_v37 = vunpack.c.l.b16 %v2347_v8 }
 0x2a8   : > { %4205 = vmatpush1.bf16.msra.mxu0 %v2208_v53  ;;  %4369 = vmatpush1.bf16.msra.mxu1 %v2210_v51  ;;  %v3353_v12 = vrot.slane %v2598_v3, %v5674_v9 }
 0x2a9   : > { %v1511_v38 = vpop.xlane.xlu1 %1510  ;;  %4206 = vmatprep.subr.bf16.mxu0 %v2213_v7  ;;  %4370 = vmatprep.subr.bf16.mxu1 %v2215_v55  ;;  %v2275_v26 = vpack.c.bf16 %v1687_v34, %v1686_v35 }
 0x2aa   : > { %v1508_v18 = vpop.xlane.xlu0 %1507  ;;  %v1815_v62 = vmul.f32 0.015625, %v1511_v38 }
 0x2ab   : > { %v1814_v1 = vmul.f32 0.015625, %v1508_v18  ;;  %v2582_v7 = vunpack.c.l.b16 %v2275_v26  ;;  %v3985_v18 = vrot.slane %v2726_v37, %v5674_v9 }
 0x2ac   : > { %4207 = vmatpush1.bf16.msra.mxu0 %v2212_v16  ;;  %4371 = vmatpush1.bf16.msra.mxu1 %v2214_v59  ;;  %v2727_v16 = vunpack.c.h.b16 %v2347_v8 }
 0x2ad   : > { %v1181_v36 = vpop.xlane.xlu1 %1180  ;;  %4208 = vmatprep.subr.bf16.mxu0 %v2217_v2  ;;  %4372 = vmatprep.subr.bf16.mxu1 %v2219_v39  ;;  %v2339_v55 = vpack.c.bf16 %v1815_v62, %v1814_v1  ;;  %v2583_v39 = vunpack.c.h.b16 %v2275_v26  ;;  %v3274_v13 = vrot.slane %v2582_v7, %v5674_v9  ;;  %v3986_v30 = vsel %vm7663_vm2, %v3985_v18, %v7409_v15 }
 0x2ae   : > { %v1178_v58 = vpop.xlane.xlu0 %1177  ;;  %v1705_v32 = vmul.f32 0.015625, %v1181_v36 }
 0x2af   : > { %v1704_v53 = vmul.f32 0.015625, %v1178_v58  ;;  %v2710_v61 = vunpack.c.l.b16 %v2339_v55  ;;  %v3279_v27 = vrot.slane %v2583_v39, %v5677_v10  ;;  %v3275_v44 = vsel %vm7664_vm3, %v3274_v13, %v7421_v46 }
 0x2b0   : > { %4209 = vmatpush1.bf16.msra.mxu0 %v2216_v43  ;;  %4373 = vmatpush1.bf16.msra.mxu1 %v2218_v63 }
 0x2b1   : > { %v1565_v50 = vpop.xlane.xlu1 %1564  ;;  %4210 = vmatprep.subr.bf16.mxu0 %v2221_v29  ;;  %4374 = vmatprep.subr.bf16.mxu1 %v2223_v57  ;;  %v2284_v56 = vpack.c.bf16 %v1705_v32, %v1704_v53  ;;  %v3280_v53 = vsel %vm7667_vm4, %v3279_v27, %v3275_v44 }
 0x2b2   : > { %v1562_v5 = vpop.xlane.xlu0 %1561  ;;  %v1833_v11 = vmul.f32 0.015625, %v1565_v50 }
 0x2b3   : > { %v1832_v52 = vmul.f32 0.015625, %v1562_v5  ;;  %v2600_v57 = vunpack.c.l.b16 %v2284_v56  ;;  %v3354_v5 = vsel %vm7662_vm1, %v3353_v12, %v7399_v47  ;;  %v2601_v25 = vunpack.c.h.b16 %v2284_v56 }
 0x2b4   : > { %4211 = vmatpush1.bf16.msra.mxu0 %v2220_v60  ;;  %4375 = vmatpush1.bf16.msra.mxu1 %v2222_v28  ;;  %v3358_v60 = vrot.slane %v2599_v49, %v5677_v10  ;;  %v3990_v28 = vrot.slane %v2727_v16, %v5677_v10  ;;  %vm7670_vm1 = vcmask 654912  }
 0x2b5   : > { %v1133_v40 = vpop.xlane.xlu1 %1132  ;;  %v2348_v50 = vpack.c.bf16 %v1833_v11, %v1832_v52  ;;  %v3363_v35 = vrot.slane %v2600_v57, %v5690_v20  ;;  %v3368_v7 = vrot.slane %v2601_v25, %v5693_v23  ;;  %vm7671_vm2 = vmmov %vm7670_vm1 }
 0x2b6   : > { %v1130_v48 = vpop.xlane.xlu0 %1129  ;;  %v1689_v59 = vmul.f32 0.015625, %v1133_v40  ;;  %v3359_v26 = vsel %vm7665_vm6, %v3358_v60, %v3354_v5  ;;  %vm7672_vm3 = vmmov %vm7670_vm1 }
 0x2b7   : > { %v1688_v2 = vmul.f32 0.015625, %v1130_v48  ;;  %v3364_v49 = vsel %vm2796_vm8, %v3363_v35, %v3359_v26  ;;  %vm7673_vm6 = vmmov %vm7670_vm1 }
 0x2b9   : > { %v1517_v24 = vpop.xlane.xlu1 %1516  ;;  %v2276_v40 = vpack.c.bf16 %v1689_v59, %v1688_v2 }
 0x2ba   : > { %v1514_v42 = vpop.xlane.xlu0 %1513  ;;  %v1817_v58 = vmul.f32 0.015625, %v1517_v24  ;;  %v2711_v24 = vunpack.c.h.b16 %v2339_v55 }
 0x2bb   : > { %v1816_v43 = vmul.f32 0.015625, %v1514_v42  ;;  %v3906_v42 = vrot.slane %v2710_v61, %v5674_v9  ;;  %v2584_v15 = vunpack.c.l.b16 %v2276_v40  ;;  %v3991_v9 = vsel %vm7666_vm0, %v3990_v28, %v3986_v30 }
 0x2bc   : > { %v3911_v3 = vrot.slane %v2711_v24, %v5677_v10 }
 0x2bd   : > { %v1187_v22 = vpop.xlane.xlu1 %1186  ;;  %v2340_v47 = vpack.c.bf16 %v1817_v58, %v1816_v43  ;;  %v3907_v46 = vsel %vm7668_vm5, %v3906_v42, %v7434_v41  ;;  %v3284_v11 = vrot.slane %v2584_v15, %v5690_v20 }
 0x2be   : > { %v1184_v14 = vpop.xlane.xlu0 %1183  ;;  %v1707_v63 = vmul.f32 0.015625, %v1187_v22  ;;  %v3912_v13 = vsel %vm7669_vm7, %v3911_v3, %v3907_v46 }
 0x2bf   : > { %v1706_v29 = vmul.f32 0.015625, %v1184_v14  ;;  %v2728_v14 = vunpack.c.l.b16 %v2348_v50  ;;  %v2713_v59 = vunpack.c.h.b16 %v2340_v47  ;;  %v3285_v30 = vsel %vm2796_vm8, %v3284_v11, %v3280_v53 }
 0x2c1   : > { %v1571_v6 = vpop.xlane.xlu1 %1570  ;;  %v2285_v34 = vpack.c.bf16 %v1707_v63, %v1706_v29  ;;  %v3369_v63 = vsel %vm7670_vm1, %v3368_v7, %v3364_v49  ;;  %v3921_v27 = vrot.slane %v2713_v59, %v5693_v23 }
 0x2c2   : > { %v1568_v19 = vpop.xlane.xlu0 %1567  ;;  %v1835_v21 = vmul.f32 0.015625, %v1571_v6  ;;  %v2729_v6 = vunpack.c.h.b16 %v2348_v50 }
 0x2c3   : > { %v1834_v8 = vmul.f32 0.015625, %v1568_v19  ;;  %v2712_v19 = vunpack.c.l.b16 %v2340_v47  ;;  %v2602_v55 = vunpack.c.l.b16 %v2285_v34  ;;  %v2603_v10 = vunpack.c.h.b16 %v2285_v34 }
 0x2c4   : > { %v4000_v61 = vrot.slane %v2729_v6, %v5693_v23 }
 0x2c5   : > { %v1139_v51 = vpop.xlane.xlu1 %1138  ;;  %v2349_v56 = vpack.c.bf16 %v1835_v21, %v1834_v8  ;;  %v3916_v58 = vrot.slane %v2712_v19, %v5690_v20  ;;  %v3373_v43 = vrot.slane %v2602_v55, %v5706_v33 }
 0x2c6   : > { %v1136_v0 = vpop.xlane.xlu0 %1135  ;;  %v1691_v62 = vmul.f32 0.015625, %v1139_v51  ;;  %v3995_v51 = vrot.slane %v2728_v14, %v5690_v20  ;;  %v3378_v20 = vrot.slane %v2603_v10, %v5722_v45 }
 0x2c7   : > { %v1690_v1 = vmul.f32 0.015625, %v1136_v0  ;;  %v2585_v0 = vunpack.c.h.b16 %v2276_v40  ;;  %v2730_v50 = vunpack.c.l.b16 %v2349_v56  ;;  %v3917_v44 = vsel %vm2796_vm8, %v3916_v58, %v3912_v13 }
 0x2c8   : > { %v3996_v29 = vsel %vm2796_vm8, %v3995_v51, %v3991_v9  ;;  %v3374_v25 = vsel %vm2810_vm10, %v3373_v43, %v3369_v63  ;;  %v2731_v47 = vunpack.c.h.b16 %v2349_v56  ;;  %v3922_v15 = vsel %vm7673_vm6, %v3921_v27, %v3917_v44 }
 0x2c9   : > { %v7447_v38 = vpop.xlane.xlu1 %1522  ;;  %v2277_v52 = vpack.c.bf16 %v1691_v62, %v1690_v1  ;;  %v3289_v57 = vrot.slane %v2585_v0, %v5693_v23  ;;  %v3379_v62 = vsel %vm2817_vm11, %v3378_v20, %v3374_v25 }
 0x2ca   : > { %v1520_v36 = vpop.xlane.xlu0 %1519  ;;  %v1819_v60 = vmul.f32 0.015625, %v7447_v38  ;;  %v4005_v38 = vrot.slane %v2730_v50, %v5706_v33  ;;  %v4010_v53 = vrot.slane %v2731_v47, %v5722_v45 }
 0x2cb   : > { %v2586_v5 = vunpack.c.l.b16 %v2277_v52  ;;  %v1818_v28 = vmul.f32 0.015625, %v1520_v36  ;;  %v2587_v36 = vunpack.c.h.b16 %v2277_v52  ;;  %v3290_v14 = vsel %vm7672_vm3, %v3289_v57, %v3285_v30 }
 0x2cd   : > { %v1193_v48 = vpop.xlane.xlu1 %1192  ;;  %v3294_v23 = vrot.slane %v2586_v5, %v5706_v33  ;;  %v2341_v21 = vpack.c.bf16 %v1819_v60, %v1818_v28  ;;  %v3299_v6 = vrot.slane %v2587_v36, %v5722_v45 }
 0x2ce   : > { %v1190_v22 = vpop.xlane.xlu0 %1189  ;;  %v1709_v12 = vmul.f32 0.015625, %v1193_v48 }
 0x2cf   : > { %v1708_v16 = vmul.f32 0.015625, %v1190_v22  ;;  %v4001_v22 = vsel %vm7671_vm2, %v4000_v61, %v3996_v29  ;;  %v3295_v49 = vsel %vm2810_vm10, %v3294_v23, %v3290_v14  ;;  %v2714_v51 = vunpack.c.l.b16 %v2341_v21 }
 0x2d0   : > { %v4006_v7 = vsel %vm2810_vm10, %v4005_v38, %v4001_v22  ;;  %v2715_v52 = vunpack.c.h.b16 %v2341_v21  ;;  %v3300_v13 = vsel %vm2817_vm11, %v3299_v6, %v3295_v49 }
 0x2d1   : > { %v1577_v32 = vpop.xlane.xlu1 %1576  ;;  %v2286_v40 = vpack.c.bf16 %v1709_v12, %v1708_v16  ;;  %v4011_v10 = vsel %vm2817_vm11, %v4010_v53, %v4006_v7  ;;  %v3926_v63 = vrot.slane %v2714_v51, %v5706_v33 }
 0x2d2   : > { %v1574_v37 = vpop.xlane.xlu0 %1573  ;;  %v1837_v2 = vmul.f32 0.015625, %v1577_v32  ;;  %v3931_v60 = vrot.slane %v2715_v52, %v5722_v45 }
 0x2d3   : > { %v1836_v18 = vmul.f32 0.015625, %v1574_v37  ;;  %v2604_v8 = vunpack.c.l.b16 %v2286_v40  ;;  %v2605_v19 = vunpack.c.h.b16 %v2286_v40 }
 0x2d5   : > { %v1145_v41 = vpop.xlane.xlu1 %1144  ;;  %v2350_v24 = vpack.c.bf16 %v1837_v2, %v1836_v18  ;;  %v3383_v0 = vrot.slane %v2604_v8, %v5749_v4  ;;  %v3388_v61 = vrot.slane %v2605_v19, %v5762_v54 }
 0x2d6   : > { %v1142_v39 = vpop.xlane.xlu0 %1141  ;;  %v1693_v34 = vmul.f32 0.015625, %v1145_v41 }
 0x2d7   : > { %v1692_v35 = vmul.f32 0.015625, %v1142_v39  ;;  %v2732_v1 = vunpack.c.l.b16 %v2350_v24  ;;  %v2733_v12 = vunpack.c.h.b16 %v2350_v24  ;;  %v3384_v29 = vsel %vm2824_vm12, %v3383_v0, %v3379_v62 }
 0x2d8   : > { %v3389_v25 = vsel %vm2831_vm13, %v3388_v61, %v3384_v29 }
 0x2d9   : > { %v1529_v48 = vpop.xlane.xlu1 %1528  ;;  %v2278_v55 = vpack.c.bf16 %v1693_v34, %v1692_v35  ;;  %v4015_v16 = vrot.slane %v2732_v1, %v5749_v4  ;;  %v4020_v40 = vrot.slane %v2733_v12, %v5762_v54  ;;  %v3927_v35 = vsel %vm2810_vm10, %v3926_v63, %v3922_v15 }
 0x2da   : > { %v1526_v42 = vpop.xlane.xlu0 %1525  ;;  %v1821_v46 = vmul.f32 0.015625, %v1529_v48  ;;  %v4702_v63 = vmov 1983009808  }
 0x2db   : > { %v1820_v3 = vmul.f32 0.015625, %v1526_v42  ;;  %v2588_v58 = vunpack.c.l.b16 %v2278_v55  ;;  %v4016_v28 = vsel %vm2824_vm12, %v4015_v16, %v4011_v10  ;;  %v2589_v22 = vunpack.c.h.b16 %v2278_v55 }
 0x2dc   : > { %v4021_v8 = vsel %vm2831_vm13, %v4020_v40, %v4016_v28  ;;  %v4444_v29 = vunpack.c.l.s4 %v4702_v63 }
 0x2dd   : > { %v1199_v26 = vpop.xlane.xlu1 %1198  ;;  %v2342_v2 = vpack.c.bf16 %v1821_v46, %v1820_v3  ;;  %v3304_v33 = vrot.slane %v2588_v58, %v5749_v4 }
 0x2de   : > { %v1711_v32 = vmul.f32 0.015625, %v1199_v26  ;;  %v1196_v9 = vpop.xlane.xlu0 %1195 }
 0x2df   : > { %v1710_v37 = vmul.f32 0.015625, %v1196_v9  ;;  %v2716_v27 = vunpack.c.l.b16 %v2342_v2  ;;  %v2717_v14 = vunpack.c.h.b16 %v2342_v2  ;;  %v3309_v9 = vrot.slane %v2589_v22, %v5762_v54 }
 0x2e0   : > { %v3305_v15 = vsel %vm2824_vm12, %v3304_v33, %v3300_v13  ;;  %v4385_v13 = vld [vmem:[%s542_s8] sm:$0xf] }
 0x2e1   : > { %v2287_v56 = vpack.c.bf16 %v1711_v32, %v1710_v37  ;;  %v1583_v11 = vpop.xlane.xlu1 %1582  ;;  %v3936_v26 = vrot.slane %v2716_v27, %v5749_v4  ;;  %v3932_v4 = vsel %vm2817_vm11, %v3931_v60, %v3927_v35  ;;  %v3941_v19 = vrot.slane %v2717_v14, %v5762_v54 }
 0x2e2   : > { %v1839_v41 = vmul.f32 0.015625, %v1583_v11  ;;  %v1580_v59 = vpop.xlane.xlu0 %1579 }
 0x2e3   : > { %v2606_v18 = vunpack.c.l.b16 %v2287_v56  ;;  %v1838_v39 = vmul.f32 0.015625, %v1580_v59  ;;  %v2607_v43 = vunpack.c.h.b16 %v2287_v56  ;;  %v3937_v49 = vsel %vm2824_vm12, %v3936_v26, %v3932_v4 }
 0x2e4   : > { %v3310_v56 = vsel %vm2831_vm13, %v3309_v9, %v3305_v15  ;;  %v3942_v54 = vsel %vm2831_vm13, %v3941_v19, %v3937_v49 }
 0x2e5   : > { %v3393_v57 = vrot.slane %v2606_v18, %v5821_v31  ;;  %v2351_v50 = vpack.c.bf16 %v1839_v41, %v1838_v39  ;;  %v1151_v5 = vpop.xlane.xlu1 %1150  ;;  %v3398_v44 = vrot.slane %v2607_v43, %v5824_v17  ;;  %v4411_v43 = vld [vmem:[%s547_s11] sm:$0xf] }
 0x2e6   : > { %v1695_v48 = vmul.f32 0.015625, %v1151_v5  ;;  %v1148_v30 = vpop.xlane.xlu0 %1147 }
 0x2e7   : > { %v2734_v20 = vunpack.c.l.b16 %v2351_v50  ;;  %v2735_v24 = vunpack.c.h.b16 %v2351_v50  ;;  %v1694_v42 = vmul.f32 0.015625, %v1148_v30  ;;  %v3394_v34 = vsel %vm2838_vm14, %v3393_v57, %v3389_v25 }
 0x2e8   : > { %v3399_v46 = vsel %vm2845_vm15, %v3398_v44, %v3394_v34 }
 0x2e9   : > { %v4025_v47 = vrot.slane %v2734_v20, %v5821_v31  ;;  %v4030_v45 = vrot.slane %v2735_v24, %v5824_v17  ;;  %v2279_v38 = vpack.c.bf16 %v1695_v48, %v1694_v42  ;;  %v1535_v36 = vpop.xlane.xlu1 %1534  ;;  %v4445_v20 = vunpack.c.0.s8 %v4444_v29 }
 0x2ea   : > { %v1823_v23 = vmul.f32 0.015625, %v1535_v36  ;;  %v1532_v21 = vpop.xlane.xlu0 %1531 }
 0x2eb   : > { %v2590_v62 = vunpack.c.l.b16 %v2279_v38  ;;  %v1822_v1 = vmul.f32 0.015625, %v1532_v21  ;;  %v4026_v32 = vsel %vm2838_vm14, %v4025_v47, %v4021_v8  ;;  %v2591_v53 = vunpack.c.h.b16 %v2279_v38 }
 0x2ec   : > { %v4031_v3 = vsel %vm2845_vm15, %v4030_v45, %v4026_v32 }
 0x2ed   : > { %v3314_v37 = vrot.slane %v2590_v62, %v5821_v31  ;;  %v2343_v7 = vpack.c.bf16 %v1823_v23, %v1822_v1  ;;  %v4040_v6 = vsel %vm4032_vm9, %v4031_v3, %v3399_v46  ;;  %v3319_v11 = vrot.slane %v2591_v53, %v5824_v17 }
 0x2ee   : > { %v4048_v55 = vpack.c.b16 %v4040_v6, %v4040_v6 }
 0x2ef   : > { %v2718_v51 = vunpack.c.l.b16 %v2343_v7  ;;  %v2719_v0 = vunpack.c.h.b16 %v2343_v7  ;;  %v3315_v52 = vsel %vm2838_vm14, %v3314_v37, %v3310_v56 }
 0x2f0   : > { %4212 = vmatprep.mubr.bf16.mxu0 %v4048_v55  ;;  %4376 = vmatprep.mubr.bf16.mxu1 %v4048_v55  ;;  %v3320_v59 = vsel %vm2845_vm15, %v3319_v11, %v3315_v52 }
 0x2f1   : > { %v3946_v12 = vrot.slane %v2718_v51, %v5821_v31  ;;  %v3951_v16 = vrot.slane %v2719_v0, %v5824_v17  ;;  %v7674_v17 = vld [vmem:[#allocation3_spill] sm:$0xff] }
 0x2f2   : > { %v4389_v31 = vsub.s32 0, %v7674_v17  ;;  %v4397_v39 = vsub.s32 2, %v7674_v17  ;;  %v4393_v61 = vsub.s32 1, %v7674_v17  ;;  %v4401_v58 = vsub.s32 3, %v7674_v17 }
 0x2f3   : > { %v3947_v41 = vsel %vm2838_vm14, %v3946_v12, %v3942_v54  ;;  %v4448_v21 = vsub.s32 %v4445_v20, %v7674_v17 }
 0x2f4   : > { %v3952_v10 = vsel %vm2845_vm15, %v3951_v16, %v3947_v41  ;;  %v4390_v57 = vrot.slane %v4385_v13, %v4389_v31  ;;  %v4398_v50 = vrot.slane %v4385_v13, %v4397_v39  ;;  %v4394_v5 = vrot.slane %v4385_v13, %v4393_v61 }
 0x2f5   : > { %v4039_v2 = vsel %vm4032_vm9, %v3952_v10, %v3320_v59  ;;  %v4402_v60 = vrot.slane %v4385_v13, %v4401_v58  ;;  %v4416_v28 = vrot.slane %v4411_v43, %v4389_v31  ;;  %v4424_v40 = vrot.slane %v4411_v43, %v4397_v39 }
 0x2f6   : > { %v4047_v18 = vpack.c.b16 %v4039_v2, %v4039_v2  ;;  %v4420_v27 = vrot.slane %v4411_v43, %v4393_v61  ;;  %v4428_v24 = vrot.slane %v4411_v43, %v4401_v58 }
 0x2f8   : > { %4213 = vmatmul.mubr.bf16.vlgmr.msra.gmra.mrb[0].mxu0 %v4047_v18  ;;  %4377 = vmatmul.mubr.bf16.vlgmr.msra.gmra.mrb[0].mxu1 %v4047_v18 }
 0x3cb   : > { %v4214_v48 = vpop.f32.mrb[0].mxu0  ;;  %v4378_v30 = vpop.f32.mrb[0].mxu1 }
 0x3cc   : > { %v4407_v42 = vmul.f32 %v4390_v57, %v4214_v48  ;;  %v4409_v22 = vmul.f32 %v4398_v50, %v4378_v30  ;;  %v4216_v33 = vpop.f32.mrb[1].mxu0  ;;  %v4380_v44 = vpop.f32.mrb[1].mxu1 }
 0x3cd   : > { %v4408_v25 = vmul.f32 %v4394_v5, %v4216_v33  ;;  %v4410_v47 = vmul.f32 %v4402_v60, %v4380_v44  ;;  %v4218_v45 = vpop.f32.mrb[2].mxu0  ;;  %v4382_v38 = vpop.f32.mrb[2].mxu1 }
 0x3ce   : > { %v4433_v36 = vadd.f32 %v4416_v28, %v4407_v42  ;;  %v4435_v34 = vadd.f32 %v4424_v40, %v4409_v22  ;;  %v4219_v35 = vpop.f32.mrb[3].mxu0  ;;  %v4383_v14 = vpop.f32.mrb[3].mxu1 }
 0x3cf   : > { %v4434_v23 = vadd.f32 %v4420_v27, %v4408_v25  ;;  %v4436_v8 = vadd.f32 %v4428_v24, %v4410_v47 }
 0x3d1   : > { %v4441_v26 = vcombine.low %v4433_v36, %v4434_v23  ;;  %v4442_v62 = vcombine.low %v4435_v34, %v4436_v8 }
 0x3d3   : > { %v4449_v1 = vrot.slane %v4441_v26, %v4448_v21  ;;  %v4456_v32 = vrot.slane %v4442_v62, %v4448_v21 }
 0x3d5   : > { %v4457_v9 = vcombine.low %v4449_v1, %v4456_v32 }
 0x3d7   : > { %4459 = vst [vmem:[%s557_s14] sm:$0xff] %v4457_v9 }
 0x3d8 PF: > { %s14_s19 = sadd.s32 1, %s4700_s19   ;;  %s7675_s15 = smov %s4688_s16 }
 0x3d9   : > { %p11_p10 = scmp.ge.s32.totalorder %s14_s19, 4   ;;  %s7676_s16 = smov %s4763_s23 }
 0x3da   : > { %s7677_s17 = smov %s4696_s18  ;;  %s7678_s18 = smov %s7680_s20 }
 0x3db   :  { %13 = sbr.rel (!%p11_p10) target bundleno = 3 (0x3), region = 103 }

</bundles_post_ra>
